<compile_context>
chip_gen: v7x
topology: tpu7x:2x2x1
jax: 0.10.0
libtpu: 0.0.40
codegen_flags: <defaults>
</compile_context>

<pallas_src>
import functools

import numpy as np
import jax
import jax.numpy as jnp
from jax import lax
from jax.experimental import pallas as pl
from jax.experimental.pallas import tpu as pltpu

# Scoped-VMEM cap: safe for v7x (64 MiB phys); blocks here are tiny anyway.
# On v5e/v6e (128 MiB phys) this could be raised for much larger shapes.
_VMEM_LIMIT = 32 * 1024 * 1024


def _cparams(semantics):
    return pltpu.CompilerParams(dimension_semantics=semantics,
                                vmem_limit_bytes=_VMEM_LIMIT)


def _batch_tiles(batch, max_blocks=2):
    """Fold batch into at most `max_blocks` grid steps.

    <=2 steps amortizes per-step overhead (review: fold batch), while still
    giving 2 "parallel" blocks for v7x's two TensorCores when B >= 2.
    """
    nb = min(batch, max_blocks)
    while batch % nb:
        nb -= 1
    return batch // nb, nb


def _im2col3x3(x):
    """(TB, H, W, C) -> (TB, H, W, 9*C): 3x3 neighborhoods, zero padded.

    Built entirely on the register value (zero-concat + static shifted views):
    no VMEM halo-scratch round trip.  Tap order is (kh, kw) row-major so it
    matches the host-side merged dw.pw weight layout.
    """
    TB, H, W, C = x.shape
    zw = jnp.zeros((TB, H, 1, C), x.dtype)
    xp = jnp.concatenate([zw, x, zw], axis=2)               # (TB, H, W+2, C)
    zh = jnp.zeros((TB, 1, W + 2, C), x.dtype)
    xp = jnp.concatenate([zh, xp, zh], axis=1)              # (TB, H+2, W+2, C)
    taps = [xp[:, kh:kh + H, kw:kw + W, :]
            for kh in range(3) for kw in range(3)]
    return jnp.concatenate(taps, axis=-1)                   # (TB, H, W, 9C)


def _interp_taps(out_size, in_size):
    """F.interpolate(mode='bilinear', align_corners=True) as static 2-tap blends."""
    src = np.arange(out_size) * (in_size - 1) / max(out_size - 1, 1)
    lo = np.clip(np.floor(src).astype(np.int64), 0, in_size - 1)
    hi = np.minimum(lo + 1, in_size - 1)
    fr = (src - lo).astype(np.float32)
    return (tuple(int(v) for v in lo), tuple(int(v) for v in hi),
            tuple(float(v) for v in fr))


# ---------------------------------------------------------------------------
# Kernel A: to_kv depthwise+pointwise (one merged MXU matmul) + separable
# 2-tap bilinear reduction to (reduce_size, reduce_size).  Grid over batch
# tiles; per-step the full (TB, H, W, C) image is resident in VMEM.
# ---------------------------------------------------------------------------
def _kv_kernel(x_ref, w_ref, o_ref, *, taps_h, taps_w, compute_dtype):
    TB, H, W, C = x_ref.shape
    Cout = w_ref.shape[-1]
    cols = _im2col3x3(x_ref[...].astype(compute_dtype))
    # dw o pw as a single MXU matmul: K = 9*C (vs 9 VPU taps at C/128 lane fill).
    y = jnp.dot(cols.reshape(TB * H * W, 9 * C),
                w_ref[...].astype(compute_dtype),
                preferred_element_type=jnp.float32)
    y = y.reshape(TB, H, W, Cout)
    if taps_h is not None:
        # Separable align_corners=True bilinear reduce: 2-tap blends per output
        # row / col with static indices & weights (no interp matrix at all).
        lo, hi, fr = taps_h
        y = jnp.concatenate(
            [(1.0 - f) * y[:, l:l + 1] + f * y[:, u:u + 1]
             for l, u, f in zip(lo, hi, fr)], axis=1)        # (TB, R, W, Cout)
        lo, hi, fr = taps_w
        y = jnp.concatenate(
            [(1.0 - f) * y[:, :, l:l + 1] + f * y[:, :, u:u + 1]
             for l, u, f in zip(lo, hi, fr)], axis=2)        # (TB, R, R, Cout)
    o_ref[...] = y.astype(o_ref.dtype)


def fused_kv(x_nhwc, w_merged, *, reduce_size, compute_dtype, out_dtype):
    B, H, W, C = x_nhwc.shape
    Cout = w_merged.shape[-1]
    R = reduce_size
    reduce = (H != R)                       # mirrors torch's `H != reduce_size`
    taps_h = _interp_taps(R, H) if reduce else None
    taps_w = _interp_taps(R, W) if reduce else None
    TB, nb = _batch_tiles(B)
    oh, ow = (R, R) if reduce else (H, W)
    kernel = functools.partial(_kv_kernel, taps_h=taps_h, taps_w=taps_w,
                               compute_dtype=compute_dtype)
    out = pl.pallas_call(
        kernel,
        out_shape=jax.ShapeDtypeStruct((B, oh, ow, Cout), out_dtype),
        grid=(nb,),
        in_specs=[pl.BlockSpec((TB, H, W, C), lambda b: (b, 0, 0, 0)),
                  pl.BlockSpec((9 * C, Cout), lambda b: (0, 0))],
        out_specs=pl.BlockSpec((TB, oh, ow, Cout), lambda b: (b, 0, 0, 0)),
        compiler_params=_cparams(("parallel",)),
    )(x_nhwc, w_merged)
    return out.reshape(B, oh * ow, Cout)    # free XLA view reshape


# ---------------------------------------------------------------------------
# Kernel B: to_q dsconv + multi-head attention + to_out dsconv, all fused so
# q, per-head outputs and the pre-projection activation never hit HBM.
# q/kv stay head-major on the channel (lane) axis via a one-time weight-column
# permutation, so there are no activation-side head transposes.
# ---------------------------------------------------------------------------
def _attn_out_kernel(q_ref, kv_ref, bias_ref, wq_ref, wo_ref, out_ref, attn_ref,
                     *, heads, dim_head, compute_dtype):
    TB, HH, WH, Cq = q_ref.shape
    inner = heads * dim_head
    Nq = HH * WH
    Nk = kv_ref.shape[1]
    out_dim = wo_ref.shape[-1]

    # --- to_q: merged dw o pw MXU matmul; `scale` already folded into wq ---
    qcols = _im2col3x3(q_ref[...].astype(compute_dtype))
    qm = jnp.dot(qcols.reshape(TB * Nq, 9 * Cq),
                 wq_ref[...].astype(compute_dtype),
                 preferred_element_type=jnp.float32).reshape(TB, Nq, inner)

    kv = kv_ref[...]

    attn_parts, o_parts = [], []
    for h in range(heads):
        lo, hi = h * dim_head, (h + 1) * dim_head
        qh = qm[:, :, lo:hi].astype(compute_dtype)
        kh = kv[:, :, lo:hi].astype(compute_dtype)
        vh = kv[:, :, inner + lo:inner + hi].astype(compute_dtype)
        # Batched contraction over dim_head — no k transpose needed.
        s = jnp.einsum('bqd,bkd->bqk', qh, kh,
                       preferred_element_type=jnp.float32)
        s = s + bias_ref[h][None]           # bias is pre-scaled => (qk+bias)*scale
        m = jnp.max(s, axis=-1, keepdims=True)
        p = jnp.exp(s - m)
        den = jnp.sum(p, axis=-1, keepdims=True)
        # EUP approximate reciprocal + one Newton step (tiny (TB,Nq,1) shape,
        # frees the VALU from a full (Nq,Nk) divide, ~fp32 accurate).
        r = pl.reciprocal(den, approx=True)
        r = r * (2.0 - den * r)
        p = p * r
        attn_parts.append(p)
        o_parts.append(jnp.einsum('bqk,bkd->bqd', p.astype(compute_dtype), vh,
                                  preferred_element_type=jnp.float32))

    # Lane-packed attention map: one (TB, Nq, heads*Nk) store instead of per-head
    # Nk-lane masked stores; wrapper re-lays it out to (B, heads, Nq, Nk).
    attn_ref[...] = jnp.concatenate(attn_parts, axis=-1)

    o = jnp.concatenate(o_parts, axis=-1)                   # (TB, Nq, inner), VMEM only
    # --- to_out: merged dw o pw MXU matmul on the attention output ---
    ocols = _im2col3x3(o.reshape(TB, HH, WH, inner).astype(compute_dtype))
    out = jnp.dot(ocols.reshape(TB * Nq, 9 * inner),
                  wo_ref[...].astype(compute_dtype),
                  preferred_element_type=jnp.float32)
    out_ref[...] = out.reshape(TB, Nq, out_dim)


def fused_q_attention_out(q_nhwc, kv, bias_scaled, wq_merged, wo_merged, *,
                          heads, dim_head, compute_dtype):
    B, HH, WH, Cq = q_nhwc.shape
    Nq = HH * WH
    Nk = kv.shape[1]
    inner = heads * dim_head
    out_dim = wo_merged.shape[-1]
    TB, nb = _batch_tiles(B)
    kernel = functools.partial(_attn_out_kernel, heads=heads, dim_head=dim_head,
                               compute_dtype=compute_dtype)
    out_flat, attn_flat = pl.pallas_call(
        kernel,
        out_shape=(jax.ShapeDtypeStruct((B, Nq, out_dim), jnp.float32),
                   jax.ShapeDtypeStruct((B, Nq, heads * Nk), jnp.float32)),
        grid=(nb,),
        in_specs=[pl.BlockSpec((TB, HH, WH, Cq), lambda b: (b, 0, 0, 0)),
                  pl.BlockSpec((TB, Nk, 2 * inner), lambda b: (b, 0, 0)),
                  pl.BlockSpec((heads, Nq, Nk), lambda b: (0, 0, 0)),
                  pl.BlockSpec((9 * Cq, inner), lambda b: (0, 0)),
                  pl.BlockSpec((9 * inner, out_dim), lambda b: (0, 0))],
        out_specs=(pl.BlockSpec((TB, Nq, out_dim), lambda b: (b, 0, 0)),
                   pl.BlockSpec((TB, Nq, heads * Nk), lambda b: (b, 0, 0))),
        compiler_params=_cparams(("parallel",)),
    )(q_nhwc, kv, bias_scaled, wq_merged, wo_merged)
    # Free XLA re-layout of the tiny attention map to the torch layout.
    attn = attn_flat.reshape(B, Nq, heads, Nk).transpose(0, 2, 1, 3)
    return out_flat, attn


# ---------------------------------------------------------------------------
# JAX glue: rel-pos bias, weight merging / head-major permutation.
# ---------------------------------------------------------------------------
def relative_position_index(h, w):
    coords = np.stack(np.meshgrid(np.arange(h), np.arange(w), indexing='ij'))
    coords_flatten = coords.reshape(2, -1)
    rel = coords_flatten[:, :, None] - coords_flatten[:, None, :]
    rel = rel.transpose(1, 2, 0).copy()
    rel[:, :, 0] += h - 1
    rel[:, :, 1] += w - 1
    rel[:, :, 0] *= 2 * h - 1
    return rel.sum(-1)                       # (h*w, h*w)


def relative_position_bias(table, index, heads, h, w, H, W):
    bias = table[index.reshape(-1)].reshape(h, w, h * w, heads)
    bias = jnp.repeat(bias, H // h, axis=0)
    bias = jnp.repeat(bias, W // w, axis=1)
    bias = bias.reshape(H * W, h * w, heads)
    return jnp.transpose(bias, (2, 0, 1))    # (heads, H*W, h*w)


def interp_matrix_np(out_size, in_size):
    # Only used by the pure-JAX reference.
    src = np.arange(out_size) * (in_size - 1) / max(out_size - 1, 1)
    lo = np.clip(np.floor(src).astype(np.int64), 0, in_size - 1)
    hi = np.minimum(lo + 1, in_size - 1)
    frac = (src - lo).astype(np.float32)
    A = np.zeros((out_size, in_size), np.float32)
    A[np.arange(out_size), lo] += (1.0 - frac)
    A[np.arange(out_size), hi] += frac
    return A


def head_major_perm(heads, dim_head):
    # original channel c = d*heads + h  ->  head-major position c' = h*dim_head + d
    d = np.arange(dim_head)
    h = np.arange(heads)
    return (d[None, :] * heads + h[:, None]).reshape(-1)


def merge_dw_pw(dw, pw):
    """Merge depthwise (3,3,C) o pointwise (C,Cout) into one (9*C, Cout) weight:
    W[(kh*3+kw)*C + c, d] = dw[kh,kw,c] * pw[c,d]."""
    C, Cout = pw.shape
    return (dw.reshape(9, C, 1) * pw[None, :, :]).reshape(9 * C, Cout)


# ---------------------------------------------------------------------------
# Full forward (matches LinearAttentionDecoder.forward, eval mode: dropout=0).
# ---------------------------------------------------------------------------
def linear_attention_decoder(q_nchw, x_nchw, params, *, heads, dim_head,
                             reduce_size, compute_dtype=jnp.float32):
    scale = dim_head ** (-0.5)
    inner = heads * dim_head
    B, C, H, W = x_nchw.shape
    _, Cq, HH, WH = q_nchw.shape
    R = reduce_size
    assert HH % R == 0 and WH % R == 0, \
        "rel-pos bias expansion needs HH, WH to be multiples of reduce_size"

    x = jnp.transpose(x_nchw, (0, 2, 3, 1))      # NCHW -> NHWC
    qc = jnp.transpose(q_nchw, (0, 2, 3, 1))

    # One-time weight prep: head-major column permutation (so activations are
    # head-major, no in-kernel head transposes), dw o pw merge, and scale fold.
    perm = head_major_perm(heads, dim_head)
    kv_pw_hm = jnp.concatenate([params['kv_pw'][:, :inner][:, perm],
                                params['kv_pw'][:, inner:][:, perm]], axis=1)
    wkv = merge_dw_pw(params['kv_dw'], kv_pw_hm)                       # (9C, 2*inner)
    wq = merge_dw_pw(params['q_dw'], params['q_pw'][:, perm]) * scale  # scale folded
    wo = merge_dw_pw(params['out_dw'][:, :, perm], params['out_pw'][perm, :])

    # Kernel A: kv path (dsconv + separable bilinear reduce).  Intermediate is
    # written in compute_dtype (bf16 path halves its HBM traffic).
    kv = fused_kv(x, wkv, reduce_size=R, compute_dtype=compute_dtype,
                  out_dtype=compute_dtype)                 # (B, Nk, 2*inner)

    # Rel-pos bias, pre-scaled so the kernel computes qk' + bias' directly while
    # preserving the torch (qk + bias) * scale ordering.
    idx = relative_position_index(R, R)
    bias = relative_position_bias(params['rel_table'], idx, heads, R, R, HH, WH)
    bias = (bias * scale).astype(jnp.float32)

    # Kernel B: q path + attention + out path, fused.
    out_flat, attn = fused_q_attention_out(qc, kv, bias, wq, wo, heads=heads,
                                           dim_head=dim_head,
                                           compute_dtype=compute_dtype)
    out = jnp.transpose(out_flat.reshape(B, HH, WH, -1), (0, 3, 1, 2))  # NCHW
    return out, attn


# ---------------------------------------------------------------------------
# Pure-JAX reference (lax.conv + einsum) for correctness checking.
# ---------------------------------------------------------------------------
def reference_forward(q_nchw, x_nchw, params, *, heads, dim_head, reduce_size):
    scale = dim_head ** (-0.5)
    inner_dim = heads * dim_head
    B, C, H, W = x_nchw.shape
    _, _, HH, WH = q_nchw.shape
    x = jnp.transpose(x_nchw, (0, 2, 3, 1))
    qc = jnp.transpose(q_nchw, (0, 2, 3, 1))

    def ds(t, dw, pw):
        Cc = t.shape[-1]
        y = lax.conv_general_dilated(
            t, dw[:, :, None, :], (1, 1), 'SAME',
            dimension_numbers=('NHWC', 'HWIO', 'NHWC'),
            feature_group_count=Cc)
        return jnp.einsum('bhwc,cd->bhwd', y, pw)

    kv = ds(x, params['kv_dw'], params['kv_pw'])
    k_map, v_map = kv[..., :inner_dim], kv[..., inner_dim:]
    qm = ds(qc, params['q_dw'], params['q_pw'])

    if H != reduce_size:
        Ah = interp_matrix_np(reduce_size, H)
        Aw = interp_matrix_np(reduce_size, W)
        k_map = jnp.einsum('oh,bhwc,pw->bopc', Ah, k_map, Aw)
        v_map = jnp.einsum('oh,bhwc,pw->bopc', Ah, v_map, Aw)

    def to_heads(t, hs, ws):
        t = t.reshape(t.shape[0], hs * ws, dim_head, heads)
        return jnp.transpose(t, (0, 3, 1, 2))

    qh = to_heads(qm, HH, WH)
    kh = to_heads(k_map, reduce_size, reduce_size)
    vh = to_heads(v_map, reduce_size, reduce_size)

    idx = relative_position_index(reduce_size, reduce_size)
    bias = relative_position_bias(params['rel_table'], idx, heads,
                                  reduce_size, reduce_size, HH, WH)

    s = (jnp.einsum('bhid,bhjd->bhij', qh, kh) + bias[None]) * scale
    attn = jax.nn.softmax(s, axis=-1)
    o = jnp.einsum('bhij,bhjd->bhid', attn, vh)
    o = jnp.transpose(o, (0, 2, 3, 1)).reshape(B, HH, WH, inner_dim)
    o = ds(o, params['out_dw'], params['out_pw'])
    return jnp.transpose(o, (0, 3, 1, 2)), attn


if __name__ == "__main__":
    B, in_dim, out_dim = 2, 4, 4
    heads, dim_head, reduce_size = 2, 8, 4
    H = W = 8          # x spatial
    HH = WH = 8        # q spatial (multiple of reduce_size for rel-pos bias)
    inner_dim = heads * dim_head

    key = jax.random.PRNGKey(0)
    ks = jax.random.split(key, 9)
    x = jax.random.normal(ks[0], (B, in_dim, H, W), jnp.float32)
    q = jax.random.normal(ks[1], (B, out_dim, HH, WH), jnp.float32)

    params = {
        'kv_dw': 0.1 * jax.random.normal(ks[2], (3, 3, in_dim), jnp.float32),
        'kv_pw': 0.1 * jax.random.normal(ks[3], (in_dim, inner_dim * 2),
                                         jnp.float32),
        'q_dw': 0.1 * jax.random.normal(ks[4], (3, 3, out_dim), jnp.float32),
        'q_pw': 0.1 * jax.random.normal(ks[5], (out_dim, inner_dim),
                                        jnp.float32),
        'out_dw': 0.1 * jax.random.normal(ks[6], (3, 3, inner_dim),
                                          jnp.float32),
        'out_pw': 0.1 * jax.random.normal(ks[7], (inner_dim, out_dim),
                                          jnp.float32),
        'rel_table': 0.02 * jax.random.normal(
            ks[8], ((2 * reduce_size - 1) * (2 * reduce_size - 1), heads),
            jnp.float32),
    }

    # fp32 path (v5e-friendly default): must match the pure-JAX reference tightly.
    fwd = jax.jit(functools.partial(linear_attention_decoder, heads=heads,
                                    dim_head=dim_head, reduce_size=reduce_size))
    out, attn = jax.block_until_ready(fwd(q, x, params))

    assert out.shape == (B, out_dim, HH, WH)
    assert attn.shape == (B, heads, HH * WH, reduce_size * reduce_size)

    out_r, attn_r = reference_forward(
        q, x, params, heads=heads, dim_head=dim_head, reduce_size=reduce_size)
    np.testing.assert_allclose(np.asarray(out), np.asarray(out_r),
                               rtol=1e-3, atol=1e-3)
    np.testing.assert_allclose(np.asarray(attn), np.asarray(attn_r),
                               rtol=1e-3, atol=1e-3)

    # bf16 MXU path (fp32 accumulation, bf16 kv intermediate): compile/run
    # sanity + loose numerical check.
    fwd_bf16 = jax.jit(functools.partial(
        linear_attention_decoder, heads=heads, dim_head=dim_head,
        reduce_size=reduce_size, compute_dtype=jnp.bfloat16))
    out_b, attn_b = jax.block_until_ready(fwd_bf16(q, x, params))
    np.testing.assert_allclose(np.asarray(out_b), np.asarray(out_r),
                               rtol=5e-2, atol=5e-2)

    print("KERNEL_OK")
</pallas_src>

<mosaic_0001>
module attributes {stable_mosaic.version = 11 : i64} {
  func.func @_kv_kernel(%arg0: i32, %arg1: memref<1x8x8x4xf32, #tpu.memory_space<vmem>>, %arg2: memref<36x32xf32, #tpu.memory_space<vmem>>, %arg3: memref<1x4x4x32xf32, #tpu.memory_space<vmem>>) attributes {dimension_semantics = [#tpu.dimension_semantics<parallel>], iteration_bounds = array<i64: 2>, scalar_prefetch = 0 : i64, scratch_operands = 0 : i64, tpu.core_type = #tpu.core_type<tc>, window_params = [{transform_indices = @transform_0, window_bounds = array<i64: 1, 8, 8, 4>}, {pipeline_mode = #tpu.pipeline_mode<synchronous>, transform_indices = @transform_1, window_bounds = array<i64: 36, 32>}, {transform_indices = @transform_2, window_bounds = array<i64: 1, 4, 4, 32>}]} {
    %c0 = arith.constant 0 : index
    %c0_0 = arith.constant 0 : index
    %c0_1 = arith.constant 0 : index
    %c0_2 = arith.constant 0 : index
    %0 = vector.load %arg1[%c0, %c0_0, %c0_1, %c0_2] : memref<1x8x8x4xf32, #tpu.memory_space<vmem>>, vector<1x8x8x4xf32>
    %cst = arith.constant 0.000000e+00 : f32
    %1 = vector.broadcast %cst : f32 to vector<1x8x1x4xf32>
    %2 = tpu.concatenate %1, %0, %1 in 2 : vector<1x8x1x4xf32>, vector<1x8x8x4xf32>, vector<1x8x1x4xf32> -> vector<1x8x10x4xf32>
    %cst_3 = arith.constant 0.000000e+00 : f32
    %3 = vector.broadcast %cst_3 : f32 to vector<1x1x10x4xf32>
    %4 = tpu.concatenate %3, %2, %3 in 1 : vector<1x1x10x4xf32>, vector<1x8x10x4xf32>, vector<1x1x10x4xf32> -> vector<1x10x10x4xf32>
    %5 = vector.extract_strided_slice %4 {offsets = [0, 0, 0, 0], sizes = [1, 8, 8, 4], strides = [1, 1, 1, 1]} : vector<1x10x10x4xf32> to vector<1x8x8x4xf32>
    %6 = vector.extract_strided_slice %4 {offsets = [0, 0, 1, 0], sizes = [1, 8, 8, 4], strides = [1, 1, 1, 1]} : vector<1x10x10x4xf32> to vector<1x8x8x4xf32>
    %7 = vector.extract_strided_slice %4 {offsets = [0, 0, 2, 0], sizes = [1, 8, 8, 4], strides = [1, 1, 1, 1]} : vector<1x10x10x4xf32> to vector<1x8x8x4xf32>
    %8 = vector.extract_strided_slice %4 {offsets = [0, 1, 0, 0], sizes = [1, 8, 8, 4], strides = [1, 1, 1, 1]} : vector<1x10x10x4xf32> to vector<1x8x8x4xf32>
    %9 = vector.extract_strided_slice %4 {offsets = [0, 1, 1, 0], sizes = [1, 8, 8, 4], strides = [1, 1, 1, 1]} : vector<1x10x10x4xf32> to vector<1x8x8x4xf32>
    %10 = vector.extract_strided_slice %4 {offsets = [0, 1, 2, 0], sizes = [1, 8, 8, 4], strides = [1, 1, 1, 1]} : vector<1x10x10x4xf32> to vector<1x8x8x4xf32>
    %11 = vector.extract_strided_slice %4 {offsets = [0, 2, 0, 0], sizes = [1, 8, 8, 4], strides = [1, 1, 1, 1]} : vector<1x10x10x4xf32> to vector<1x8x8x4xf32>
    %12 = vector.extract_strided_slice %4 {offsets = [0, 2, 1, 0], sizes = [1, 8, 8, 4], strides = [1, 1, 1, 1]} : vector<1x10x10x4xf32> to vector<1x8x8x4xf32>
    %13 = vector.extract_strided_slice %4 {offsets = [0, 2, 2, 0], sizes = [1, 8, 8, 4], strides = [1, 1, 1, 1]} : vector<1x10x10x4xf32> to vector<1x8x8x4xf32>
    %14 = tpu.concatenate %5, %6, %7, %8, %9, %10, %11, %12, %13 in 3 : vector<1x8x8x4xf32>, vector<1x8x8x4xf32>, vector<1x8x8x4xf32>, vector<1x8x8x4xf32>, vector<1x8x8x4xf32>, vector<1x8x8x4xf32>, vector<1x8x8x4xf32>, vector<1x8x8x4xf32>, vector<1x8x8x4xf32> -> vector<1x8x8x36xf32>
    %15 = vector.shape_cast %14 : vector<1x8x8x36xf32> to vector<64x36xf32>
    %c0_4 = arith.constant 0 : index
    %c0_5 = arith.constant 0 : index
    %16 = vector.load %arg2[%c0_4, %c0_5] : memref<36x32xf32, #tpu.memory_space<vmem>>, vector<36x32xf32>
    %cst_6 = arith.constant dense<0.000000e+00> : vector<64x32xf32>
    %17 = tpu.matmul %15, %16, %cst_6 {dimension_numbers = #tpu.dot_dimension_numbers<[1], [0], [0], [1], [0, 0, 1, 1], [], []>} : vector<64x36xf32>, vector<36x32xf32>, vector<64x32xf32> -> vector<64x32xf32>
    %18 = vector.shape_cast %17 : vector<64x32xf32> to vector<1x8x8x32xf32>
    %19 = vector.extract_strided_slice %18 {offsets = [0, 0, 0, 0], sizes = [1, 1, 8, 32], strides = [1, 1, 1, 1]} : vector<1x8x8x32xf32> to vector<1x1x8x32xf32>
    %cst_7 = arith.constant 1.000000e+00 : f32
    %20 = vector.broadcast %cst_7 : f32 to vector<1x1x8x32xf32>
    %21 = arith.mulf %20, %19 : vector<1x1x8x32xf32>
    %22 = vector.extract_strided_slice %18 {offsets = [0, 1, 0, 0], sizes = [1, 1, 8, 32], strides = [1, 1, 1, 1]} : vector<1x8x8x32xf32> to vector<1x1x8x32xf32>
    %cst_8 = arith.constant 0.000000e+00 : f32
    %23 = vector.broadcast %cst_8 : f32 to vector<1x1x8x32xf32>
    %24 = arith.mulf %23, %22 : vector<1x1x8x32xf32>
    %25 = arith.addf %21, %24 : vector<1x1x8x32xf32>
    %26 = vector.extract_strided_slice %18 {offsets = [0, 2, 0, 0], sizes = [1, 1, 8, 32], strides = [1, 1, 1, 1]} : vector<1x8x8x32xf32> to vector<1x1x8x32xf32>
    %cst_9 = arith.constant 0.666666627 : f32
    %27 = vector.broadcast %cst_9 : f32 to vector<1x1x8x32xf32>
    %28 = arith.mulf %27, %26 : vector<1x1x8x32xf32>
    %29 = vector.extract_strided_slice %18 {offsets = [0, 3, 0, 0], sizes = [1, 1, 8, 32], strides = [1, 1, 1, 1]} : vector<1x8x8x32xf32> to vector<1x1x8x32xf32>
    %cst_10 = arith.constant 0.333333343 : f32
    %30 = vector.broadcast %cst_10 : f32 to vector<1x1x8x32xf32>
    %31 = arith.mulf %30, %29 : vector<1x1x8x32xf32>
    %32 = arith.addf %28, %31 : vector<1x1x8x32xf32>
    %33 = vector.extract_strided_slice %18 {offsets = [0, 4, 0, 0], sizes = [1, 1, 8, 32], strides = [1, 1, 1, 1]} : vector<1x8x8x32xf32> to vector<1x1x8x32xf32>
    %cst_11 = arith.constant 0.333333313 : f32
    %34 = vector.broadcast %cst_11 : f32 to vector<1x1x8x32xf32>
    %35 = arith.mulf %34, %33 : vector<1x1x8x32xf32>
    %36 = vector.extract_strided_slice %18 {offsets = [0, 5, 0, 0], sizes = [1, 1, 8, 32], strides = [1, 1, 1, 1]} : vector<1x8x8x32xf32> to vector<1x1x8x32xf32>
    %cst_12 = arith.constant 0.666666686 : f32
    %37 = vector.broadcast %cst_12 : f32 to vector<1x1x8x32xf32>
    %38 = arith.mulf %37, %36 : vector<1x1x8x32xf32>
    %39 = arith.addf %35, %38 : vector<1x1x8x32xf32>
    %40 = vector.extract_strided_slice %18 {offsets = [0, 7, 0, 0], sizes = [1, 1, 8, 32], strides = [1, 1, 1, 1]} : vector<1x8x8x32xf32> to vector<1x1x8x32xf32>
    %cst_13 = arith.constant 1.000000e+00 : f32
    %41 = vector.broadcast %cst_13 : f32 to vector<1x1x8x32xf32>
    %42 = arith.mulf %41, %40 : vector<1x1x8x32xf32>
    %43 = vector.extract_strided_slice %18 {offsets = [0, 7, 0, 0], sizes = [1, 1, 8, 32], strides = [1, 1, 1, 1]} : vector<1x8x8x32xf32> to vector<1x1x8x32xf32>
    %cst_14 = arith.constant 0.000000e+00 : f32
    %44 = vector.broadcast %cst_14 : f32 to vector<1x1x8x32xf32>
    %45 = arith.mulf %44, %43 : vector<1x1x8x32xf32>
    %46 = arith.addf %42, %45 : vector<1x1x8x32xf32>
    %47 = tpu.concatenate %25, %32, %39, %46 in 1 : vector<1x1x8x32xf32>, vector<1x1x8x32xf32>, vector<1x1x8x32xf32>, vector<1x1x8x32xf32> -> vector<1x4x8x32xf32>
    %48 = vector.extract_strided_slice %47 {offsets = [0, 0, 0, 0], sizes = [1, 4, 1, 32], strides = [1, 1, 1, 1]} : vector<1x4x8x32xf32> to vector<1x4x1x32xf32>
    %cst_15 = arith.constant 1.000000e+00 : f32
    %49 = vector.broadcast %cst_15 : f32 to vector<1x4x1x32xf32>
    %50 = arith.mulf %49, %48 : vector<1x4x1x32xf32>
    %51 = vector.extract_strided_slice %47 {offsets = [0, 0, 1, 0], sizes = [1, 4, 1, 32], strides = [1, 1, 1, 1]} : vector<1x4x8x32xf32> to vector<1x4x1x32xf32>
    %cst_16 = arith.constant 0.000000e+00 : f32
    %52 = vector.broadcast %cst_16 : f32 to vector<1x4x1x32xf32>
    %53 = arith.mulf %52, %51 : vector<1x4x1x32xf32>
    %54 = arith.addf %50, %53 : vector<1x4x1x32xf32>
    %55 = vector.extract_strided_slice %47 {offsets = [0, 0, 2, 0], sizes = [1, 4, 1, 32], strides = [1, 1, 1, 1]} : vector<1x4x8x32xf32> to vector<1x4x1x32xf32>
    %cst_17 = arith.constant 0.666666627 : f32
    %56 = vector.broadcast %cst_17 : f32 to vector<1x4x1x32xf32>
    %57 = arith.mulf %56, %55 : vector<1x4x1x32xf32>
    %58 = vector.extract_strided_slice %47 {offsets = [0, 0, 3, 0], sizes = [1, 4, 1, 32], strides = [1, 1, 1, 1]} : vector<1x4x8x32xf32> to vector<1x4x1x32xf32>
    %cst_18 = arith.constant 0.333333343 : f32
    %59 = vector.broadcast %cst_18 : f32 to vector<1x4x1x32xf32>
    %60 = arith.mulf %59, %58 : vector<1x4x1x32xf32>
    %61 = arith.addf %57, %60 : vector<1x4x1x32xf32>
    %62 = vector.extract_strided_slice %47 {offsets = [0, 0, 4, 0], sizes = [1, 4, 1, 32], strides = [1, 1, 1, 1]} : vector<1x4x8x32xf32> to vector<1x4x1x32xf32>
    %cst_19 = arith.constant 0.333333313 : f32
    %63 = vector.broadcast %cst_19 : f32 to vector<1x4x1x32xf32>
    %64 = arith.mulf %63, %62 : vector<1x4x1x32xf32>
    %65 = vector.extract_strided_slice %47 {offsets = [0, 0, 5, 0], sizes = [1, 4, 1, 32], strides = [1, 1, 1, 1]} : vector<1x4x8x32xf32> to vector<1x4x1x32xf32>
    %cst_20 = arith.constant 0.666666686 : f32
    %66 = vector.broadcast %cst_20 : f32 to vector<1x4x1x32xf32>
    %67 = arith.mulf %66, %65 : vector<1x4x1x32xf32>
    %68 = arith.addf %64, %67 : vector<1x4x1x32xf32>
    %69 = vector.extract_strided_slice %47 {offsets = [0, 0, 7, 0], sizes = [1, 4, 1, 32], strides = [1, 1, 1, 1]} : vector<1x4x8x32xf32> to vector<1x4x1x32xf32>
    %cst_21 = arith.constant 1.000000e+00 : f32
    %70 = vector.broadcast %cst_21 : f32 to vector<1x4x1x32xf32>
    %71 = arith.mulf %70, %69 : vector<1x4x1x32xf32>
    %72 = vector.extract_strided_slice %47 {offsets = [0, 0, 7, 0], sizes = [1, 4, 1, 32], strides = [1, 1, 1, 1]} : vector<1x4x8x32xf32> to vector<1x4x1x32xf32>
    %cst_22 = arith.constant 0.000000e+00 : f32
    %73 = vector.broadcast %cst_22 : f32 to vector<1x4x1x32xf32>
    %74 = arith.mulf %73, %72 : vector<1x4x1x32xf32>
    %75 = arith.addf %71, %74 : vector<1x4x1x32xf32>
    %76 = tpu.concatenate %54, %61, %68, %75 in 2 : vector<1x4x1x32xf32>, vector<1x4x1x32xf32>, vector<1x4x1x32xf32>, vector<1x4x1x32xf32> -> vector<1x4x4x32xf32>
    %c0_23 = arith.constant 0 : index
    %c0_24 = arith.constant 0 : index
    %c0_25 = arith.constant 0 : index
    %c0_26 = arith.constant 0 : index
    %77 = vector.load %arg3[%c0_23, %c0_24, %c0_25, %c0_26] : memref<1x4x4x32xf32, #tpu.memory_space<vmem>>, vector<1x4x4x32xf32>
    tpu.vector_store %arg3[%c0_23, %c0_24, %c0_25, %c0_26], %76 {strides = array<i32>} : memref<1x4x4x32xf32, #tpu.memory_space<vmem>>, vector<1x4x4x32xf32>,
    return
  }
  func.func @transform_0(%arg0: i32) -> (i32, i32, i32, i32) {
    %c0_i32 = arith.constant 0 : i32
    %c0_i32_0 = arith.constant 0 : i32
    %c0_i32_1 = arith.constant 0 : i32
    %c0_i32_2 = arith.constant 0 : i32
    return %arg0, %c0_i32, %c0_i32_0, %c0_i32_1 : i32, i32, i32, i32
  }
  func.func @transform_1(%arg0: i32) -> (i32, i32) {
    %c0_i32 = arith.constant 0 : i32
    %c0_i32_0 = arith.constant 0 : i32
    %c0_i32_1 = arith.constant 0 : i32
    return %c0_i32, %c0_i32_0 : i32, i32
  }
  func.func @transform_2(%arg0: i32) -> (i32, i32, i32, i32) {
    %c0_i32 = arith.constant 0 : i32
    %c0_i32_0 = arith.constant 0 : i32
    %c0_i32_1 = arith.constant 0 : i32
    %c0_i32_2 = arith.constant 0 : i32
    return %arg0, %c0_i32, %c0_i32_0, %c0_i32_1 : i32, i32, i32, i32
  }
}

module attributes {stable_mosaic.version = 11 : i64} {
  func.func @_attn_out_kernel(%arg0: i32, %arg1: memref<1x8x8x4xf32, #tpu.memory_space<vmem>>, %arg2: memref<1x16x32xf32, #tpu.memory_space<vmem>>, %arg3: memref<2x64x16xf32, #tpu.memory_space<vmem>>, %arg4: memref<36x16xf32, #tpu.memory_space<vmem>>, %arg5: memref<144x4xf32, #tpu.memory_space<vmem>>, %arg6: memref<1x64x4xf32, #tpu.memory_space<vmem>>, %arg7: memref<1x64x32xf32, #tpu.memory_space<vmem>>) attributes {dimension_semantics = [#tpu.dimension_semantics<parallel>], iteration_bounds = array<i64: 2>, scalar_prefetch = 0 : i64, scratch_operands = 0 : i64, tpu.core_type = #tpu.core_type<tc>, window_params = [{transform_indices = @transform_0, window_bounds = array<i64: 1, 8, 8, 4>}, {transform_indices = @transform_1, window_bounds = array<i64: 1, 16, 32>}, {pipeline_mode = #tpu.pipeline_mode<synchronous>, transform_indices = @transform_2, window_bounds = array<i64: 2, 64, 16>}, {pipeline_mode = #tpu.pipeline_mode<synchronous>, transform_indices = @transform_3, window_bounds = array<i64: 36, 16>}, {pipeline_mode = #tpu.pipeline_mode<synchronous>, transform_indices = @transform_4, window_bounds = array<i64: 144, 4>}, {transform_indices = @transform_5, window_bounds = array<i64: 1, 64, 4>}, {transform_indices = @transform_6, window_bounds = array<i64: 1, 64, 32>}]} {
    %c0 = arith.constant 0 : index
    %c0_0 = arith.constant 0 : index
    %c0_1 = arith.constant 0 : index
    %c0_2 = arith.constant 0 : index
    %0 = vector.load %arg1[%c0, %c0_0, %c0_1, %c0_2] : memref<1x8x8x4xf32, #tpu.memory_space<vmem>>, vector<1x8x8x4xf32>
    %cst = arith.constant 0.000000e+00 : f32
    %1 = vector.broadcast %cst : f32 to vector<1x8x1x4xf32>
    %2 = tpu.concatenate %1, %0, %1 in 2 : vector<1x8x1x4xf32>, vector<1x8x8x4xf32>, vector<1x8x1x4xf32> -> vector<1x8x10x4xf32>
    %cst_3 = arith.constant 0.000000e+00 : f32
    %3 = vector.broadcast %cst_3 : f32 to vector<1x1x10x4xf32>
    %4 = tpu.concatenate %3, %2, %3 in 1 : vector<1x1x10x4xf32>, vector<1x8x10x4xf32>, vector<1x1x10x4xf32> -> vector<1x10x10x4xf32>
    %5 = vector.extract_strided_slice %4 {offsets = [0, 0, 0, 0], sizes = [1, 8, 8, 4], strides = [1, 1, 1, 1]} : vector<1x10x10x4xf32> to vector<1x8x8x4xf32>
    %6 = vector.extract_strided_slice %4 {offsets = [0, 0, 1, 0], sizes = [1, 8, 8, 4], strides = [1, 1, 1, 1]} : vector<1x10x10x4xf32> to vector<1x8x8x4xf32>
    %7 = vector.extract_strided_slice %4 {offsets = [0, 0, 2, 0], sizes = [1, 8, 8, 4], strides = [1, 1, 1, 1]} : vector<1x10x10x4xf32> to vector<1x8x8x4xf32>
    %8 = vector.extract_strided_slice %4 {offsets = [0, 1, 0, 0], sizes = [1, 8, 8, 4], strides = [1, 1, 1, 1]} : vector<1x10x10x4xf32> to vector<1x8x8x4xf32>
    %9 = vector.extract_strided_slice %4 {offsets = [0, 1, 1, 0], sizes = [1, 8, 8, 4], strides = [1, 1, 1, 1]} : vector<1x10x10x4xf32> to vector<1x8x8x4xf32>
    %10 = vector.extract_strided_slice %4 {offsets = [0, 1, 2, 0], sizes = [1, 8, 8, 4], strides = [1, 1, 1, 1]} : vector<1x10x10x4xf32> to vector<1x8x8x4xf32>
    %11 = vector.extract_strided_slice %4 {offsets = [0, 2, 0, 0], sizes = [1, 8, 8, 4], strides = [1, 1, 1, 1]} : vector<1x10x10x4xf32> to vector<1x8x8x4xf32>
    %12 = vector.extract_strided_slice %4 {offsets = [0, 2, 1, 0], sizes = [1, 8, 8, 4], strides = [1, 1, 1, 1]} : vector<1x10x10x4xf32> to vector<1x8x8x4xf32>
    %13 = vector.extract_strided_slice %4 {offsets = [0, 2, 2, 0], sizes = [1, 8, 8, 4], strides = [1, 1, 1, 1]} : vector<1x10x10x4xf32> to vector<1x8x8x4xf32>
    %14 = tpu.concatenate %5, %6, %7, %8, %9, %10, %11, %12, %13 in 3 : vector<1x8x8x4xf32>, vector<1x8x8x4xf32>, vector<1x8x8x4xf32>, vector<1x8x8x4xf32>, vector<1x8x8x4xf32>, vector<1x8x8x4xf32>, vector<1x8x8x4xf32>, vector<1x8x8x4xf32>, vector<1x8x8x4xf32> -> vector<1x8x8x36xf32>
    %15 = vector.shape_cast %14 : vector<1x8x8x36xf32> to vector<64x36xf32>
    %c0_4 = arith.constant 0 : index
    %c0_5 = arith.constant 0 : index
    %16 = vector.load %arg4[%c0_4, %c0_5] : memref<36x16xf32, #tpu.memory_space<vmem>>, vector<36x16xf32>
    %cst_6 = arith.constant dense<0.000000e+00> : vector<64x16xf32>
    %17 = tpu.matmul %15, %16, %cst_6 {dimension_numbers = #tpu.dot_dimension_numbers<[1], [0], [0], [1], [0, 0, 1, 1], [], []>} : vector<64x36xf32>, vector<36x16xf32>, vector<64x16xf32> -> vector<64x16xf32>
    %18 = vector.shape_cast %17 : vector<64x16xf32> to vector<1x64x16xf32>
    %c0_7 = arith.constant 0 : index
    %c0_8 = arith.constant 0 : index
    %c0_9 = arith.constant 0 : index
    %19 = vector.load %arg2[%c0_7, %c0_8, %c0_9] : memref<1x16x32xf32, #tpu.memory_space<vmem>>, vector<1x16x32xf32>
    %20 = vector.extract_strided_slice %18 {offsets = [0, 0, 0], sizes = [1, 64, 8], strides = [1, 1, 1]} : vector<1x64x16xf32> to vector<1x64x8xf32>
    %21 = vector.extract_strided_slice %19 {offsets = [0, 0, 0], sizes = [1, 16, 8], strides = [1, 1, 1]} : vector<1x16x32xf32> to vector<1x16x8xf32>
    %22 = vector.extract_strided_slice %19 {offsets = [0, 0, 16], sizes = [1, 16, 8], strides = [1, 1, 1]} : vector<1x16x32xf32> to vector<1x16x8xf32>
    "tpu.trace_start"() <{level = 10 : i32, message = "bqd,bkd->bqk"}> : () -> ()
    %cst_10 = arith.constant dense<0.000000e+00> : vector<1x64x16xf32>
    %23 = tpu.matmul %20, %21, %cst_10 {dimension_numbers = #tpu.dot_dimension_numbers<[2], [2], [1], [1], [0, 0, 0, 1, 1, 1], [0], [0]>} : vector<1x64x8xf32>, vector<1x16x8xf32>, vector<1x64x16xf32> -> vector<1x64x16xf32>
    "tpu.trace_stop"() : () -> ()
    %c0_11 = arith.constant 0 : index
    %c0_12 = arith.constant 0 : index
    %c0_13 = arith.constant 0 : index
    %24 = vector.load %arg3[%c0_11, %c0_12, %c0_13] : memref<2x64x16xf32, #tpu.memory_space<vmem>>, vector<1x64x16xf32>
    %25 = vector.shape_cast %24 : vector<1x64x16xf32> to vector<64x16xf32>
    %26 = vector.shape_cast %25 : vector<64x16xf32> to vector<1x64x16xf32>
    %27 = arith.addf %23, %26 : vector<1x64x16xf32>
    %cst_14 = arith.constant dense<0xFF800000> : vector<1x64xf32>
    %28 = vector.multi_reduction <maximumf>, %27, %cst_14 [2] : vector<1x64x16xf32> to vector<1x64xf32>
    %29 = vector.shape_cast %28 : vector<1x64xf32> to vector<1x64x1xf32>
    %30 = vector.broadcast %29 : vector<1x64x1xf32> to vector<1x64x16xf32>
    %31 = arith.subf %27, %30 : vector<1x64x16xf32>
    %32 = math.exp %31 : vector<1x64x16xf32>
    %cst_15 = arith.constant dense<0.000000e+00> : vector<1x64xf32>
    %33 = vector.multi_reduction <add>, %32, %cst_15 [2] : vector<1x64x16xf32> to vector<1x64xf32>
    %34 = vector.shape_cast %33 : vector<1x64xf32> to vector<1x64x1xf32>
    %35 = tpu.reciprocal %34 {approx = true} : vector<1x64x1xf32> -> vector<1x64x1xf32>
    %36 = arith.mulf %34, %35 : vector<1x64x1xf32>
    %cst_16 = arith.constant 2.000000e+00 : f32
    %37 = vector.broadcast %cst_16 : f32 to vector<1x64x1xf32>
    %38 = arith.subf %37, %36 : vector<1x64x1xf32>
    %39 = arith.mulf %35, %38 : vector<1x64x1xf32>
    %40 = vector.broadcast %39 : vector<1x64x1xf32> to vector<1x64x16xf32>
    %41 = arith.mulf %32, %40 : vector<1x64x16xf32>
    "tpu.trace_start"() <{level = 10 : i32, message = "bqk,bkd->bqd"}> : () -> ()
    %cst_17 = arith.constant dense<0.000000e+00> : vector<1x64x8xf32>
    %42 = tpu.matmul %41, %22, %cst_17 {dimension_numbers = #tpu.dot_dimension_numbers<[2], [1], [1], [2], [0, 0, 0, 1, 1, 2], [0], [0]>} : vector<1x64x16xf32>, vector<1x16x8xf32>, vector<1x64x8xf32> -> vector<1x64x8xf32>
    "tpu.trace_stop"() : () -> ()
    %43 = vector.extract_strided_slice %18 {offsets = [0, 0, 8], sizes = [1, 64, 8], strides = [1, 1, 1]} : vector<1x64x16xf32> to vector<1x64x8xf32>
    %44 = vector.extract_strided_slice %19 {offsets = [0, 0, 8], sizes = [1, 16, 8], strides = [1, 1, 1]} : vector<1x16x32xf32> to vector<1x16x8xf32>
    %45 = vector.extract_strided_slice %19 {offsets = [0, 0, 24], sizes = [1, 16, 8], strides = [1, 1, 1]} : vector<1x16x32xf32> to vector<1x16x8xf32>
    "tpu.trace_start"() <{level = 10 : i32, message = "bqd,bkd->bqk"}> : () -> ()
    %cst_18 = arith.constant dense<0.000000e+00> : vector<1x64x16xf32>
    %46 = tpu.matmul %43, %44, %cst_18 {dimension_numbers = #tpu.dot_dimension_numbers<[2], [2], [1], [1], [0, 0, 0, 1, 1, 1], [0], [0]>} : vector<1x64x8xf32>, vector<1x16x8xf32>, vector<1x64x16xf32> -> vector<1x64x16xf32>
    "tpu.trace_stop"() : () -> ()
    %c1 = arith.constant 1 : index
    %c0_19 = arith.constant 0 : index
    %c0_20 = arith.constant 0 : index
    %47 = vector.load %arg3[%c1, %c0_19, %c0_20] : memref<2x64x16xf32, #tpu.memory_space<vmem>>, vector<1x64x16xf32>
    %48 = vector.shape_cast %47 : vector<1x64x16xf32> to vector<64x16xf32>
    %49 = vector.shape_cast %48 : vector<64x16xf32> to vector<1x64x16xf32>
    %50 = arith.addf %46, %49 : vector<1x64x16xf32>
    %cst_21 = arith.constant dense<0xFF800000> : vector<1x64xf32>
    %51 = vector.multi_reduction <maximumf>, %50, %cst_21 [2] : vector<1x64x16xf32> to vector<1x64xf32>
    %52 = vector.shape_cast %51 : vector<1x64xf32> to vector<1x64x1xf32>
    %53 = vector.broadcast %52 : vector<1x64x1xf32> to vector<1x64x16xf32>
    %54 = arith.subf %50, %53 : vector<1x64x16xf32>
    %55 = math.exp %54 : vector<1x64x16xf32>
    %cst_22 = arith.constant dense<0.000000e+00> : vector<1x64xf32>
    %56 = vector.multi_reduction <add>, %55, %cst_22 [2] : vector<1x64x16xf32> to vector<1x64xf32>
    %57 = vector.shape_cast %56 : vector<1x64xf32> to vector<1x64x1xf32>
    %58 = tpu.reciprocal %57 {approx = true} : vector<1x64x1xf32> -> vector<1x64x1xf32>
    %59 = arith.mulf %57, %58 : vector<1x64x1xf32>
    %cst_23 = arith.constant 2.000000e+00 : f32
    %60 = vector.broadcast %cst_23 : f32 to vector<1x64x1xf32>
    %61 = arith.subf %60, %59 : vector<1x64x1xf32>
    %62 = arith.mulf %58, %61 : vector<1x64x1xf32>
    %63 = vector.broadcast %62 : vector<1x64x1xf32> to vector<1x64x16xf32>
    %64 = arith.mulf %55, %63 : vector<1x64x16xf32>
    "tpu.trace_start"() <{level = 10 : i32, message = "bqk,bkd->bqd"}> : () -> ()
    %cst_24 = arith.constant dense<0.000000e+00> : vector<1x64x8xf32>
    %65 = tpu.matmul %64, %45, %cst_24 {dimension_numbers = #tpu.dot_dimension_numbers<[2], [1], [1], [2], [0, 0, 0, 1, 1, 2], [0], [0]>} : vector<1x64x16xf32>, vector<1x16x8xf32>, vector<1x64x8xf32> -> vector<1x64x8xf32>
    "tpu.trace_stop"() : () -> ()
    %66 = tpu.concatenate %41, %64 in 2 : vector<1x64x16xf32>, vector<1x64x16xf32> -> vector<1x64x32xf32>
    %c0_25 = arith.constant 0 : index
    %c0_26 = arith.constant 0 : index
    %c0_27 = arith.constant 0 : index
    %67 = vector.load %arg7[%c0_25, %c0_26, %c0_27] : memref<1x64x32xf32, #tpu.memory_space<vmem>>, vector<1x64x32xf32>
    tpu.vector_store %arg7[%c0_25, %c0_26, %c0_27], %66 {strides = array<i32>} : memref<1x64x32xf32, #tpu.memory_space<vmem>>, vector<1x64x32xf32>,
    %68 = tpu.concatenate %42, %65 in 2 : vector<1x64x8xf32>, vector<1x64x8xf32> -> vector<1x64x16xf32>
    %69 = vector.shape_cast %68 : vector<1x64x16xf32> to vector<1x8x8x16xf32>
    %cst_28 = arith.constant 0.000000e+00 : f32
    %70 = vector.broadcast %cst_28 : f32 to vector<1x8x1x16xf32>
    %71 = tpu.concatenate %70, %69, %70 in 2 : vector<1x8x1x16xf32>, vector<1x8x8x16xf32>, vector<1x8x1x16xf32> -> vector<1x8x10x16xf32>
    %cst_29 = arith.constant 0.000000e+00 : f32
    %72 = vector.broadcast %cst_29 : f32 to vector<1x1x10x16xf32>
    %73 = tpu.concatenate %72, %71, %72 in 1 : vector<1x1x10x16xf32>, vector<1x8x10x16xf32>, vector<1x1x10x16xf32> -> vector<1x10x10x16xf32>
    %74 = vector.extract_strided_slice %73 {offsets = [0, 0, 0, 0], sizes = [1, 8, 8, 16], strides = [1, 1, 1, 1]} : vector<1x10x10x16xf32> to vector<1x8x8x16xf32>
    %75 = vector.extract_strided_slice %73 {offsets = [0, 0, 1, 0], sizes = [1, 8, 8, 16], strides = [1, 1, 1, 1]} : vector<1x10x10x16xf32> to vector<1x8x8x16xf32>
    %76 = vector.extract_strided_slice %73 {offsets = [0, 0, 2, 0], sizes = [1, 8, 8, 16], strides = [1, 1, 1, 1]} : vector<1x10x10x16xf32> to vector<1x8x8x16xf32>
    %77 = vector.extract_strided_slice %73 {offsets = [0, 1, 0, 0], sizes = [1, 8, 8, 16], strides = [1, 1, 1, 1]} : vector<1x10x10x16xf32> to vector<1x8x8x16xf32>
    %78 = vector.extract_strided_slice %73 {offsets = [0, 1, 1, 0], sizes = [1, 8, 8, 16], strides = [1, 1, 1, 1]} : vector<1x10x10x16xf32> to vector<1x8x8x16xf32>
    %79 = vector.extract_strided_slice %73 {offsets = [0, 1, 2, 0], sizes = [1, 8, 8, 16], strides = [1, 1, 1, 1]} : vector<1x10x10x16xf32> to vector<1x8x8x16xf32>
    %80 = vector.extract_strided_slice %73 {offsets = [0, 2, 0, 0], sizes = [1, 8, 8, 16], strides = [1, 1, 1, 1]} : vector<1x10x10x16xf32> to vector<1x8x8x16xf32>
    %81 = vector.extract_strided_slice %73 {offsets = [0, 2, 1, 0], sizes = [1, 8, 8, 16], strides = [1, 1, 1, 1]} : vector<1x10x10x16xf32> to vector<1x8x8x16xf32>
    %82 = vector.extract_strided_slice %73 {offsets = [0, 2, 2, 0], sizes = [1, 8, 8, 16], strides = [1, 1, 1, 1]} : vector<1x10x10x16xf32> to vector<1x8x8x16xf32>
    %83 = tpu.concatenate %74, %75, %76, %77, %78, %79, %80, %81, %82 in 3 : vector<1x8x8x16xf32>, vector<1x8x8x16xf32>, vector<1x8x8x16xf32>, vector<1x8x8x16xf32>, vector<1x8x8x16xf32>, vector<1x8x8x16xf32>, vector<1x8x8x16xf32>, vector<1x8x8x16xf32>, vector<1x8x8x16xf32> -> vector<1x8x8x144xf32>
    %84 = vector.shape_cast %83 : vector<1x8x8x144xf32> to vector<64x144xf32>
    %c0_30 = arith.constant 0 : index
    %c0_31 = arith.constant 0 : index
    %85 = vector.load %arg5[%c0_30, %c0_31] : memref<144x4xf32, #tpu.memory_space<vmem>>, vector<144x4xf32>
    %cst_32 = arith.constant dense<0.000000e+00> : vector<64x4xf32>
    %86 = tpu.matmul %84, %85, %cst_32 {dimension_numbers = #tpu.dot_dimension_numbers<[1], [0], [0], [1], [0, 0, 1, 1], [], []>} : vector<64x144xf32>, vector<144x4xf32>, vector<64x4xf32> -> vector<64x4xf32>
    %87 = vector.shape_cast %86 : vector<64x4xf32> to vector<1x64x4xf32>
    %c0_33 = arith.constant 0 : index
    %c0_34 = arith.constant 0 : index
    %c0_35 = arith.constant 0 : index
    %88 = vector.load %arg6[%c0_33, %c0_34, %c0_35] : memref<1x64x4xf32, #tpu.memory_space<vmem>>, vector<1x64x4xf32>
    tpu.vector_store %arg6[%c0_33, %c0_34, %c0_35], %87 {strides = array<i32>} : memref<1x64x4xf32, #tpu.memory_space<vmem>>, vector<1x64x4xf32>,
    return
  }
  func.func @transform_0(%arg0: i32) -> (i32, i32, i32, i32) {
    %c0_i32 = arith.constant 0 : i32
    %c0_i32_0 = arith.constant 0 : i32
    %c0_i32_1 = arith.constant 0 : i32
    %c0_i32_2 = arith.constant 0 : i32
    return %arg0, %c0_i32, %c0_i32_0, %c0_i32_1 : i32, i32, i32, i32
  }
  func.func @transform_1(%arg0: i32) -> (i32, i32, i32) {
    %c0_i32 = arith.constant 0 : i32
    %c0_i32_0 = arith.constant 0 : i32
    %c0_i32_1 = arith.constant 0 : i32
    return %arg0, %c0_i32, %c0_i32_0 : i32, i32, i32
  }
  func.func @transform_2(%arg0: i32) -> (i32, i32, i32) {
    %c0_i32 = arith.constant 0 : i32
    %c0_i32_0 = arith.constant 0 : i32
    %c0_i32_1 = arith.constant 0 : i32
    %c0_i32_2 = arith.constant 0 : i32
    return %c0_i32, %c0_i32_0, %c0_i32_1 : i32, i32, i32
  }
  func.func @transform_3(%arg0: i32) -> (i32, i32) {
    %c0_i32 = arith.constant 0 : i32
    %c0_i32_0 = arith.constant 0 : i32
    %c0_i32_1 = arith.constant 0 : i32
    return %c0_i32, %c0_i32_0 : i32, i32
  }
  func.func @transform_4(%arg0: i32) -> (i32, i32) {
    %c0_i32 = arith.constant 0 : i32
    %c0_i32_0 = arith.constant 0 : i32
    %c0_i32_1 = arith.constant 0 : i32
    return %c0_i32, %c0_i32_0 : i32, i32
  }
  func.func @transform_5(%arg0: i32) -> (i32, i32, i32) {
    %c0_i32 = arith.constant 0 : i32
    %c0_i32_0 = arith.constant 0 : i32
    %c0_i32_1 = arith.constant 0 : i32
    return %arg0, %c0_i32, %c0_i32_0 : i32, i32, i32
  }
  func.func @transform_6(%arg0: i32) -> (i32, i32, i32) {
    %c0_i32 = arith.constant 0 : i32
    %c0_i32_0 = arith.constant 0 : i32
    %c0_i32_1 = arith.constant 0 : i32
    return %arg0, %c0_i32, %c0_i32_0 : i32, i32, i32
  }
}

</mosaic_0001>

<bundles_post_ra>
// kernel: linear_attention_decoder.2
= control target key start
LH: loop header
LB: loop body
LE: loop exit
PB: predicated region body
PF: predicated region fallthrough
CT: control target
= control target key end

     0   :  { %s978_s9 = smov 0   ;;  %s1331_s0 = inlined_call_operand.vmem [shape: f32[2,8,8,4], index: 0, kind: input, shape index: {}]   ;;  %s1332_s1 = inlined_call_operand.vmem [shape: f32[36,32], index: 1, kind: input, shape index: {}]   ;;  %s1333_s2 = inlined_call_operand.vmem [shape: f32[2,4,4,32], index: 2, kind: output, shape index: {}]  }
   0x1 LB: > { %s858_s10 = sadd.s32 4294967295, %s952_s9   ;;  %p862_p0 = scmp.ge.s32.totalorder %s952_s9, 1  ;;  %s952_s9 = sphi %s978_s9, %s12_s9  }
   0x2   : > { %p112_p1 = scmp.lt.s32.totalorder %s952_s9, 3 }
   0x4   : > { %p113_p2 = pnand %p862_p0, %p112_p1 }
   0x5   : > { %v954_v0 = vmov (!%p113_p2), 0.0   ;;  %p134_p3 = scmp.lt.s32.totalorder (!%p113_p2), %s858_s10, 1  ;;  %s955_s11 = smov (!%p113_p2), 8   ;;  %vm176_vm0 = vcmask (!%p113_p2), 1040384   ;;  %vm208_vm1 = vcmask (!%p113_p2), 1046528   ;;  %vm256_vm2 = vcmask (!%p113_p2), 1045504  }
   0x6   : > { %116 = sbr.rel (%p113_p2) target bundleno = 488 (0x1e8), region = 28  ;;  %v987_v1 = vrot.slane (!%p113_p2), %v954_v0, 2  ;;  %v990_v2 = vrot.slane (!%p113_p2), %v954_v0, 1  ;;  %s956_s12 = smov (!%p113_p2), 4   ;;  %vm558_vm3 = vcmask (!%p113_p2), 1043456   ;;  %vm456_vm4 = vcmask (!%p113_p2), 31744  }
   0x7   : > { %s957_s17 = smov (!%p113_p2), 12   ;;  %s958_s18 = smov (!%p113_p2), 16   ;;  %vm465_vm5 = vcmask (!%p113_p2), 64512   ;;  %vm474_vm6 = vcmask (!%p113_p2), 97280   ;;  %vm483_vm7 = vcmask (!%p113_p2), 130048   ;;  %vm492_vm8 = vcmask (!%p113_p2), 162816  }
   0x8   : > { %280 = vrot.lane.b32.xlu1 (!%p113_p2), %v987_v1, %s955_s11  ;;  %232 = vrot.lane.b32.xlu0 (!%p113_p2), %v990_v2, %s956_s12  ;;  %s959_s19 = smov (!%p113_p2), 20   ;;  %s960_s20 = smov (!%p113_p2), 24   ;;  %vm501_vm9 = vcmask (!%p113_p2), 195584   ;;  %vm510_vm10 = vcmask (!%p113_p2), 228352   ;;  %vm519_vm11 = vcmask (!%p113_p2), 261120   ;;  %vm533_vm12 = vcmask (!%p113_p2), 293888  }
   0x9   : > { %s961_s21 = smov (!%p113_p2), 28   ;;  %s962_s4 = smov (!%p113_p2), 32   ;;  %vm788_vm13 = vcmask (!%p113_p2), 1041408   ;;  %vm793_vm14 = vcmask (!%p113_p2), 1042432   ;;  %vm798_vm15 = vcmask (!%p113_p2), 257024  }
   0xd   : > { %s1335_s10 = smov (!%p134_p3, %s858_s10), 1 }
   0xe   : > { %s878_s13 = sshll.u32 %s1335_s10, 6  ;;  %s879_s5 = sshll.u32 %s1335_s10, 4 }
   0xf   : > { %s1002_s16 = scalar_lea.vmem %s1331_s0, %s878_s13  ;;  %s1306_s8 = scalar_lea.vmem %s1333_s2, %s879_s5 }
  0x10   : > { %v144_v3 = vld [vmem:[%s1002_s16] sm:$0xff]  ;;  %v147_v4 = vld [vmem:[%s1002_s16 + $0x18] sm:$0xff]  ;;  %v145_v25 = vld [vmem:[%s1002_s16 + $0x8] sm:$0xff] }
  0x11   : > { %v148_v5 = vld [vmem:[%s1002_s16 + $0x20] sm:$0xff]  ;;  %v160_v6 = vrot.slane %v144_v3, 7  ;;  %v163_v7 = vrot.slane %v147_v4, 7  ;;  %v161_v30 = vrot.slane %v145_v25, 7  ;;  %v151_v31 = vld [vmem:[%s1002_s16 + $0x38] sm:$0xff]  ;;  %v149_v36 = vld [vmem:[%s1002_s16 + $0x28] sm:$0xff] }
  0x12   : > { %v164_v8 = vrot.slane %v148_v5, 7  ;;  %v167_v37 = vrot.slane %v151_v31, 7  ;;  %v146_v38 = vld [vmem:[%s1002_s16 + $0x10] sm:$0xff]  ;;  %v165_v40 = vrot.slane %v149_v36, 7  ;;  %v528_v25 = vld [vmem:[%s1332_s1] sm:$0xff]  ;;  %v531_v31 = vld [vmem:[%s1332_s1 + $0x18] sm:$0xff] }
  0x13   : > { %v1008_v9 = vsel %vm176_vm0, 0.0, %v160_v6  ;;  %v185_v10 = vsel %vm176_vm0, %v160_v6, 0.0  ;;  %v1012_v11 = vsel %vm176_vm0, 0.0, %v163_v7  ;;  %v188_v12 = vsel %vm176_vm0, %v163_v7, 0.0  ;;  %v150_v5 = vld [vmem:[%s1002_s16 + $0x30] sm:$0xff] }
  0x14   : > { %305 = vrot.lane.b32.xlu1 %v1008_v9, %s957_s17  ;;  %v211_v13 = vrot.slane %v1008_v9, 1  ;;  %v212_v14 = vrot.slane %v185_v10, 1  ;;  %v220_v15 = vrot.slane %v1012_v11, 1  ;;  %v221_v16 = vrot.slane %v188_v12, 1 }
  0x15   : > { %v1020_v17 = vsel %vm176_vm0, 0.0, %v164_v8  ;;  %v189_v18 = vsel %vm176_vm0, %v164_v8, 0.0  ;;  %v259_v19 = vrot.slane %v1008_v9, 2  ;;  %v260_v20 = vrot.slane %v185_v10, 2 }
  0x16   : > { %v213_v21 = vsel %vm208_vm1, %v211_v13, %v212_v14  ;;  %v1026_v22 = vsel %vm208_vm1, %v220_v15, %v221_v16  ;;  %v223_v23 = vrot.slane %v1020_v17, 1  ;;  %v224_v24 = vrot.slane %v189_v18, 1 }
  0x17   : > { %234 = vrot.lane.b32.xlu0 %v213_v21, %s956_s12  ;;  %v268_v27 = vrot.slane %v1012_v11, 2  ;;  %v269_v28 = vrot.slane %v188_v12, 2  ;;  %v261_v29 = vsel %vm256_vm2, %v259_v19, %v260_v20  ;;  %v271_v33 = vrot.slane %v1020_v17, 2 }
  0x18   : > { %240 = vrot.lane.b32.xlu1 %v1026_v22, %s956_s12  ;;  %v1034_v26 = vsel %vm208_vm1, %v223_v23, %v224_v24  ;;  %v272_v34 = vrot.slane %v189_v18, 2  ;;  %v1047_v35 = vsel %vm176_vm0, 0.0, %v161_v30  ;;  %v186_v41 = vsel %vm176_vm0, %v161_v30, 0.0  ;;  %v530_v30 = vld [vmem:[%s1332_s1 + $0x10] sm:$0xff] }
  0x19   : > { %v1043_v32 = vsel %vm256_vm2, %v268_v27, %v269_v28  ;;  %v1060_v42 = vsel %vm176_vm0, 0.0, %v167_v37  ;;  %v192_v43 = vsel %vm176_vm0, %v167_v37, 0.0  ;;  %v162_v44 = vrot.slane %v146_v38, 7  ;;  %v529_v27 = vld [vmem:[%s1332_s1 + $0x8] sm:$0xff] }
  0x1a   : > { %v1056_v39 = vsel %vm256_vm2, %v271_v33, %v272_v34  ;;  %v330_v45 = vrot.slane %v1060_v42, 1  ;;  %v331_v46 = vrot.slane %v192_v43, 1  ;;  %v357_v47 = vrot.slane %v1060_v42, 2  ;;  %v532_v34 = vld [vmem:[%s1332_s1 + $0x20] sm:$0xf] }
  0x1b   : > { %242 = vrot.lane.b32.xlu0 %v1034_v26, %s956_s12  ;;  %v358_v48 = vrot.slane %v192_v43, 2  ;;  %v214_v49 = vrot.slane %v1047_v35, 1  ;;  %v215_v50 = vrot.slane %v186_v41, 1  ;;  %v1073_v52 = vsel %vm176_vm0, 0.0, %v165_v40 }
  0x1c   : > { %282 = vrot.lane.b32.xlu1 %v261_v29, %s955_s11  ;;  %v1070_v51 = vsel %vm208_vm1, %v330_v45, %v331_v46  ;;  %v1079_v54 = vsel %vm176_vm0, 0.0, %v162_v44  ;;  %v187_v55 = vsel %vm176_vm0, %v162_v44, 0.0  ;;  %v262_v60 = vrot.slane %v1047_v35, 2 }
  0x1d   : > { %v1076_v53 = vsel %vm256_vm2, %v357_v47, %v358_v48  ;;  %v216_v56 = vsel %vm208_vm1, %v214_v49, %v215_v50  ;;  %v217_v57 = vrot.slane %v1079_v54, 1  ;;  %v218_v58 = vrot.slane %v187_v55, 1 }
  0x1e   : > { %v263_v61 = vrot.slane %v186_v41, 2  ;;  %v190_v62 = vsel %vm176_vm0, %v165_v40, 0.0  ;;  %v226_v63 = vrot.slane %v1073_v52, 1  ;;  %v166_v7 = vrot.slane %v150_v5, 7 }
  0x1f   : > { %288 = vrot.lane.b32.xlu0 %v1043_v32, %s955_s11  ;;  %v219_v59 = vsel %vm208_vm1, %v217_v57, %v218_v58  ;;  %v227_v3 = vrot.slane %v190_v62, 1  ;;  %v265_v8 = vrot.slane %v1079_v54, 2  ;;  %v266_v10 = vrot.slane %v187_v55, 2 }
  0x20   : > { %307 = vrot.lane.b32.xlu1 %v1047_v35, %s957_s17  ;;  %v264_v4 = vsel %vm256_vm2, %v262_v60, %v263_v61  ;;  %v1106_v12 = vsel %vm176_vm0, 0.0, %v166_v7  ;;  %v191_v13 = vsel %vm176_vm0, %v166_v7, 0.0  ;;  %v274_v19 = vrot.slane %v1073_v52, 2 }
  0x21   : > { %v228_v6 = vsel %vm208_vm1, %v226_v63, %v227_v3  ;;  %v229_v14 = vrot.slane %v1106_v12, 1  ;;  %v230_v15 = vrot.slane %v191_v13, 1  ;;  %v267_v16 = vsel %vm256_vm2, %v265_v8, %v266_v10 }
  0x22   : > { %v275_v20 = vrot.slane %v190_v62, 2  ;;  %v277_v23 = vrot.slane %v1106_v12, 2  ;;  %v278_v24 = vrot.slane %v191_v13, 2  ;;  %v919_v33 = vpack.c.bf16 %v531_v31, %v530_v30 }
  0x23   : > { %290 = vrot.lane.b32.xlu0 %v1056_v39, %s955_s11  ;;  %v231_v18 = vsel %vm208_vm1, %v229_v14, %v230_v15 }
  0x24   : > { %333 = vrot.lane.b32.xlu1 %v213_v21, %s958_s18  ;;  %v276_v21 = vsel %vm256_vm2, %v274_v19, %v275_v20  ;;  %v279_v28 = vsel %vm256_vm2, %v277_v23, %v278_v24 }
  0x27   : > { %313 = vrot.lane.b32.xlu0 %v1020_v17, %s957_s17 }
  0x28   : > { %315 = vrot.lane.b32.xlu1 %v1073_v52, %s957_s17 }
  0x2b   : > { %236 = vrot.lane.b32.xlu0 %v216_v56, %s956_s12 }
  0x2c   : > { %341 = vrot.lane.b32.xlu1 %v1034_v26, %s958_s18 }
  0x2f   : > { %335 = vrot.lane.b32.xlu0 %v216_v56, %s958_s18 }
  0x30   : > { %238 = vrot.lane.b32.xlu1 %v219_v59, %s956_s12 }
  0x33   : > { %360 = vrot.lane.b32.xlu0 %v261_v29, %s959_s19  ;;  %v915_v29 = vpack.c.bf16 %v529_v27, %v528_v25 }
  0x34   : > { %284 = vrot.lane.b32.xlu1 %v264_v4, %s955_s11 }
  0x35   : > { %916 = vmatprep.subr.bf16.mxu0 %v915_v29  ;;  %923 = vmatprep.subr.bf16.mxu1 %v915_v29 }
  0x36   : > { %918 = vmatpush3.bf16.msra.mxu0 %v915_v29  ;;  %926 = vmatpush3.bf16.msra.mxu1 %v915_v29 }
  0x37   : > { %244 = vrot.lane.b32.xlu0 %v228_v6, %s956_s12  ;;  %920 = vmatprep.subr.bf16.mxu0 %v919_v33 }
  0x38   : > { %362 = vrot.lane.b32.xlu1 %v264_v4, %s959_s19  ;;  %924 = vmatprep.subr.bf16.mxu1 %v919_v33 }
  0x3a   : > { %922 = vmatpush3.bf16.msra.mxu0 %v919_v33  ;;  %927 = vmatpush3.bf16.msra.mxu1 %v919_v33 }
  0x3b   : > { %343 = vrot.lane.b32.xlu0 %v228_v6, %s958_s18  ;;  %901 = vmatprep.subr.msk.mxu0 %vm558_vm3, %v532_v34 }
  0x3c   : > { %384 = vrot.lane.b32.xlu1 %v1047_v35, %s960_s20  ;;  %925 = vmatprep.subr.msk.mxu1 %vm558_vm3, %v532_v34 }
  0x3e   : > { %902 = vmatpush3.msk.msra.mxu0 %vm558_vm3, %v532_v34  ;;  %928 = vmatpush3.msk.msra.mxu1 %vm558_vm3, %v532_v34 }
  0x3f   : > { %368 = vrot.lane.b32.xlu0 %v1056_v39, %s959_s19 }
  0x40   : > { %286 = vrot.lane.b32.xlu1 %v267_v16, %s955_s11 }
  0x43   : > { %246 = vrot.lane.b32.xlu0 %v231_v18, %s956_s12 }
  0x44   : > { %309 = vrot.lane.b32.xlu1 %v1079_v54, %s957_s17 }
  0x47   : > { %292 = vrot.lane.b32.xlu0 %v276_v21, %s955_s11 }
  0x48   : > { %386 = vrot.lane.b32.xlu1 %v1079_v54, %s960_s20 }
  0x4b   : > { %370 = vrot.lane.b32.xlu0 %v276_v21, %s959_s19 }
  0x4c   : > { %408 = vrot.lane.b32.xlu1 %v216_v56, %s961_s21 }
  0x4f   : > { %392 = vrot.lane.b32.xlu0 %v1073_v52, %s960_s20 }
  0x50   : > { %311 = vrot.lane.b32.xlu1 %v1012_v11, %s957_s17 }
  0x53   : > { %294 = vrot.lane.b32.xlu0 %v279_v28, %s955_s11 }
  0x54   : > { %337 = vrot.lane.b32.xlu1 %v219_v59, %s958_s18 }
  0x57   : > { %317 = vrot.lane.b32.xlu0 %v1106_v12, %s957_s17 }
  0x58   : > { %410 = vrot.lane.b32.xlu1 %v219_v59, %s961_s21 }
  0x5b   : > { %394 = vrot.lane.b32.xlu0 %v1106_v12, %s960_s20 }
  0x5c   : > { %432 = vrot.lane.b32.xlu1 %v264_v4, %s962_s4 }
  0x5f   : > { %416 = vrot.lane.b32.xlu0 %v228_v6, %s961_s21 }
  0x60   : > { %339 = vrot.lane.b32.xlu1 %v1026_v22, %s958_s18 }
  0x63   : > { %319 = vrot.lane.b32.xlu0 %v1060_v42, %s957_s17 }
  0x64   : > { %364 = vrot.lane.b32.xlu1 %v267_v16, %s959_s19 }
  0x67   : > { %345 = vrot.lane.b32.xlu0 %v231_v18, %s958_s18 }
  0x68   : > { %434 = vrot.lane.b32.xlu1 %v267_v16, %s962_s4 }
  0x6b   : > { %418 = vrot.lane.b32.xlu0 %v231_v18, %s961_s21 }
  0x6c   : > { %347 = vrot.lane.b32.xlu1 %v1070_v51, %s958_s18 }
  0x6f   : > { %440 = vrot.lane.b32.xlu0 %v276_v21, %s962_s4 }
  0x70   : > { %372 = vrot.lane.b32.xlu1 %v279_v28, %s959_s19 }
  0x73   : > { %366 = vrot.lane.b32.xlu0 %v1043_v32, %s959_s19 }
  0x74   : > { %442 = vrot.lane.b32.xlu1 %v279_v28, %s962_s4 }
  0x77   : > { %388 = vrot.lane.b32.xlu0 %v1012_v11, %s960_s20 }
  0x78   : > { %390 = vrot.lane.b32.xlu1 %v1020_v17, %s960_s20 }
  0x7a   : > { %v233_v36 = vpop.permute.xlu0 %232  ;;  %v281_v37 = vpop.permute.xlu1 %280 }
  0x7b   : > { %374 = vrot.lane.b32.xlu0 %v1076_v53, %s959_s19  ;;  %v457_v38 = vsel %vm456_vm4, 0.0, %v233_v36 }
  0x7c   : > { %412 = vrot.lane.b32.xlu1 %v1026_v22, %s961_s21  ;;  %v466_v40 = vsel %vm465_vm5, %v457_v38, %v281_v37 }
  0x7f   : > { %396 = vrot.lane.b32.xlu0 %v1060_v42, %s960_s20 }
  0x80   : > { %414 = vrot.lane.b32.xlu1 %v1034_v26, %s961_s21 }
  0x83   : > { %398 = vrot.lane.b32.xlu0 %v954_v0, %s960_s20 }
  0x84   : > { %436 = vrot.lane.b32.xlu1 %v1043_v32, %s962_s4 }
  0x86   : > { %v306_v22 = vpop.permute.xlu1 %305 }
  0x87   : > { %v475_v41 = vsel %vm474_vm6, %v466_v40, %v306_v22  ;;  %420 = vrot.lane.b32.xlu0 %v1070_v51, %s961_s21 }
  0x88   : > { %438 = vrot.lane.b32.xlu1 %v1056_v39, %s962_s4 }
  0x89   : > { %v235_v42 = vpop.permute.xlu0 %234 }
  0x8a   : > { %v241_v26 = vpop.permute.xlu1 %240  ;;  %v458_v32 = vsel %vm456_vm4, %v1008_v9, %v235_v42 }
  0x8b   : > { %422 = vrot.lane.b32.xlu0 %v990_v2, %s961_s21  ;;  %v461_v39 = vsel %vm456_vm4, %v1012_v11, %v241_v26 }
  0x8c   : > { %446 = vrot.lane.b32.xlu1 %v987_v1, %s962_s4 }
  0x8d   : > { %v243_v0 = vpop.permute.xlu0 %242 }
  0x8e   : > { %v283_v43 = vpop.permute.xlu1 %282  ;;  %v462_v1 = vsel %vm456_vm4, %v1020_v17, %v243_v0 }
  0x8f   : > { %v467_v44 = vsel %vm465_vm5, %v458_v32, %v283_v43  ;;  %444 = vrot.lane.b32.xlu0 %v1076_v53, %s962_s4 }
  0x91   : > { %v289_v45 = vpop.permute.xlu0 %288 }
  0x92   : > { %v470_v46 = vsel %vm465_vm5, %v461_v39, %v289_v45  ;;  %v308_v2 = vpop.permute.xlu1 %307 }
  0x93   : > { %v476_v47 = vsel %vm474_vm6, %v467_v44, %v308_v2 }
  0x95   : > { %v291_v48 = vpop.permute.xlu0 %290 }
  0x96   : > { %v471_v9 = vsel %vm465_vm5, %v462_v1, %v291_v48  ;;  %v334_v49 = vpop.permute.xlu1 %333 }
  0x99   : > { %v314_v50 = vpop.permute.xlu0 %313 }
  0x9a   : > { %v479_v51 = vsel %vm474_vm6, %v470_v46, %v314_v50  ;;  %v316_v53 = vpop.permute.xlu1 %315 }
  0x9b   : > { %v1214_v55 = vsel %vm474_vm6, %v471_v9, %v316_v53 }
  0x9d   : > { %v237_v11 = vpop.permute.xlu0 %236 }
  0x9e   : > { %v342_v56 = vpop.permute.xlu1 %341  ;;  %v459_v60 = vsel %vm456_vm4, %v1047_v35, %v237_v11 }
  0x9f   : > { %v488_v44 = vsel %vm483_vm7, %v479_v51, %v342_v56 }
  0xa1   : > { %v336_v57 = vpop.permute.xlu0 %335 }
  0xa2   : > { %v239_v58 = vpop.permute.xlu1 %238  ;;  %v485_v40 = vsel %vm483_vm7, %v476_v47, %v336_v57 }
  0xa3   : > { %v460_v6 = vsel %vm456_vm4, %v1079_v54, %v239_v58 }
  0xa5   : > { %v361_v59 = vpop.permute.xlu0 %360 }
  0xa6   : > { %v285_v17 = vpop.permute.xlu1 %284 }
  0xa7   : > { %v1219_v61 = vsel %vm465_vm5, %v459_v60, %v285_v17 }
  0xa9   : > { %v245_v62 = vpop.permute.xlu0 %244 }
  0xaa   : > { %v363_v63 = vpop.permute.xlu1 %362  ;;  %v463_v35 = vsel %vm456_vm4, %v1073_v52, %v245_v62  ;;  %v484_v52 = vsel %vm483_vm7, %v475_v41, %v334_v49 }
  0xab   : > { %v493_v27 = vsel %vm492_vm8, %v484_v52, %v361_v59  ;;  %v494_v22 = vsel %vm492_vm8, %v485_v40, %v363_v63 }
  0xad   : > { %v344_v3 = vpop.permute.xlu0 %343 }
  0xae   : > { %v385_v4 = vpop.permute.xlu1 %384  ;;  %v489_v9 = vsel %vm483_vm7, %v1214_v55, %v344_v3 }
  0xaf   : > { %v502_v28 = vsel %vm501_vm9, %v493_v27, %v385_v4 }
  0xb1   : > { %v369_v5 = vpop.permute.xlu0 %368 }
  0xb2   : > { %v287_v7 = vpop.permute.xlu1 %286  ;;  %v497_v45 = vsel %vm492_vm8, %v488_v44, %v369_v5 }
  0xb3   : > { %v1224_v8 = vsel %vm465_vm5, %v460_v6, %v287_v7 }
  0xb5   : > { %v1226_v10 = vpop.permute.xlu0 %246 }
  0xb6   : > { %v1228_v13 = vpop.permute.xlu1 %309 }
  0xb7   : > { %v477_v55 = vsel %vm474_vm6, %v1219_v61, %v1228_v13 }
  0xb9   : > { %v293_v14 = vpop.permute.xlu0 %292 }
  0xba   : > { %v1233_v15 = vsel %vm465_vm5, %v463_v35, %v293_v14  ;;  %v387_v16 = vpop.permute.xlu1 %386 }
  0xbb   : > { %v503_v41 = vsel %vm501_vm9, %v494_v22, %v387_v16 }
  0xbd   : > { %v371_v18 = vpop.permute.xlu0 %370 }
  0xbe   : > { %v409_v19 = vpop.permute.xlu1 %408  ;;  %v498_v49 = vsel %vm492_vm8, %v489_v9, %v371_v18 }
  0xbf   : > { %v511_v30 = vsel %vm510_vm10, %v502_v28, %v409_v19  ;;  %v464_v19 = vsel %vm456_vm4, %v1106_v12, %v1226_v10 }
  0xc1   : > { %v393_v20 = vpop.permute.xlu0 %392 }
  0xc2   : > { %v312_v54 = vpop.permute.xlu1 %311  ;;  %v506_v46 = vsel %vm501_vm9, %v497_v45, %v393_v20 }
  0xc3   : > { %v478_v6 = vsel %vm474_vm6, %v1224_v8, %v312_v54 }
  0xc5   : > { %v1235_v21 = vpop.permute.xlu0 %294 }
  0xc6   : > { %v338_v23 = vpop.permute.xlu1 %337  ;;  %v473_v54 = vsel %vm465_vm5, %v464_v19, %v1235_v21 }
  0xc7   : > { %v486_v63 = vsel %vm483_vm7, %v477_v55, %v338_v23 }
  0xc9   : > { %v1237_v24 = vpop.permute.xlu0 %317 }
  0xca   : > { %v411_v25 = vpop.permute.xlu1 %410  ;;  %v481_v52 = vsel %vm474_vm6, %v1233_v15, %v1237_v24 }
  0xcb   : > { %v512_v26 = vsel %vm510_vm10, %v503_v41, %v411_v25 }
  0xcd   : > { %v395_v29 = vpop.permute.xlu0 %394 }
  0xce   : > { %v433_v31 = vpop.permute.xlu1 %432  ;;  %v507_v50 = vsel %vm501_vm9, %v498_v49, %v395_v29 }
  0xcf   : > { %v520_v33 = vsel %vm519_vm11, %v511_v30, %v433_v31 }
  0xd0   : > { %903 = vmatprep.mubr.msk.f32.mxu0 %vm533_vm12, %v520_v33 }
  0xd1   : > { %v417_v34 = vpop.permute.xlu0 %416 }
  0xd2   : > { %v340_v36 = vpop.permute.xlu1 %339  ;;  %v515_v2 = vsel %vm510_vm10, %v506_v46, %v417_v34 }
  0xd3   : > { %v487_v14 = vsel %vm483_vm7, %v478_v6, %v340_v36 }
  0xd5   : > { %v320_v37 = vpop.permute.xlu0 %319 }
  0xd6   : > { %v365_v38 = vpop.permute.xlu1 %364  ;;  %v482_v25 = vsel %vm474_vm6, %v473_v54, %v320_v37 }
  0xd7   : > { %v495_v3 = vsel %vm492_vm8, %v486_v63, %v365_v38 }
  0xd9   : > { %v346_v42 = vpop.permute.xlu0 %345 }
  0xda   : > { %v435_v0 = vpop.permute.xlu1 %434  ;;  %v490_v12 = vsel %vm483_vm7, %v481_v52, %v346_v42 }
  0xdb   : > { %v521_v32 = vsel %vm519_vm11, %v512_v26, %v435_v0 }
  0xdc   : > { %904 = vmatmul.mubr.msk.f32.vlgmr.msra.gmra.mrb[0].mxu0 %vm533_vm12, %v521_v32 }
  0xdd   : > { %v419_v43 = vpop.permute.xlu0 %418 }
  0xde   : > { %v348_v39 = vpop.permute.xlu1 %347  ;;  %v516_v53 = vsel %vm510_vm10, %v507_v50, %v419_v43 }
  0xdf   : > { %v491_v27 = vsel %vm483_vm7, %v482_v25, %v348_v39 }
  0xe1   : > { %v441_v47 = vpop.permute.xlu0 %440 }
  0xe2   : > { %v373_v1 = vpop.permute.xlu1 %372  ;;  %v524_v48 = vsel %vm519_vm11, %v515_v2, %v441_v47 }
  0xe3   : > { %909 = vmatprep.mubr.msk.f32.mxu1 %vm533_vm12, %v524_v48  ;;  %v499_v29 = vsel %vm492_vm8, %v490_v12, %v373_v1 }
  0xe5   : > { %v367_v51 = vpop.permute.xlu0 %366 }
  0xe6   : > { %v443_v11 = vpop.permute.xlu1 %442  ;;  %v496_v61 = vsel %vm492_vm8, %v487_v14, %v367_v51 }
  0xe7   : > { %v525_v56 = vsel %vm519_vm11, %v516_v53, %v443_v11 }
  0xe8   : > { %910 = vmatmul.mubr.msk.f32.vlgmr.msra.gmra.mrb[0].mxu1 %vm533_vm12, %v525_v56 }
  0xe9   : > { %v389_v57 = vpop.permute.xlu0 %388 }
  0xea   : > { %v391_v58 = vpop.permute.xlu1 %390  ;;  %v504_v4 = vsel %vm501_vm9, %v495_v3, %v389_v57 }
  0xeb   : > { %v505_v13 = vsel %vm501_vm9, %v496_v61, %v391_v58 }
  0xed   : > { %v375_v59 = vpop.permute.xlu0 %374 }
  0xee   : > { %v413_v60 = vpop.permute.xlu1 %412  ;;  %v500_v10 = vsel %vm492_vm8, %v491_v27, %v375_v59 }
  0xef   : > { %v513_v7 = vsel %vm510_vm10, %v504_v4, %v413_v60 }
  0xf1   : > { %v397_v17 = vpop.permute.xlu0 %396 }
  0xf2   : > { %v415_v62 = vpop.permute.xlu1 %414  ;;  %v508_v30 = vsel %vm501_vm9, %v499_v29, %v397_v17 }
  0xf3   : > { %v514_v8 = vsel %vm510_vm10, %v505_v13, %v415_v62 }
  0xf5   : > { %v399_v5 = vpop.permute.xlu0 %398 }
  0xf6   : > { %v437_v35 = vpop.permute.xlu1 %436  ;;  %v509_v21 = vsel %vm501_vm9, %v500_v10, %v399_v5 }
  0xf7   : > { %v522_v16 = vsel %vm519_vm11, %v513_v7, %v437_v35 }
  0xf8   : > { %906 = vmatprep.mubr.msk.f32.mxu0 %vm533_vm12, %v522_v16 }
  0xf9   : > { %v421_v18 = vpop.permute.xlu0 %420 }
  0xfa   : > { %v439_v20 = vpop.permute.xlu1 %438  ;;  %v517_v34 = vsel %vm510_vm10, %v508_v30, %v421_v18 }
  0xfb   : > { %v523_v23 = vsel %vm519_vm11, %v514_v8, %v439_v20 }
  0xfc   : > { %907 = vmatmul.mubr.msk.f32.gmra.mrb[2].mxu0 %vm533_vm12, %v523_v23 }
  0xfd   : > { %v423_v28 = vpop.permute.xlu0 %422 }
  0xfe   : > { %v518_v31 = vsel %vm510_vm10, %v509_v21, %v423_v28  ;;  %v447_v33 = vpop.permute.xlu1 %446 }
  0xff   : > { %v527_v24 = vsel %vm519_vm11, %v518_v31, %v447_v33 }
 0x101   : > { %v445_v36 = vpop.permute.xlu0 %444 }
 0x102   : > { %v526_v15 = vsel %vm519_vm11, %v517_v34, %v445_v36 }
 0x103   : > { %912 = vmatprep.mubr.msk.f32.mxu1 %vm533_vm12, %v526_v15 }
 0x104   : > { %913 = vmatmul.mubr.msk.f32.gmra.mrb[2].mxu1 %vm533_vm12, %v527_v24 }
 0x1af   : > { %v905_v37 = vpop.f32.mrb[0].mxu0 }
 0x1b0   : > { %v666_v38 = vmul.f32 0.0, %v905_v37  ;;  %v628_v40 = vpop.f32.mrb[1].mxu0 }
 0x1b2   : > { %v667_v22 = vadd.f32 %v666_v38, %v628_v40 }
 0x1b4   : > { %v676_v41 = vmul.f32 0.0, %v667_v22  ;;  %v700_v42 = vmul.f32 0.33333334, %v667_v22  ;;  %v724_v26 = vmul.f32 0.6666667, %v667_v22 }
 0x1b5   : > { %v696_v32 = vmul.f32 0.6666666, %v667_v22  ;;  %v720_v44 = vmul.f32 0.3333333, %v667_v22 }
 0x1b6   : > { %v684_v0 = vrot.slane %v676_v41, 1  ;;  %v708_v43 = vrot.slane %v700_v42, 1  ;;  %v732_v39 = vrot.slane %v724_v26, 1  ;;  %v744_v46 = vadd.f32 %v676_v41, %v667_v22 }
 0x1b8   : > { %v716_v45 = vadd.f32 %v708_v43, %v696_v32  ;;  %v740_v2 = vadd.f32 %v732_v39, %v720_v44  ;;  %v692_v47 = vadd.f32 %v684_v0, %v667_v22  ;;  %v776_v49 = vrot.slane %v744_v46, 4 }
 0x1ba   : > { %v752_v1 = vrot.slane %v716_v45, 1  ;;  %v764_v48 = vrot.slane %v740_v2, 2 }
 0x1bb   : > { %v911_v9 = vpop.f32.mrb[0].mxu1 }
 0x1bc   : > { %v784_v50 = vsel %vm176_vm0, %v692_v47, %v752_v1  ;;  %v672_v51 = vmul.f32 0.6666667, %v911_v9  ;;  %v648_v53 = vpop.f32.mrb[1].mxu1 }
 0x1bd   : > { %v789_v11 = vsel %vm788_vm13, %v784_v50, %v764_v48  ;;  %v671_v56 = vmul.f32 0.3333333, %v648_v53 }
 0x1be   : > { %v794_v57 = vsel %vm793_vm14, %v789_v11, %v776_v49 }
 0x1bf   : > { %799 = vst.msk [vmem:[%s1306_s8] sm:$0xf] %vm798_vm15, %v794_v57  ;;  %v673_v58 = vadd.f32 %v672_v51, %v671_v56 }
 0x1c1   : > { %v678_v59 = vmul.f32 0.0, %v673_v58  ;;  %v702_v60 = vmul.f32 0.33333334, %v673_v58  ;;  %v726_v17 = vmul.f32 0.6666667, %v673_v58 }
 0x1c2   : > { %v698_v62 = vmul.f32 0.6666666, %v673_v58  ;;  %v722_v3 = vmul.f32 0.3333333, %v673_v58 }
 0x1c3   : > { %v686_v55 = vrot.slane %v678_v59, 1  ;;  %v710_v63 = vrot.slane %v702_v60, 1  ;;  %v734_v4 = vrot.slane %v726_v17, 1  ;;  %v746_v6 = vadd.f32 %v678_v59, %v673_v58 }
 0x1c5   : > { %v718_v5 = vadd.f32 %v710_v63, %v698_v62  ;;  %v742_v7 = vadd.f32 %v734_v4, %v722_v3  ;;  %v694_v35 = vadd.f32 %v686_v55, %v673_v58  ;;  %v778_v61 = vrot.slane %v746_v6, 4 }
 0x1c7   : > { %v754_v14 = vrot.slane %v718_v5, 1  ;;  %v766_v16 = vrot.slane %v742_v7, 2 }
 0x1c9   : > { %v786_v13 = vsel %vm176_vm0, %v694_v35, %v754_v14 }
 0x1ca   : > { %v791_v18 = vsel %vm788_vm13, %v786_v13, %v766_v16 }
 0x1cb   : > { %v796_v19 = vsel %vm793_vm14, %v791_v18, %v778_v61 }
 0x1cc   : > { %801 = vst.msk [vmem:[%s1306_s8 + $0x8] sm:$0xf] %vm798_vm15, %v796_v19 }
 0x1cf   : > { %v908_v8 = vpop.f32.mrb[2].mxu0 }
 0x1d0   : > { %v669_v20 = vmul.f32 0.33333334, %v908_v8  ;;  %v638_v54 = vpop.f32.mrb[3].mxu0 }
 0x1d1   : > { %v668_v23 = vmul.f32 0.6666666, %v638_v54 }
 0x1d3   : > { %v670_v25 = vadd.f32 %v669_v20, %v668_v23 }
 0x1d5   : > { %v677_v52 = vmul.f32 0.0, %v670_v25  ;;  %v701_v27 = vmul.f32 0.33333334, %v670_v25  ;;  %v725_v28 = vmul.f32 0.6666667, %v670_v25 }
 0x1d6   : > { %v697_v10 = vmul.f32 0.6666666, %v670_v25  ;;  %v721_v30 = vmul.f32 0.3333333, %v670_v25 }
 0x1d7   : > { %v685_v12 = vrot.slane %v677_v52, 1  ;;  %v709_v29 = vrot.slane %v701_v27, 1  ;;  %v914_v21 = vpop.f32.mrb[2].mxu1  ;;  %v733_v31 = vrot.slane %v725_v28, 1  ;;  %v745_v15 = vadd.f32 %v677_v52, %v670_v25 }
 0x1d8   : > { %v674_v33 = vmul.f32 0.0, %v914_v21  ;;  %v658_v34 = vpop.f32.mrb[3].mxu1 }
 0x1d9   : > { %v717_v36 = vadd.f32 %v709_v29, %v697_v10  ;;  %v741_v24 = vadd.f32 %v733_v31, %v721_v30  ;;  %v693_v38 = vadd.f32 %v685_v12, %v670_v25  ;;  %v777_v26 = vrot.slane %v745_v15, 4 }
 0x1da   : > { %v675_v37 = vadd.f32 %v914_v21, %v674_v33 }
 0x1db   : > { %v753_v40 = vrot.slane %v717_v36, 1  ;;  %v765_v22 = vrot.slane %v741_v24, 2 }
 0x1dc   : > { %v679_v41 = vmul.f32 0.0, %v675_v37  ;;  %v703_v42 = vmul.f32 0.33333334, %v675_v37  ;;  %v727_v32 = vmul.f32 0.6666667, %v675_v37 }
 0x1dd   : > { %v785_v0 = vsel %vm176_vm0, %v693_v38, %v753_v40  ;;  %v699_v39 = vmul.f32 0.6666666, %v675_v37  ;;  %v723_v2 = vmul.f32 0.3333333, %v675_v37 }
 0x1de   : > { %v790_v43 = vsel %vm788_vm13, %v785_v0, %v765_v22  ;;  %v687_v44 = vrot.slane %v679_v41, 1  ;;  %v711_v45 = vrot.slane %v703_v42, 1  ;;  %v735_v47 = vrot.slane %v727_v32, 1 }
 0x1df   : > { %v795_v46 = vsel %vm793_vm14, %v790_v43, %v777_v26  ;;  %v747_v48 = vadd.f32 %v679_v41, %v675_v37 }
 0x1e0   : > { %800 = vst.msk [vmem:[%s1306_s8 + $0x4] sm:$0xf] %vm798_vm15, %v795_v46  ;;  %v719_v1 = vadd.f32 %v711_v45, %v699_v39  ;;  %v743_v9 = vadd.f32 %v735_v47, %v723_v2  ;;  %v695_v49 = vadd.f32 %v687_v44, %v675_v37 }
 0x1e1   : > { %v779_v53 = vrot.slane %v747_v48, 4 }
 0x1e2   : > { %v755_v50 = vrot.slane %v719_v1, 1  ;;  %v767_v51 = vrot.slane %v743_v9, 2 }
 0x1e4   : > { %v787_v11 = vsel %vm176_vm0, %v695_v49, %v755_v50 }
 0x1e5   : > { %v792_v56 = vsel %vm788_vm13, %v787_v11, %v767_v51 }
 0x1e6   : > { %v797_v57 = vsel %vm793_vm14, %v792_v56, %v779_v53 }
 0x1e7   : > { %802 = vst.msk [vmem:[%s1306_s8 + $0xc] sm:$0xf] %vm798_vm15, %v797_v57 }
 0x1e8 PF: > { %s12_s9 = sadd.s32 1, %s952_s9  }
 0x1e9   : > { %p9_p4 = scmp.ge.s32.totalorder %s12_s9, 4  }
 0x1eb   :  { %11 = sbr.rel (!%p9_p4) target bundleno = 1 (0x1), region = 58 }

// kernel: linear_attention_decoder.3
= control target key start
LH: loop header
LB: loop body
LE: loop exit
PB: predicated region body
PF: predicated region fallthrough
CT: control target
= control target key end

     0   :  { %s2816_s21 = smov 0   ;;  %s3804_s0 = inlined_call_operand.vmem [shape: f32[2,8,8,4], index: 0, kind: input, shape index: {}]   ;;  %s3805_s1 = inlined_call_operand.vmem [shape: f32[2,16,32], index: 1, kind: input, shape index: {}]   ;;  %s3806_s2 = inlined_call_operand.vmem [shape: f32[2,64,16], index: 2, kind: input, shape index: {}]   ;;  %s3807_s3 = inlined_call_operand.vmem [shape: f32[36,16], index: 3, kind: input, shape index: {}]   ;;  %s3808_s4 = inlined_call_operand.vmem [shape: f32[144,4], index: 4, kind: input, shape index: {}]   ;;  %s3809_s5 = inlined_call_operand.vmem [shape: f32[2,64,4], index: 5, kind: output, shape index: {0}]   ;;  %s3810_s6 = inlined_call_operand.vmem [shape: f32[2,64,32], index: 6, kind: output, shape index: {1}]  }
   0x1 LB: > { %s2258_s22 = sadd.s32 4294967295, %s2762_s21   ;;  %p2262_p0 = scmp.ge.s32.totalorder %s2762_s21, 1  ;;  %s2762_s21 = sphi %s2816_s21, %s17_s21  }
   0x2   : > { %p225_p1 = scmp.lt.s32.totalorder %s2762_s21, 3 }
   0x4   : > { %p226_p2 = pnand %p2262_p0, %p225_p1 }
   0x5   : > { %v2764_v0 = vmov (!%p226_p2), 0.0   ;;  %p265_p3 = scmp.lt.s32.totalorder (!%p226_p2), %s2258_s22, 1  ;;  %s2765_s23 = smov (!%p226_p2), 8   ;;  %vm317_vm0 = vcmask (!%p226_p2), 1040384   ;;  %vm397_vm1 = vcmask (!%p226_p2), 1045504   ;;  %vm349_vm2 = vcmask (!%p226_p2), 1046528  }
   0x6   : > { %229 = sbr.rel (%p226_p2) target bundleno = 1845 (0x735), region = 40  ;;  %v2825_v1 = vrot.slane (!%p226_p2), %v2764_v0, 2  ;;  %v2828_v2 = vrot.slane (!%p226_p2), %v2764_v0, 1  ;;  %s2766_s24 = smov (!%p226_p2), 4   ;;  %v669_v23 = vld [vmem:[%s3807_s3] sm:$0xff] (!%p226_p2)  ;;  %v670_v24 = vld [vmem:[%s3807_s3 + $0x8] sm:$0xff] (!%p226_p2) }
   0x7   : > { %s2767_s29 = smov (!%p226_p2), 12   ;;  %s2768_s30 = smov (!%p226_p2), 16   ;;  %v2477_v27 = vpack.c.bf16 (!%p226_p2), %v670_v24, %v669_v23  ;;  %v671_v29 = vld [vmem:[%s3807_s3 + $0x10] sm:$0xff] (!%p226_p2)  ;;  %v672_v30 = vld [vmem:[%s3807_s3 + $0x18] sm:$0xff] (!%p226_p2)  ;;  %v673_v35 = vld [vmem:[%s3807_s3 + $0x20] sm:$0xf] (!%p226_p2) }
   0x8   : > { %421 = vrot.lane.b32.xlu1 (!%p226_p2), %v2825_v1, %s2765_s23  ;;  %373 = vrot.lane.b32.xlu0 (!%p226_p2), %v2828_v2, %s2766_s24  ;;  %s2769_s11 = smov (!%p226_p2), 20   ;;  %s2770_s16 = smov (!%p226_p2), 24   ;;  %v2481_v32 = vpack.c.bf16 (!%p226_p2), %v672_v30, %v671_v29  ;;  %vm699_vm3 = vcmask (!%p226_p2), 1043456   ;;  %vm606_vm4 = vcmask (!%p226_p2), 64512   ;;  %vm597_vm6 = vcmask (!%p226_p2), 31744  }
   0x9   : > { %2478 = vmatprep.subr.bf16.mxu1 (!%p226_p2), %v2477_v27  ;;  %s2771_s19 = smov (!%p226_p2), 28   ;;  %s2772_s20 = smov (!%p226_p2), 32   ;;  %vm3003_vm5 = vmpackc.low (!%p226_p2), %vm606_vm4, %vm606_vm4  ;;  %vm615_vm7 = vcmask (!%p226_p2), 97280   ;;  %vm624_vm8 = vcmask (!%p226_p2), 130048   ;;  %vm633_vm9 = vcmask (!%p226_p2), 162816   ;;  %vm642_vm10 = vcmask (!%p226_p2), 195584  }
   0xa   : > { %2480 = vmatpush3.bf16.msra.mxu1 (!%p226_p2), %v2477_v27  ;;  %vm651_vm11 = vcmask (!%p226_p2), 228352   ;;  %vm660_vm12 = vcmask (!%p226_p2), 261120   ;;  %vm674_vm13 = vcmask (!%p226_p2), 293888   ;;  %s2777_s7 = smov (!%p226_p2), 48   ;;  %s2778_s8 = smov (!%p226_p2), 80   ;;  %vm1966_vm14 = vcmask (!%p226_p2), 392192  }
   0xb   : > { %2482 = vmatprep.subr.bf16.mxu1 (!%p226_p2), %v2481_v32  ;;  %s2779_s9 = smov (!%p226_p2), 64   ;;  %vm1975_vm15 = vcmask (!%p226_p2), 523264  }
   0xd   : > { %s3814_s22 = smov (!%p265_p3, %s2258_s22), 1 }
   0xe   : > { %s2837_s25 = sshll.u32 %s3814_s22, 6  ;;  %2484 = vmatpush3.bf16.msra.mxu1 %v2481_v32 }
   0xf   : > { %s2843_s28 = scalar_lea.vmem %s3804_s0, %s2837_s25  ;;  %2399 = vmatprep.subr.msk.mxu1 %vm699_vm3, %v673_v35 }
  0x10   : > { %v286_v3 = vld [vmem:[%s2843_s28 + $0x8] sm:$0xff]  ;;  %v285_v4 = vld [vmem:[%s2843_s28] sm:$0xff]  ;;  %v287_v22 = vld [vmem:[%s2843_s28 + $0x10] sm:$0xff] }
  0x11   : > { %v302_v5 = vrot.slane %v286_v3, 7  ;;  %v301_v6 = vrot.slane %v285_v4, 7  ;;  %v303_v26 = vrot.slane %v287_v22, 7  ;;  %v288_v37 = vld [vmem:[%s2843_s28 + $0x18] sm:$0xff]  ;;  %v289_v46 = vld [vmem:[%s2843_s28 + $0x20] sm:$0xff]  ;;  %v290_v59 = vld [vmem:[%s2843_s28 + $0x28] sm:$0xff] }
  0x12   : > { %2400 = vmatpush3.msk.msra.mxu1 %vm699_vm3, %v673_v35  ;;  %v304_v40 = vrot.slane %v288_v37, 7  ;;  %v305_v50 = vrot.slane %v289_v46, 7  ;;  %v306_v61 = vrot.slane %v290_v59, 7 }
  0x13   : > { %v2848_v7 = vsel %vm317_vm0, 0.0, %v302_v5  ;;  %v2851_v8 = vsel %vm317_vm0, 0.0, %v301_v6  ;;  %v326_v9 = vsel %vm317_vm0, %v301_v6, 0.0  ;;  %v327_v10 = vsel %vm317_vm0, %v302_v5, 0.0  ;;  %v291_v5 = vld [vmem:[%s2843_s28 + $0x30] sm:$0xff] }
  0x14   : > { %448 = vrot.lane.b32.xlu1 %v2848_v7, %s2767_s29  ;;  %446 = vrot.lane.b32.xlu0 %v2851_v8, %s2767_s29  ;;  %v400_v11 = vrot.slane %v2851_v8, 2  ;;  %v401_v12 = vrot.slane %v326_v9, 2  ;;  %v352_v13 = vrot.slane %v2851_v8, 1  ;;  %v353_v14 = vrot.slane %v326_v9, 1 }
  0x15   : > { %v355_v15 = vrot.slane %v2848_v7, 1  ;;  %v356_v16 = vrot.slane %v327_v10, 1  ;;  %v403_v20 = vrot.slane %v2848_v7, 2  ;;  %v404_v21 = vrot.slane %v327_v10, 2 }
  0x16   : > { %v402_v17 = vsel %vm397_vm1, %v400_v11, %v401_v12  ;;  %v354_v18 = vsel %vm349_vm2, %v352_v13, %v353_v14  ;;  %v2881_v28 = vsel %vm317_vm0, 0.0, %v303_v26  ;;  %v328_v31 = vsel %vm317_vm0, %v303_v26, 0.0 }
  0x17   : > { %v357_v19 = vsel %vm349_vm2, %v355_v15, %v356_v16  ;;  %v405_v25 = vsel %vm397_vm1, %v403_v20, %v404_v21  ;;  %v358_v33 = vrot.slane %v2881_v28, 1  ;;  %v359_v34 = vrot.slane %v328_v31, 1  ;;  %v292_v20 = vld [vmem:[%s2843_s28 + $0x38] sm:$0xff] }
  0x18   : > { %423 = vrot.lane.b32.xlu1 %v402_v17, %s2765_s23  ;;  %375 = vrot.lane.b32.xlu0 %v354_v18, %s2766_s24  ;;  %v406_v38 = vrot.slane %v2881_v28, 2  ;;  %v407_v39 = vrot.slane %v328_v31, 2  ;;  %v2909_v42 = vsel %vm317_vm0, 0.0, %v304_v40  ;;  %v329_v43 = vsel %vm317_vm0, %v304_v40, 0.0 }
  0x19   : > { %v360_v36 = vsel %vm349_vm2, %v358_v33, %v359_v34  ;;  %v361_v44 = vrot.slane %v2909_v42, 1  ;;  %v362_v45 = vrot.slane %v329_v43, 1  ;;  %v409_v48 = vrot.slane %v2909_v42, 2 }
  0x1a   : > { %v408_v41 = vsel %vm397_vm1, %v406_v38, %v407_v39  ;;  %v410_v49 = vrot.slane %v329_v43, 2  ;;  %v2926_v52 = vsel %vm317_vm0, 0.0, %v305_v50  ;;  %v330_v53 = vsel %vm317_vm0, %v305_v50, 0.0 }
  0x1b   : > { %v363_v47 = vsel %vm349_vm2, %v361_v44, %v362_v45  ;;  %v364_v54 = vrot.slane %v2926_v52, 1  ;;  %v365_v55 = vrot.slane %v330_v53, 1  ;;  %v412_v57 = vrot.slane %v2926_v52, 2 }
  0x1c   : > { %476 = vrot.lane.b32.xlu1 %v357_v19, %s2768_s30  ;;  %474 = vrot.lane.b32.xlu0 %v354_v18, %s2768_s30  ;;  %v411_v51 = vsel %vm397_vm1, %v409_v48, %v410_v49  ;;  %v413_v58 = vrot.slane %v330_v53, 2  ;;  %v2947_v62 = vsel %vm317_vm0, 0.0, %v306_v61  ;;  %v331_v63 = vsel %vm317_vm0, %v306_v61, 0.0 }
  0x1d   : > { %v366_v56 = vsel %vm349_vm2, %v364_v54, %v365_v55  ;;  %v367_v3 = vrot.slane %v2947_v62, 1  ;;  %v368_v4 = vrot.slane %v331_v63, 1  ;;  %v415_v9 = vrot.slane %v2947_v62, 2 }
  0x1e   : > { %v414_v60 = vsel %vm397_vm1, %v412_v57, %v413_v58  ;;  %v416_v10 = vrot.slane %v331_v63, 2  ;;  %v307_v11 = vrot.slane %v291_v5, 7  ;;  %v308_v22 = vrot.slane %v292_v20, 7 }
  0x1f   : > { %v369_v6 = vsel %vm349_vm2, %v367_v3, %v368_v4 }
  0x20   : > { %503 = vrot.lane.b32.xlu1 %v405_v25, %s2769_s11  ;;  %501 = vrot.lane.b32.xlu0 %v402_v17, %s2769_s11  ;;  %v417_v12 = vsel %vm397_vm1, %v415_v9, %v416_v10  ;;  %v2964_v13 = vsel %vm317_vm0, 0.0, %v307_v11  ;;  %v332_v14 = vsel %vm317_vm0, %v307_v11, 0.0  ;;  %v325_v23 = vsel %vm317_vm0, 0.0, %v308_v22 }
  0x21   : > { %v370_v15 = vrot.slane %v2964_v13, 1  ;;  %v371_v16 = vrot.slane %v332_v14, 1  ;;  %v418_v18 = vrot.slane %v2964_v13, 2  ;;  %v333_v24 = vsel %vm317_vm0, %v308_v22, 0.0 }
  0x22   : > { %v472_v26 = vrot.slane %v333_v24, 1  ;;  %v498_v29 = vrot.slane %v325_v23, 2  ;;  %v499_v30 = vrot.slane %v333_v24, 2 }
  0x23   : > { %v372_v17 = vsel %vm349_vm2, %v370_v15, %v371_v16 }
  0x24   : > { %527 = vrot.lane.b32.xlu1 %v2881_v28, %s2770_s16  ;;  %525 = vrot.lane.b32.xlu0 %v2848_v7, %s2770_s16  ;;  %v500_v31 = vsel %vm397_vm1, %v498_v29, %v499_v30 }
  0x28   : > { %377 = vrot.lane.b32.xlu1 %v357_v19, %s2766_s24  ;;  %549 = vrot.lane.b32.xlu0 %v357_v19, %s2771_s19  ;;  %v419_v19 = vrot.slane %v332_v14, 2 }
  0x2a   : > { %v420_v21 = vsel %vm397_vm1, %v418_v18, %v419_v19 }
  0x2c   : > { %573 = vrot.lane.b32.xlu1 %v405_v25, %s2772_s20  ;;  %551 = vrot.lane.b32.xlu0 %v360_v36, %s2771_s19 }
  0x30   : > { %425 = vrot.lane.b32.xlu1 %v405_v25, %s2765_s23  ;;  %379 = vrot.lane.b32.xlu0 %v360_v36, %s2766_s24  ;;  %v471_v25 = vrot.slane %v325_v23, 1 }
  0x32   : > { %v473_v27 = vsel %vm349_vm2, %v471_v25, %v472_v26 }
  0x34   : > { %427 = vrot.lane.b32.xlu1 %v408_v41, %s2765_s23  ;;  %575 = vrot.lane.b32.xlu0 %v408_v41, %s2772_s20 }
  0x38   : > { %452 = vrot.lane.b32.xlu1 %v2909_v42, %s2767_s29  ;;  %450 = vrot.lane.b32.xlu0 %v2881_v28, %s2767_s29 }
  0x3c   : > { %480 = vrot.lane.b32.xlu1 %v363_v47, %s2768_s30  ;;  %478 = vrot.lane.b32.xlu0 %v360_v36, %s2768_s30 }
  0x40   : > { %507 = vrot.lane.b32.xlu1 %v411_v51, %s2769_s11  ;;  %505 = vrot.lane.b32.xlu0 %v408_v41, %s2769_s11 }
  0x44   : > { %531 = vrot.lane.b32.xlu1 %v2926_v52, %s2770_s16  ;;  %529 = vrot.lane.b32.xlu0 %v2909_v42, %s2770_s16 }
  0x48   : > { %555 = vrot.lane.b32.xlu1 %v366_v56, %s2771_s19  ;;  %553 = vrot.lane.b32.xlu0 %v363_v47, %s2771_s19 }
  0x4c   : > { %381 = vrot.lane.b32.xlu1 %v363_v47, %s2766_s24  ;;  %577 = vrot.lane.b32.xlu0 %v411_v51, %s2772_s20 }
  0x50   : > { %383 = vrot.lane.b32.xlu1 %v366_v56, %s2766_s24  ;;  %579 = vrot.lane.b32.xlu0 %v414_v60, %s2772_s20 }
  0x54   : > { %431 = vrot.lane.b32.xlu1 %v414_v60, %s2765_s23  ;;  %429 = vrot.lane.b32.xlu0 %v411_v51, %s2765_s23 }
  0x58   : > { %456 = vrot.lane.b32.xlu1 %v2947_v62, %s2767_s29  ;;  %454 = vrot.lane.b32.xlu0 %v2926_v52, %s2767_s29 }
  0x5c   : > { %484 = vrot.lane.b32.xlu1 %v369_v6, %s2768_s30  ;;  %482 = vrot.lane.b32.xlu0 %v366_v56, %s2768_s30 }
  0x60   : > { %511 = vrot.lane.b32.xlu1 %v417_v12, %s2769_s11  ;;  %509 = vrot.lane.b32.xlu0 %v414_v60, %s2769_s11 }
  0x64   : > { %535 = vrot.lane.b32.xlu1 %v2964_v13, %s2770_s16  ;;  %533 = vrot.lane.b32.xlu0 %v2947_v62, %s2770_s16 }
  0x68   : > { %559 = vrot.lane.b32.xlu1 %v372_v17, %s2771_s19  ;;  %557 = vrot.lane.b32.xlu0 %v369_v6, %s2771_s19 }
  0x6c   : > { %385 = vrot.lane.b32.xlu1 %v369_v6, %s2766_s24  ;;  %581 = vrot.lane.b32.xlu0 %v417_v12, %s2772_s20 }
  0x70   : > { %387 = vrot.lane.b32.xlu1 %v372_v17, %s2766_s24  ;;  %583 = vrot.lane.b32.xlu0 %v420_v21, %s2772_s20  ;;  %s2335_s24 = sshll.u32 %s3814_s22, 4  ;;  %s2773_s22 = smov 120  }
  0x71   : > { %s274_s28 = scalar_lea.vmem %s3805_s1, %s2335_s24  ;;  %s2775_s24 = smov 104  }
  0x72   : > { %v808_v34 = vld [vmem:[%s274_s28] sm:$0xff]  ;;  %v809_v35 = vld [vmem:[%s274_s28 + $0x8] sm:$0xff] }
  0x73   : > { %v2485_v37 = vpack.c.bf16 %v809_v35, %v808_v34  ;;  %v3018_v43 = vpack.i.bf16 %v809_v35, %v808_v34 }
  0x74   : > { %435 = vrot.lane.b32.xlu1 %v420_v21, %s2765_s23  ;;  %433 = vrot.lane.b32.xlu0 %v417_v12, %s2765_s23 }
  0x75   : > { %2487 = vmatprep.subr.msk.bf16.mxu1 %vm3003_vm5, %v2485_v37 }
  0x78   : > { %460 = vrot.lane.b32.xlu1 %v325_v23, %s2767_s29  ;;  %458 = vrot.lane.b32.xlu0 %v2964_v13, %s2767_s29  ;;  %s279_s29 = scalar_lea.vmem %s3809_s5, %s2837_s25 }
  0x7a   : > { %v422_v32 = vpop.permute.xlu1 %421  ;;  %v374_v33 = vpop.permute.xlu0 %373 }
  0x7b   : > { %v598_v48 = vsel %vm597_vm6, 0.0, %v374_v33 }
  0x7c   : > { %488 = vrot.lane.b32.xlu1 %v473_v27, %s2768_s30  ;;  %486 = vrot.lane.b32.xlu0 %v372_v17, %s2768_s30  ;;  %v607_v51 = vsel %vm606_vm4, %v598_v48, %v422_v32 }
  0x80   : > { %515 = vrot.lane.b32.xlu1 %v500_v31, %s2769_s11  ;;  %513 = vrot.lane.b32.xlu0 %v420_v21, %s2769_s11 }
  0x84   : > { %539 = vrot.lane.b32.xlu1 %v2764_v0, %s2770_s16  ;;  %537 = vrot.lane.b32.xlu0 %v325_v23, %s2770_s16 }
  0x86   : > { %v449_v38 = vpop.permute.xlu1 %448  ;;  %v447_v39 = vpop.permute.xlu0 %446 }
  0x87   : > { %v616_v53 = vsel %vm615_vm7, %v607_v51, %v447_v39 }
  0x88   : > { %563 = vrot.lane.b32.xlu1 %v2828_v2, %s2771_s19  ;;  %561 = vrot.lane.b32.xlu0 %v473_v27, %s2771_s19  ;;  %s2774_s19 = smov 112  }
  0x8a   : > { %v424_v40 = vpop.permute.xlu1 %423  ;;  %v376_v41 = vpop.permute.xlu0 %375 }
  0x8b   : > { %v599_v54 = vsel %vm597_vm6, %v2851_v8, %v376_v41 }
  0x8c   : > { %587 = vrot.lane.b32.xlu1 %v2825_v1, %s2772_s20  ;;  %585 = vrot.lane.b32.xlu0 %v500_v31, %s2772_s20  ;;  %v608_v59 = vsel %vm606_vm4, %v599_v54, %v424_v40 }
  0x8d   : > { %v617_v4 = vsel %vm615_vm7, %v608_v59, %v449_v38 }
  0x8e   : > { %v477_v44 = vpop.permute.xlu1 %476  ;;  %v475_v45 = vpop.permute.xlu0 %474 }
  0x8f   : > { %v625_v57 = vsel %vm624_vm8, %v616_v53, %v475_v45  ;;  %v626_v9 = vsel %vm624_vm8, %v617_v4, %v477_v44 }
  0x90   : > { %2558 = vrot.lane.b32.xlu0 %v3018_v43, %s2773_s22 }
  0x92   : > { %v504_v46 = vpop.permute.xlu1 %503  ;;  %v502_v47 = vpop.permute.xlu0 %501 }
  0x93   : > { %v634_v58 = vsel %vm633_vm9, %v625_v57, %v502_v47  ;;  %v635_v10 = vsel %vm633_vm9, %v626_v9, %v504_v46 }
  0x96   : > { %v528_v49 = vpop.permute.xlu1 %527  ;;  %v526_v50 = vpop.permute.xlu0 %525 }
  0x97   : > { %v643_v60 = vsel %vm642_vm10, %v634_v58, %v526_v50  ;;  %v644_v11 = vsel %vm642_vm10, %v635_v10, %v528_v49 }
  0x9a   : > { %v378_v55 = vpop.permute.xlu1 %377  ;;  %v550_v56 = vpop.permute.xlu0 %549 }
  0x9b   : > { %v652_v61 = vsel %vm651_vm11, %v643_v60, %v550_v56  ;;  %v600_v25 = vsel %vm597_vm6, %v2848_v7, %v378_v55 }
  0x9e   : > { %v574_v63 = vpop.permute.xlu1 %573  ;;  %v552_v3 = vpop.permute.xlu0 %551 }
  0x9f   : > { %v661_v8 = vsel %vm660_vm12, %v652_v61, %v574_v63  ;;  %v653_v12 = vsel %vm651_vm11, %v644_v11, %v552_v3 }
  0xa0   : > { %2401 = vmatprep.mubr.msk.f32.mxu1 %vm674_vm13, %v661_v8 }
  0xa2   : > { %v426_v5 = vpop.permute.xlu1 %425  ;;  %v380_v6 = vpop.permute.xlu0 %379 }
  0xa3   : > { %v609_v26 = vsel %vm606_vm4, %v600_v25, %v426_v5  ;;  %v601_v32 = vsel %vm597_vm6, %v2881_v28, %v380_v6 }
  0xa6   : > { %v428_v14 = vpop.permute.xlu1 %427  ;;  %v576_v15 = vpop.permute.xlu0 %575 }
  0xa7   : > { %v662_v16 = vsel %vm660_vm12, %v653_v12, %v576_v15  ;;  %v610_v34 = vsel %vm606_vm4, %v601_v32, %v428_v14 }
  0xa8   : > { %2402 = vmatmul.mubr.msk.f32.vlgmr.msra.gmra.mrb[0].mxu1 %vm674_vm13, %v662_v16 }
  0xa9   : > { %2490 = vmatpush3.bf16.xpose.msk.msra.mxu1 %vm3003_vm5, %v2485_v37 }
  0xaa   : > { %v453_v17 = vpop.permute.xlu1 %452  ;;  %v451_v18 = vpop.permute.xlu0 %450 }
  0xab   : > { %v618_v27 = vsel %vm615_vm7, %v609_v26, %v451_v18  ;;  %v619_v37 = vsel %vm615_vm7, %v610_v34, %v453_v17 }
  0xae   : > { %v481_v19 = vpop.permute.xlu1 %480  ;;  %v479_v20 = vpop.permute.xlu0 %478 }
  0xaf   : > { %v627_v31 = vsel %vm624_vm8, %v618_v27, %v479_v20  ;;  %v628_v40 = vsel %vm624_vm8, %v619_v37, %v481_v19 }
  0xb2   : > { %v508_v21 = vpop.permute.xlu1 %507  ;;  %v506_v22 = vpop.permute.xlu0 %505 }
  0xb3   : > { %v636_v33 = vsel %vm633_vm9, %v627_v31, %v506_v22  ;;  %v637_v44 = vsel %vm633_vm9, %v628_v40, %v508_v21 }
  0xb6   : > { %v532_v23 = vpop.permute.xlu1 %531  ;;  %v530_v24 = vpop.permute.xlu0 %529 }
  0xb7   : > { %v645_v35 = vsel %vm642_vm10, %v636_v33, %v530_v24  ;;  %v646_v28 = vsel %vm642_vm10, %v637_v44, %v532_v23 }
  0xba   : > { %v556_v29 = vpop.permute.xlu1 %555  ;;  %v554_v30 = vpop.permute.xlu0 %553 }
  0xbb   : > { %v654_v7 = vsel %vm651_vm11, %v645_v35, %v554_v30  ;;  %v655_v45 = vsel %vm651_vm11, %v646_v28, %v556_v29 }
  0xbe   : > { %v382_v38 = vpop.permute.xlu1 %381  ;;  %v578_v39 = vpop.permute.xlu0 %577 }
  0xbf   : > { %v663_v41 = vsel %vm660_vm12, %v654_v7, %v578_v39  ;;  %v602_v60 = vsel %vm597_vm6, %v2909_v42, %v382_v38 }
  0xc0   : > { %2404 = vmatprep.mubr.msk.f32.mxu1 %vm674_vm13, %v663_v41 }
  0xc2   : > { %v384_v46 = vpop.permute.xlu1 %383  ;;  %v580_v47 = vpop.permute.xlu0 %579 }
  0xc3   : > { %v664_v48 = vsel %vm660_vm12, %v655_v45, %v580_v47  ;;  %v603_v5 = vsel %vm597_vm6, %v2926_v52, %v384_v46 }
  0xc4   : > { %2405 = vmatmul.mubr.msk.f32.gmra.mrb[2].mxu1 %vm674_vm13, %v664_v48 }
  0xc6   : > { %v432_v49 = vpop.permute.xlu1 %431  ;;  %v430_v50 = vpop.permute.xlu0 %429 }
  0xc7   : > { %v611_v61 = vsel %vm606_vm4, %v602_v60, %v430_v50  ;;  %v612_v9 = vsel %vm606_vm4, %v603_v5, %v432_v49 }
  0xca   : > { %v457_v51 = vpop.permute.xlu1 %456  ;;  %v455_v53 = vpop.permute.xlu0 %454 }
  0xcb   : > { %v620_v63 = vsel %vm615_vm7, %v611_v61, %v455_v53  ;;  %v621_v11 = vsel %vm615_vm7, %v612_v9, %v457_v51 }
  0xce   : > { %v485_v54 = vpop.permute.xlu1 %484  ;;  %v483_v55 = vpop.permute.xlu0 %482 }
  0xcf   : > { %v629_v4 = vsel %vm624_vm8, %v620_v63, %v483_v55  ;;  %v630_v15 = vsel %vm624_vm8, %v621_v11, %v485_v54 }
  0xd2   : > { %v512_v56 = vpop.permute.xlu1 %511  ;;  %v510_v57 = vpop.permute.xlu0 %509 }
  0xd3   : > { %v638_v6 = vsel %vm633_vm9, %v629_v4, %v510_v57  ;;  %v639_v17 = vsel %vm633_vm9, %v630_v15, %v512_v56 }
  0xd6   : > { %v536_v58 = vpop.permute.xlu1 %535  ;;  %v534_v59 = vpop.permute.xlu0 %533 }
  0xd7   : > { %v647_v10 = vsel %vm642_vm10, %v638_v6, %v534_v59  ;;  %v648_v52 = vsel %vm642_vm10, %v639_v17, %v536_v58 }
  0xda   : > { %v560_v3 = vpop.permute.xlu1 %559  ;;  %v558_v8 = vpop.permute.xlu0 %557 }
  0xdb   : > { %v656_v42 = vsel %vm651_vm11, %v647_v10, %v558_v8  ;;  %v657_v18 = vsel %vm651_vm11, %v648_v52, %v560_v3 }
  0xde   : > { %v386_v12 = vpop.permute.xlu1 %385  ;;  %v582_v14 = vpop.permute.xlu0 %581 }
  0xdf   : > { %v665_v16 = vsel %vm660_vm12, %v656_v42, %v582_v14  ;;  %v604_v33 = vsel %vm597_vm6, %v2947_v62, %v386_v12  ;;  %v811_v12 = vld [vmem:[%s3806_s2 + $0x8] sm:$0xff]  ;;  %v810_v14 = vld [vmem:[%s3806_s2] sm:$0xff] }
  0xe0   : > { %2407 = vmatprep.mubr.msk.f32.mxu1 %vm674_vm13, %v665_v16 }
  0xe2   : > { %v388_v19 = vpop.permute.xlu1 %387  ;;  %v584_v20 = vpop.permute.xlu0 %583 }
  0xe3   : > { %v666_v21 = vsel %vm660_vm12, %v657_v18, %v584_v20  ;;  %v605_v34 = vsel %vm597_vm6, %v2964_v13, %v388_v19  ;;  %v813_v20 = vld [vmem:[%s3806_s2 + $0x18] sm:$0xff] }
  0xe4   : > { %2408 = vmatmul.mubr.msk.f32.gmra.mrb[4].mxu1 %vm674_vm13, %v666_v21  ;;  %v812_v21 = vld [vmem:[%s3806_s2 + $0x10] sm:$0xff] }
  0xe6   : > { %v436_v22 = vpop.permute.xlu1 %435  ;;  %v434_v23 = vpop.permute.xlu0 %433 }
  0xe7   : > { %v614_v35 = vsel %vm606_vm4, %v605_v34, %v436_v22  ;;  %v613_v37 = vsel %vm606_vm4, %v604_v33, %v434_v23 }
  0xea   : > { %v461_v24 = vpop.permute.xlu1 %460  ;;  %v459_v25 = vpop.permute.xlu0 %458 }
  0xeb   : > { %v623_v7 = vsel %vm615_vm7, %v614_v35, %v461_v24  ;;  %v622_v38 = vsel %vm615_vm7, %v613_v37, %v459_v25 }
  0xee   : > { %v489_v26 = vpop.permute.xlu1 %488  ;;  %v487_v27 = vpop.permute.xlu0 %486 }
  0xef   : > { %v632_v41 = vsel %vm624_vm8, %v623_v7, %v489_v26  ;;  %v631_v44 = vsel %vm624_vm8, %v622_v38, %v487_v27  ;;  %v817_v7 = vld [vmem:[%s3806_s2 + $0x38] sm:$0xff]  ;;  %v816_v38 = vld [vmem:[%s3806_s2 + $0x30] sm:$0xff] }
  0xf2   : > { %v516_v29 = vpop.permute.xlu1 %515  ;;  %v514_v30 = vpop.permute.xlu0 %513 }
  0xf3   : > { %v641_v28 = vsel %vm633_vm9, %v632_v41, %v516_v29  ;;  %v640_v62 = vsel %vm633_vm9, %v631_v44, %v514_v30  ;;  %v815_v29 = vld [vmem:[%s3806_s2 + $0x28] sm:$0xff]  ;;  %v814_v30 = vld [vmem:[%s3806_s2 + $0x20] sm:$0xff] }
  0xf6   : > { %v540_v31 = vpop.permute.xlu1 %539  ;;  %v538_v32 = vpop.permute.xlu0 %537 }
  0xf7   : > { %v650_v13 = vsel %vm642_vm10, %v641_v28, %v540_v31  ;;  %v649_v45 = vsel %vm642_vm10, %v640_v62, %v538_v32 }
  0xfa   : > { %v564_v39 = vpop.permute.xlu1 %563  ;;  %v562_v40 = vpop.permute.xlu0 %561 }
  0xfb   : > { %v659_v46 = vsel %vm651_vm11, %v650_v13, %v564_v39  ;;  %v658_v47 = vsel %vm651_vm11, %v649_v45, %v562_v40  ;;  %v2299_v13 = vld [vmem:[%s3806_s2 + $0x48] sm:$0xff]  ;;  %v2298_v45 = vld [vmem:[%s3806_s2 + $0x40] sm:$0xff] }
  0xfe   : > { %v3099_v48 = vpop.permute.xlu1 %587  ;;  %v586_v49 = vpop.permute.xlu0 %585 }
  0xff   : > { %v668_v50 = vsel %vm660_vm12, %v659_v46, %v3099_v48  ;;  %v667_v51 = vsel %vm660_vm12, %v658_v47, %v586_v49 }
 0x100   : > { %2410 = vmatprep.mubr.msk.f32.mxu1 %vm674_vm13, %v667_v51 }
 0x101   : > { %2411 = vmatmul.mubr.msk.f32.gmra.mrb[6].mxu1 %vm674_vm13, %v668_v50 }
 0x102   : > { %v2559_v53 = vpop.permute.xlu0 %2558 }
 0x103   : > { %v2561_v54 = vunpack.i.h.bf16 %v2559_v53  ;;  %v2560_v55 = vunpack.i.l.bf16 %v2559_v53 }
 0x105   : > { %v2495_v56 = vpack.c.bf16 %v2561_v54, %v2560_v55  ;;  %v2301_v54 = vld [vmem:[%s3806_s2 + $0x58] sm:$0xff]  ;;  %v2300_v55 = vld [vmem:[%s3806_s2 + $0x50] sm:$0xff] }
 0x107   : > { %2497 = vmatprep.subr.msk.bf16.mxu0 %vm3003_vm5, %v2495_v56 }
 0x108   : > { %2500 = vmatpush3.bf16.xpose.msk.msra.mxu0 %vm3003_vm5, %v2495_v56 }
 0x17b   : > { %v2403_v57 = vpop.f32.mrb[0].mxu1 }
 0x17c   : > { %1211 = vrot.lane.b32.xlu0 %v2403_v57, %s2773_s22  ;;  %v769_v58 = vpop.f32.mrb[1].mxu1 }
 0x17d   : > { %1209 = vrot.lane.b32.xlu1 %v769_v58, %s2773_s22  ;;  %2417 = vmatprep.mubr.msk.f32.mxu1 %vm606_vm4, %v769_v58 }
 0x17e   : > { %2418 = vmatmul.mubr.msk.f32.vlgmr.msra.gmra.mrb[8].mxu1 %vm606_vm4, %v2403_v57 }
 0x197   : > { %v2406_v59 = vpop.f32.mrb[2].mxu1 }
 0x198   : > { %1215 = vrot.lane.b32.xlu0 %v2406_v59, %s2773_s22  ;;  %v779_v60 = vpop.f32.mrb[3].mxu1 }
 0x199   : > { %1213 = vrot.lane.b32.xlu1 %v779_v60, %s2773_s22  ;;  %2420 = vmatprep.mubr.msk.f32.mxu1 %vm606_vm4, %v779_v60 }
 0x19a   : > { %2421 = vmatmul.mubr.msk.f32.gmra.mrb[10].mxu1 %vm606_vm4, %v2406_v59 }
 0x1b7   : > { %v2409_v36 = vpop.f32.mrb[4].mxu1 }
 0x1b8   : > { %1219 = vrot.lane.b32.xlu0 %v2409_v36, %s2773_s22  ;;  %v789_v61 = vpop.f32.mrb[5].mxu1 }
 0x1b9   : > { %1217 = vrot.lane.b32.xlu1 %v789_v61, %s2773_s22  ;;  %2423 = vmatprep.mubr.msk.f32.mxu1 %vm606_vm4, %v789_v61  ;;  %v2303_v61 = vld [vmem:[%s3806_s2 + $0x68] sm:$0xff] }
 0x1ba   : > { %2424 = vmatmul.mubr.msk.f32.gmra.mrb[12].mxu1 %vm606_vm4, %v2409_v36 }
 0x1d4   : > { %v2412_v63 = vpop.f32.mrb[6].mxu1 }
 0x1d5   : > { %1223 = vrot.lane.b32.xlu0 %v2412_v63, %s2773_s22  ;;  %v799_v3 = vpop.f32.mrb[7].mxu1 }
 0x1d6   : > { %1221 = vrot.lane.b32.xlu1 %v799_v3, %s2773_s22  ;;  %2426 = vmatprep.mubr.msk.f32.mxu1 %vm606_vm4, %v799_v3 }
 0x1d7   : > { %2427 = vmatmul.mubr.msk.f32.gmra.mrb[14].mxu1 %vm606_vm4, %v2412_v63  ;;  %v2302_v63 = vld [vmem:[%s3806_s2 + $0x60] sm:$0xff] }
 0x1ee   : > { %v1212_v4 = vpop.permute.xlu0 %1211 }
 0x1ef   : > { %v1210_v8 = vpop.permute.xlu1 %1209 }
 0x1f0   : > { %2449 = vmatprep.mubr.msk.f32.mxu0 %vm606_vm4, %v1210_v8 }
 0x1f1   : > { %2450 = vmatmul.mubr.msk.f32.vlgmr.msra.gmra.mrb[0].mxu0 %vm606_vm4, %v1212_v4 }
 0x20a   : > { %v1216_v6 = vpop.permute.xlu0 %1215 }
 0x20b   : > { %v1214_v5 = vpop.permute.xlu1 %1213 }
 0x20c   : > { %2452 = vmatprep.mubr.msk.f32.mxu0 %vm606_vm4, %v1214_v5 }
 0x20d   : > { %2453 = vmatmul.mubr.msk.f32.gmra.mrb[2].mxu0 %vm606_vm4, %v1216_v6 }
 0x22a   : > { %v1220_v10 = vpop.permute.xlu0 %1219 }
 0x22b   : > { %v1218_v9 = vpop.permute.xlu1 %1217 }
 0x22c   : > { %2455 = vmatprep.mubr.msk.f32.mxu0 %vm606_vm4, %v1218_v9 }
 0x22d   : > { %2456 = vmatmul.mubr.msk.f32.gmra.mrb[4].mxu0 %vm606_vm4, %v1220_v10 }
 0x247   : > { %v1224_v42 = vpop.permute.xlu0 %1223 }
 0x248   : > { %v1222_v11 = vpop.permute.xlu1 %1221 }
 0x249   : > { %2458 = vmatprep.mubr.msk.f32.mxu0 %vm606_vm4, %v1222_v11 }
 0x24a   : > { %2459 = vmatmul.mubr.msk.f32.gmra.mrb[6].mxu0 %vm606_vm4, %v1224_v42 }
 0x251   : > { %v2419_v15 = vpop.f32.mrb[8].mxu1 }
 0x252   : > { %v3140_v16 = vadd.f32 %v2419_v15, %v811_v12  ;;  %v914_v17 = vpop.f32.mrb[9].mxu1 }
 0x253   : > { %v3142_v52 = vadd.f32 %v914_v17, %v810_v14 }
 0x254   : > { %v956_v18 = vsel %vm624_vm8, %v3140_v16, -inf }
 0x255   : > { %957 = vmax.xlane.f32.xlu0 %v956_v18  ;;  %v953_v19 = vsel %vm624_vm8, %v3142_v52, -inf }
 0x256   : > { %954 = vmax.xlane.f32.xlu1 %v953_v19 }
 0x26d   : > { %v2422_v22 = vpop.f32.mrb[10].mxu1 }
 0x26e   : > { %v3154_v23 = vadd.f32 %v2422_v22, %v813_v20  ;;  %v924_v24 = vpop.f32.mrb[11].mxu1 }
 0x26f   : > { %v3156_v25 = vadd.f32 %v924_v24, %v812_v21  ;;  %v2305_v24 = vld [vmem:[%s3806_s2 + $0x78] sm:$0xff] }
 0x270   : > { %v962_v26 = vsel %vm624_vm8, %v3154_v23, -inf }
 0x271   : > { %963 = vmax.xlane.f32.xlu1 %v962_v26  ;;  %v959_v27 = vsel %vm624_vm8, %v3156_v25, -inf }
 0x272   : > { %960 = vmax.xlane.f32.xlu0 %v959_v27 }
 0x28d   : > { %v2425_v31 = vpop.f32.mrb[12].mxu1 }
 0x28e   : > { %v3168_v32 = vadd.f32 %v2425_v31, %v815_v29  ;;  %v934_v33 = vpop.f32.mrb[13].mxu1 }
 0x28f   : > { %v3170_v34 = vadd.f32 %v934_v33, %v814_v30 }
 0x290   : > { %v968_v35 = vsel %vm624_vm8, %v3168_v32, -inf }
 0x291   : > { %969 = vmax.xlane.f32.xlu1 %v968_v35  ;;  %v965_v37 = vsel %vm624_vm8, %v3170_v34, -inf }
 0x292   : > { %966 = vmax.xlane.f32.xlu0 %v965_v37 }
 0x2aa   : > { %v2428_v39 = vpop.f32.mrb[14].mxu1 }
 0x2ab   : > { %v3182_v40 = vadd.f32 %v2428_v39, %v817_v7  ;;  %v944_v41 = vpop.f32.mrb[15].mxu1 }
 0x2ac   : > { %v3184_v44 = vadd.f32 %v944_v41, %v816_v38 }
 0x2ad   : > { %v974_v28 = vsel %vm624_vm8, %v3182_v40, -inf }
 0x2ae   : > { %975 = vmax.xlane.f32.xlu1 %v974_v28  ;;  %v971_v62 = vsel %vm624_vm8, %v3184_v44, -inf }
 0x2af   : > { %972 = vmax.xlane.f32.xlu0 %v971_v62 }
 0x2c4   : > { %v2451_v46 = vpop.f32.mrb[0].mxu0 }
 0x2c5   : > { %v3196_v47 = vadd.f32 %v2451_v46, %v2299_v13  ;;  %v1315_v49 = vpop.f32.mrb[1].mxu0 }
 0x2c6   : > { %v3198_v50 = vadd.f32 %v2298_v45, %v1315_v49 }
 0x2c7   : > { %v1357_v51 = vsel %vm624_vm8, %v3196_v47, -inf }
 0x2c8   : > { %1358 = vmax.xlane.f32.xlu1 %v1357_v51  ;;  %v1354_v53 = vsel %vm624_vm8, %v3198_v50, -inf }
 0x2c9   : > { %1355 = vmax.xlane.f32.xlu0 %v1354_v53 }
 0x2e0   : > { %v2454_v56 = vpop.f32.mrb[2].mxu0 }
 0x2e1   : > { %v3210_v57 = vadd.f32 %v2454_v56, %v2301_v54  ;;  %v1325_v58 = vpop.f32.mrb[3].mxu0 }
 0x2e2   : > { %v3212_v59 = vadd.f32 %v2300_v55, %v1325_v58  ;;  %v958_v10 = vpop.xlane.xlu0 %957 }
 0x2e3   : > { %v1363_v60 = vsel %vm624_vm8, %v3210_v57, -inf  ;;  %v955_v11 = vpop.xlane.xlu1 %954  ;;  %v978_v42 = vsub.f32 %v3140_v16, %v958_v10  ;;  %v2304_v16 = vld [vmem:[%s3806_s2 + $0x70] sm:$0xff] }
 0x2e4   : > { %1364 = vmax.xlane.f32.xlu1 %v1363_v60  ;;  %v1360_v36 = vsel %vm624_vm8, %v3212_v59, -inf  ;;  %v977_v12 = vsub.f32 %v3142_v52, %v955_v11 }
 0x2e5   : > { %1361 = vmax.xlane.f32.xlu0 %v1360_v36  ;;  %v987_v17 = vmul.f32 1.442695, %v978_v42 }
 0x2e6   : > { %v985_v19 = vmul.f32 1.442695, %v977_v12 }
 0x2e7   : > { %2692 = vpow2.f32 %v987_v17 }
 0x2e8   : > { %2694 = vpow2.f32 %v985_v19 }
 0x2f1   : > { %v3250_v35 = vpop.eup %2692 }
 0x2f2   : > { %v3254_v38 = vpop.eup %2694 }
 0x2f3   : > { %v1001_v41 = vsel %vm624_vm8, %v3254_v38, 0.0 }
 0x2fe   : > { %v964_v14 = vpop.xlane.xlu1 %963 }
 0x2ff   : > { %v961_v15 = vpop.xlane.xlu0 %960  ;;  %v980_v18 = vsub.f32 %v3154_v23, %v964_v14 }
 0x300   : > { %v2457_v3 = vpop.f32.mrb[4].mxu0  ;;  %v979_v20 = vsub.f32 %v3156_v25, %v961_v15 }
 0x301   : > { %v3224_v8 = vadd.f32 %v2457_v3, %v2303_v61  ;;  %v1335_v4 = vpop.f32.mrb[5].mxu0  ;;  %v991_v21 = vmul.f32 1.442695, %v980_v18 }
 0x302   : > { %v3226_v5 = vadd.f32 %v2302_v63, %v1335_v4  ;;  %v989_v22 = vmul.f32 1.442695, %v979_v20 }
 0x303   : > { %v1369_v6 = vsel %vm624_vm8, %v3224_v8, -inf  ;;  %2696 = vpow2.f32 %v991_v21 }
 0x304   : > { %1370 = vmax.xlane.f32.xlu1 %v1369_v6  ;;  %v1366_v9 = vsel %vm624_vm8, %v3226_v5, -inf  ;;  %2698 = vpow2.f32 %v989_v22 }
 0x305   : > { %1367 = vmax.xlane.f32.xlu0 %v1366_v9 }
 0x31d   : > { %v2460_v52 = vpop.f32.mrb[6].mxu0 }
 0x31e   : > { %v3242_v26 = vadd.f32 %v2460_v52, %v2305_v24  ;;  %v970_v23 = vpop.xlane.xlu1 %969  ;;  %v1345_v27 = vpop.f32.mrb[7].mxu0 }
 0x31f   : > { %v982_v25 = vsub.f32 %v3168_v32, %v970_v23  ;;  %v3245_v29 = vadd.f32 %v2304_v16, %v1345_v27  ;;  %v967_v30 = vpop.xlane.xlu0 %966  ;;  %v1004_v32 = vsel %vm624_vm8, %v3250_v35, 0.0 }
 0x320   : > { %v981_v31 = vsub.f32 %v3170_v34, %v967_v30  ;;  %v1375_v33 = vsel %vm624_vm8, %v3242_v26, -inf  ;;  %v3258_v34 = vpop.eup %2696 }
 0x321   : > { %v995_v37 = vmul.f32 1.442695, %v982_v25  ;;  %1376 = vmax.xlane.f32.xlu1 %v1375_v33  ;;  %v1372_v7 = vsel %vm624_vm8, %v3245_v29, -inf  ;;  %v3262_v28 = vpop.eup %2698  ;;  %v1010_v62 = vsel %vm624_vm8, %v3258_v34, 0.0 }
 0x322   : > { %v993_v39 = vmul.f32 1.442695, %v981_v31  ;;  %1373 = vmax.xlane.f32.xlu0 %v1372_v7  ;;  %v1007_v13 = vsel %vm624_vm8, %v3262_v28, 0.0 }
 0x323   : > { %2700 = vpow2.f32 %v995_v37 }
 0x324   : > { %2702 = vpow2.f32 %v993_v39 }
 0x325   : > { %1005 = vadd.xlane.f32.xlu1 %v1004_v32 }
 0x326   : > { %1002 = vadd.xlane.f32.xlu0 %v1001_v41 }
 0x329   : > { %1011 = vadd.xlane.f32.xlu1 %v1010_v62 }
 0x32a   : > { %1008 = vadd.xlane.f32.xlu0 %v1007_v13 }
 0x32d   : > { %v3268_v45 = vpop.eup %2700 }
 0x32e   : > { %v3270_v46 = vpop.eup %2702  ;;  %v1016_v49 = vsel %vm624_vm8, %v3268_v45, 0.0 }
 0x32f   : > { %1017 = vadd.xlane.f32.xlu1 %v1016_v49  ;;  %v1013_v51 = vsel %vm624_vm8, %v3270_v46, 0.0 }
 0x330   : > { %1014 = vadd.xlane.f32.xlu0 %v1013_v51 }
 0x33b   : > { %v976_v53 = vpop.xlane.xlu1 %975 }
 0x33c   : > { %v984_v54 = vsub.f32 %v3182_v40, %v976_v53  ;;  %v973_v55 = vpop.xlane.xlu0 %972 }
 0x33d   : > { %v983_v56 = vsub.f32 %v3184_v44, %v973_v55 }
 0x33e   : > { %v999_v58 = vmul.f32 1.442695, %v984_v54 }
 0x33f   : > { %v997_v60 = vmul.f32 1.442695, %v983_v56 }
 0x340   : > { %2704 = vpow2.f32 %v999_v58 }
 0x341   : > { %2706 = vpow2.f32 %v997_v60 }
 0x34a   : > { %v3278_v36 = vpop.eup %2704 }
 0x34b   : > { %v3280_v61 = vpop.eup %2706  ;;  %v1022_v63 = vsel %vm624_vm8, %v3278_v36, 0.0 }
 0x34c   : > { %1023 = vadd.xlane.f32.xlu1 %v1022_v63  ;;  %v1019_v3 = vsel %vm624_vm8, %v3280_v61, 0.0 }
 0x34d   : > { %1020 = vadd.xlane.f32.xlu0 %v1019_v3 }
 0x355   : > { %v1359_v40 = vpop.xlane.xlu1 %1358 }
 0x356   : > { %v1379_v4 = vsub.f32 %v3196_v47, %v1359_v40  ;;  %v1356_v44 = vpop.xlane.xlu0 %1355 }
 0x357   : > { %v1378_v6 = vsub.f32 %v3198_v50, %v1356_v44 }
 0x358   : > { %v1388_v9 = vmul.f32 1.442695, %v1379_v4 }
 0x359   : > { %v1386_v10 = vmul.f32 1.442695, %v1378_v6 }
 0x35a   : > { %2708 = vpow2.f32 %v1388_v9 }
 0x35b   : > { %2710 = vpow2.f32 %v1386_v10 }
 0x364   : > { %v3288_v11 = vpop.eup %2708 }
 0x365   : > { %v3290_v42 = vpop.eup %2710  ;;  %v1405_v12 = vsel %vm624_vm8, %v3288_v11, 0.0 }
 0x366   : > { %1406 = vadd.xlane.f32.xlu1 %v1405_v12  ;;  %v1402_v14 = vsel %vm624_vm8, %v3290_v42, 0.0 }
 0x367   : > { %1403 = vadd.xlane.f32.xlu0 %v1402_v14 }
 0x371   : > { %v1365_v47 = vpop.xlane.xlu1 %1364 }
 0x372   : > { %v1381_v15 = vsub.f32 %v3210_v57, %v1365_v47  ;;  %v1362_v50 = vpop.xlane.xlu0 %1361 }
 0x373   : > { %v1380_v17 = vsub.f32 %v3212_v59, %v1362_v50 }
 0x374   : > { %v1392_v18 = vmul.f32 1.442695, %v1381_v15 }
 0x375   : > { %v1390_v19 = vmul.f32 1.442695, %v1380_v17 }
 0x376   : > { %2712 = vpow2.f32 %v1392_v18 }
 0x377   : > { %2714 = vpow2.f32 %v1390_v19 }
 0x380   : > { %v3298_v20 = vpop.eup %2712 }
 0x381   : > { %v3300_v21 = vpop.eup %2714  ;;  %v1411_v22 = vsel %vm624_vm8, %v3298_v20, 0.0 }
 0x382   : > { %1412 = vadd.xlane.f32.xlu1 %v1411_v22  ;;  %v1408_v24 = vsel %vm624_vm8, %v3300_v21, 0.0 }
 0x383   : > { %1409 = vadd.xlane.f32.xlu0 %v1408_v24 }
 0x391   : > { %v1371_v57 = vpop.xlane.xlu1 %1370 }
 0x392   : > { %v1383_v16 = vsub.f32 %v3224_v8, %v1371_v57  ;;  %v1368_v59 = vpop.xlane.xlu0 %1367 }
 0x393   : > { %v1382_v52 = vsub.f32 %v3226_v5, %v1368_v59 }
 0x394   : > { %v1396_v23 = vmul.f32 1.442695, %v1383_v16 }
 0x395   : > { %v1394_v27 = vmul.f32 1.442695, %v1382_v52 }
 0x396   : > { %2716 = vpow2.f32 %v1396_v23 }
 0x397   : > { %2718 = vpow2.f32 %v1394_v27 }
 0x399   : > { %2563 = vrot.lane.b32.xlu0 %v3018_v43, %s2774_s19 }
 0x3a0   : > { %v3310_v25 = vpop.eup %2716 }
 0x3a1   : > { %v1417_v30 = vsel %vm624_vm8, %v3310_v25, 0.0  ;;  %v3314_v31 = vpop.eup %2718 }
 0x3a2   : > { %1418 = vadd.xlane.f32.xlu1 %v1417_v30  ;;  %v1414_v8 = vsel %vm624_vm8, %v3314_v31, 0.0 }
 0x3a6   : > { %1415 = vadd.xlane.f32.xlu1 %v1414_v8 }
 0x3ae   : > { %v1377_v5 = vpop.xlane.xlu1 %1376 }
 0x3af   : > { %v1385_v33 = vsub.f32 %v3242_v26, %v1377_v5  ;;  %v1374_v37 = vpop.xlane.xlu0 %1373 }
 0x3b0   : > { %v1384_v7 = vsub.f32 %v3245_v29, %v1374_v37 }
 0x3b1   : > { %v1400_v39 = vmul.f32 1.442695, %v1385_v33 }
 0x3b2   : > { %v1398_v32 = vmul.f32 1.442695, %v1384_v7  ;;  %v1006_v56 = vpop.xlane.xlu1 %1005 }
 0x3b3   : > { %2720 = vpow2.f32 %v1400_v39  ;;  %v1003_v41 = vpop.xlane.xlu0 %1002 }
 0x3b4   : > { %2722 = vpow2.f32 %v1398_v32 }
 0x3b5   : > { %2724 = vrcp.f32 %v1003_v41 }
 0x3b6   : > { %2726 = vrcp.f32 %v1006_v56  ;;  %v1012_v60 = vpop.xlane.xlu1 %1011 }
 0x3b7   : > { %v1009_v58 = vpop.xlane.xlu0 %1008 }
 0x3b8   : > { %2728 = vrcp.f32 %v1009_v58 }
 0x3b9   : > { %2730 = vrcp.f32 %v1012_v60 }
 0x3bc   : > { %v1018_v3 = vpop.xlane.xlu1 %1017 }
 0x3bd   : > { %v3320_v62 = vpop.eup %2720  ;;  %v1015_v63 = vpop.xlane.xlu0 %1014 }
 0x3be   : > { %v1423_v13 = vsel %vm624_vm8, %v3320_v62, 0.0  ;;  %v3324_v49 = vpop.eup %2722  ;;  %2732 = vrcp.f32 %v1015_v63 }
 0x3bf   : > { %1424 = vadd.xlane.f32.xlu1 %v1423_v13  ;;  %v2725_v51 = vpop.eup %2724  ;;  %v1420_v26 = vsel %vm624_vm8, %v3324_v49, 0.0  ;;  %2734 = vrcp.f32 %v1018_v3 }
 0x3c0   : > { %v1033_v53 = vmul.f32 %v2725_v51, %v1003_v41 }
 0x3c2   : > { %v1041_v29 = vsub.f32 2.0, %v1033_v53 }
 0x3c3   : > { %1421 = vadd.xlane.f32.xlu1 %v1420_v26 }
 0x3c4   : > { %v1049_v54 = vmul.f32 %v2725_v51, %v1041_v29 }
 0x3c6   : > { %v3329_v55 = vmul.f32 %v3254_v38, %v1049_v54  ;;  %v2727_v38 = vpop.eup %2726 }
 0x3c7   : > { %v2729_v6 = vpop.eup %2728  ;;  %v1034_v9 = vmul.f32 %v2727_v38, %v1006_v56 }
 0x3c8   : > { %2433 = vmatprep.mubr.msk.f32.mxu1 %vm624_vm8, %v3329_v55  ;;  %v1035_v10 = vmul.f32 %v2729_v6, %v1009_v58 }
 0x3c9   : > { %v1042_v47 = vsub.f32 2.0, %v1034_v9 }
 0x3ca   : > { %v1043_v17 = vsub.f32 2.0, %v1035_v10 }
 0x3cb   : > { %v1050_v16 = vmul.f32 %v2727_v38, %v1042_v47 }
 0x3cc   : > { %v1051_v30 = vmul.f32 %v2729_v6, %v1043_v17 }
 0x3cd   : > { %v3337_v37 = vmul.f32 %v3250_v35, %v1050_v16 }
 0x3ce   : > { %v3340_v41 = vmul.f32 %v3262_v28, %v1051_v30 }
 0x3d4   : > { %2568 = vrot.lane.b32.xlu1 %v3018_v43, %s2775_s24  ;;  %v2731_v43 = vpop.eup %2730 }
 0x3d5   : > { %v2733_v14 = vpop.eup %2732  ;;  %v1036_v15 = vmul.f32 %v2731_v43, %v1012_v60 }
 0x3d6   : > { %v2735_v50 = vpop.eup %2734  ;;  %v1037_v18 = vmul.f32 %v2733_v14, %v1015_v63 }
 0x3d7   : > { %v1044_v59 = vsub.f32 2.0, %v1036_v15  ;;  %v1038_v52 = vmul.f32 %v2735_v50, %v1018_v3 }
 0x3d8   : > { %v1045_v8 = vsub.f32 2.0, %v1037_v18 }
 0x3d9   : > { %v1024_v4 = vpop.xlane.xlu1 %1023  ;;  %v1052_v7 = vmul.f32 %v2731_v43, %v1044_v59  ;;  %v1046_v39 = vsub.f32 2.0, %v1038_v52 }
 0x3da   : > { %v1021_v40 = vpop.xlane.xlu0 %1020  ;;  %v1053_v13 = vmul.f32 %v2733_v14, %v1045_v8 }
 0x3db   : > { %2736 = vrcp.f32 %v1021_v40  ;;  %v3347_v26 = vmul.f32 %v3258_v34, %v1052_v7  ;;  %v1054_v35 = vmul.f32 %v2735_v50, %v1046_v39 }
 0x3dc   : > { %2738 = vrcp.f32 %v1024_v4  ;;  %v3350_v54 = vmul.f32 %v3270_v46, %v1053_v13 }
 0x3dd   : > { %v3357_v58 = vmul.f32 %v3268_v45, %v1054_v35 }
 0x3e5   : > { %v2737_v22 = vpop.eup %2736 }
 0x3e6   : > { %v2739_v27 = vpop.eup %2738  ;;  %v1039_v5 = vmul.f32 %v2737_v22, %v1021_v40 }
 0x3e7   : > { %v1040_v32 = vmul.f32 %v2739_v27, %v1024_v4 }
 0x3e8   : > { %v1047_v51 = vsub.f32 2.0, %v1039_v5 }
 0x3e9   : > { %v1048_v29 = vsub.f32 2.0, %v1040_v32 }
 0x3ea   : > { %v1055_v56 = vmul.f32 %v2737_v22, %v1047_v51 }
 0x3eb   : > { %v1056_v60 = vmul.f32 %v2739_v27, %v1048_v29 }
 0x3ec   : > { %v3360_v34 = vmul.f32 %v3280_v61, %v1055_v56 }
 0x3ed   : > { %v3367_v46 = vmul.f32 %v3278_v36, %v1056_v60 }
 0x3f3   : > { %v1407_v45 = vpop.xlane.xlu1 %1406 }
 0x3f4   : > { %v1404_v44 = vpop.xlane.xlu0 %1403 }
 0x3f5   : > { %2740 = vrcp.f32 %v1404_v44 }
 0x3f6   : > { %2742 = vrcp.f32 %v1407_v45 }
 0x3ff   : > { %v2741_v33 = vpop.eup %2740 }
 0x400   : > { %v1434_v53 = vmul.f32 %v2741_v33, %v1404_v44  ;;  %v2743_v36 = vpop.eup %2742 }
 0x401   : > { %v1435_v44 = vmul.f32 %v2743_v36, %v1407_v45 }
 0x402   : > { %v1442_v28 = vsub.f32 2.0, %v1434_v53 }
 0x403   : > { %v1443_v14 = vsub.f32 2.0, %v1435_v44 }
 0x404   : > { %v1450_v63 = vmul.f32 %v2741_v33, %v1442_v28 }
 0x406   : > { %v3370_v3 = vmul.f32 %v3290_v42, %v1450_v63 }
 0x40f   : > { %v1413_v61 = vpop.xlane.xlu1 %1412 }
 0x410   : > { %v3334_v12 = vpop.xlane.xlu0 %1409 }
 0x411   : > { %2744 = vrcp.f32 %v3334_v12 }
 0x412   : > { %2746 = vrcp.f32 %v1413_v61 }
 0x414   : > { %v2564_v19 = vpop.permute.xlu0 %2563 }
 0x415   : > { %v2566_v24 = vunpack.i.h.bf16 %v2564_v19  ;;  %v2565_v57 = vunpack.i.l.bf16 %v2564_v19 }
 0x417   : > { %v2491_v23 = vpack.c.bf16 %v2566_v24, %v2565_v57  ;;  %v1451_v24 = vmul.f32 %v2743_v36, %v1443_v14  ;;  %v2013_v14 = vld [vmem:[%s3808_s4 + $0x10] sm:$0xff] }
 0x419   : > { %2492 = vmatprep.subr.bf16.mxu1 %v2491_v23  ;;  %v3379_v30 = vmul.f32 %v3288_v11, %v1451_v24  ;;  %v2017_v24 = vld [vmem:[%s3808_s4 + $0x30] sm:$0xff] }
 0x41a   : > { %2494 = vmatpush3.bf16.msra.mxu1 %v2491_v23 }
 0x41b   : > { %v2745_v42 = vpop.eup %2744 }
 0x41c   : > { %v2747_v6 = vpop.eup %2746  ;;  %v1436_v9 = vmul.f32 %v2745_v42, %v3334_v12 }
 0x41d   : > { %2434 = vmatmul.mubr.msk.f32.vlgmr.msra.gmra.mrb[16].mxu1 %vm624_vm8, %v3337_v37  ;;  %v1437_v47 = vmul.f32 %v2747_v6, %v1413_v61 }
 0x41e   : > { %2436 = vmatprep.mubr.msk.f32.mxu1 %vm624_vm8, %v3340_v41  ;;  %v1444_v50 = vsub.f32 2.0, %v1436_v9 }
 0x41f   : > { %v1445_v57 = vsub.f32 2.0, %v1437_v47  ;;  %v2776_v47 = vmov 0.0|0.0  }
 0x420   : > { %v1452_v23 = vmul.f32 %v2745_v42, %v1444_v50  ;;  %2505 = vmatprep.subr.bf16.mxu0 %v2776_v47  ;;  %v2014_v50 = vld [vmem:[%s3808_s4 + $0x18] sm:$0xff] }
 0x421   : > { %2437 = vmatmul.mubr.msk.f32.gmra.mrb[18].mxu1 %vm624_vm8, %v3347_v26  ;;  %v1453_v8 = vmul.f32 %v2747_v6, %v1445_v57  ;;  %v2018_v57 = vld [vmem:[%s3808_s4 + $0x38] sm:$0xff] }
 0x422   : > { %2439 = vmatprep.mubr.msk.f32.mxu1 %vm624_vm8, %v3350_v54  ;;  %v3382_v7 = vmul.f32 %v3300_v21, %v1452_v23  ;;  %v2020_v23 = vld [vmem:[%s3808_s4 + $0x48] sm:$0xff] }
 0x423   : > { %v3389_v51 = vmul.f32 %v3298_v20, %v1453_v8 }
 0x425   : > { %2440 = vmatmul.mubr.msk.f32.gmra.mrb[20].mxu1 %vm624_vm8, %v3357_v58 }
 0x426   : > { %2442 = vmatprep.mubr.msk.f32.mxu1 %vm624_vm8, %v3360_v34 }
 0x429   : > { %2443 = vmatmul.mubr.msk.f32.gmra.mrb[22].mxu1 %vm624_vm8, %v3367_v46 }
 0x42a   : > { %2465 = vmatprep.mubr.msk.f32.mxu1 %vm624_vm8, %v3370_v3 }
 0x42f   : > { %v1419_v40 = vpop.xlane.xlu1 %1418 }
 0x433   : > { %v1416_v4 = vpop.xlane.xlu1 %1415 }
 0x434   : > { %2748 = vrcp.f32 %v1416_v4 }
 0x435   : > { %2750 = vrcp.f32 %v1419_v40 }
 0x43e   : > { %v2749_v10 = vpop.eup %2748 }
 0x43f   : > { %v2751_v15 = vpop.eup %2750  ;;  %v1438_v17 = vmul.f32 %v2749_v10, %v1416_v4 }
 0x440   : > { %v1439_v16 = vmul.f32 %v2751_v15, %v1419_v40 }
 0x441   : > { %v1446_v27 = vsub.f32 2.0, %v1438_v17  ;;  %v2509_v17 = vpack.c.bf16 %v2014_v50, %v2013_v14 }
 0x442   : > { %v1447_v5 = vsub.f32 2.0, %v1439_v16  ;;  %v2515_v16 = vpack.c.bf16 %v2018_v57, %v2017_v24 }
 0x443   : > { %v1454_v39 = vmul.f32 %v2749_v10, %v1446_v27  ;;  %v2012_v10 = vld [vmem:[%s3808_s4 + $0x8] sm:$0xff] }
 0x444   : > { %v1455_v11 = vmul.f32 %v2751_v15, %v1447_v5 }
 0x445   : > { %v3392_v35 = vmul.f32 %v3314_v31, %v1454_v39 }
 0x446   : > { %v3399_v21 = vmul.f32 %v3310_v25, %v1455_v11 }
 0x44c   : > { %v1425_v38 = vpop.xlane.xlu1 %1424 }
 0x44d   : > { %2752 = vrcp.f32 %v1425_v38 }
 0x450   : > { %v1422_v43 = vpop.xlane.xlu1 %1421 }
 0x451   : > { %2754 = vrcp.f32 %v1422_v43 }
 0x454   : > { %v2569_v18 = vpop.permute.xlu1 %2568 }
 0x455   : > { %v2571_v19 = vunpack.i.h.bf16 %v2569_v18  ;;  %v2570_v22 = vunpack.i.l.bf16 %v2569_v18  ;;  %v2015_v18 = vld [vmem:[%s3808_s4 + $0x20] sm:$0xff] }
 0x457   : > { %v2501_v59 = vpack.c.bf16 %v2571_v19, %v2570_v22  ;;  %v2753_v52 = vpop.eup %2752  ;;  %v2016_v19 = vld [vmem:[%s3808_s4 + $0x28] sm:$0xff] }
 0x458   : > { %v1441_v33 = vmul.f32 %v2753_v52, %v1425_v38  ;;  %v2512_v22 = vpack.c.bf16 %v2016_v19, %v2015_v18 }
 0x459   : > { %2502 = vmatprep.subr.bf16.mxu1 %v2501_v59 }
 0x45a   : > { %2504 = vmatpush3.bf16.msra.mxu1 %v2501_v59  ;;  %v1449_v53 = vsub.f32 2.0, %v1441_v33 }
 0x45b   : > { %v2755_v12 = vpop.eup %2754 }
 0x45c   : > { %v1440_v32 = vmul.f32 %v2755_v12, %v1422_v43  ;;  %v1457_v56 = vmul.f32 %v2753_v52, %v1449_v53  ;;  %v2011_v43 = vld [vmem:[%s3808_s4] sm:$0xff] }
 0x45d   : > { %2466 = vmatmul.mubr.msk.f32.vlgmr.msra.gmra.mrb[24].mxu1 %vm624_vm8, %v3379_v30  ;;  %v2506_v15 = vpack.c.bf16 %v2012_v10, %v2011_v43  ;;  %v2019_v52 = vld [vmem:[%s3808_s4 + $0x40] sm:$0xff] }
 0x45e   : > { %v1448_v13 = vsub.f32 2.0, %v1440_v32  ;;  %2468 = vmatprep.mubr.msk.f32.mxu1 %vm624_vm8, %v3382_v7  ;;  %v3409_v20 = vmul.f32 %v3320_v62, %v1457_v56 }
 0x45f   : > { %2507 = vmatpush1.bf16.msra.mxu0 %v2506_v15 }
 0x460   : > { %v1456_v29 = vmul.f32 %v2755_v12, %v1448_v13  ;;  %2508 = vmatprep.subr.bf16.mxu0 %v2776_v47  ;;  %v2518_v12 = vpack.c.bf16 %v2020_v23, %v2019_v52 }
 0x461   : > { %2469 = vmatmul.mubr.msk.f32.gmra.mrb[26].mxu1 %vm624_vm8, %v3389_v51 }
 0x462   : > { %2471 = vmatprep.mubr.msk.f32.mxu1 %vm624_vm8, %v3392_v35  ;;  %v3402_v28 = vmul.f32 %v3324_v49, %v1456_v29 }
 0x463   : > { %2510 = vmatpush1.bf16.msra.mxu0 %v2509_v17 }
 0x464   : > { %2511 = vmatprep.subr.bf16.mxu0 %v2776_v47 }
 0x465   : > { %2472 = vmatmul.mubr.msk.f32.gmra.mrb[28].mxu1 %vm624_vm8, %v3399_v21 }
 0x466   : > { %2474 = vmatprep.mubr.msk.f32.mxu1 %vm624_vm8, %v3402_v28 }
 0x467   : > { %2513 = vmatpush1.bf16.msra.mxu0 %v2512_v22 }
 0x468   : > { %2514 = vmatprep.subr.bf16.mxu0 %v2776_v47 }
 0x469   : > { %2475 = vmatmul.mubr.msk.f32.gmra.mrb[30].mxu1 %vm624_vm8, %v3409_v20 }
 0x46b   : > { %2516 = vmatpush1.bf16.msra.mxu0 %v2515_v16 }
 0x46c   : > { %2517 = vmatprep.subr.bf16.mxu0 %v2776_v47 }
 0x46f   : > { %2519 = vmatpush1.bf16.msra.mxu0 %v2518_v12 }
 0x470   : > { %2520 = vmatprep.subr.bf16.mxu0 %v2776_v47 }
 0x4f0   : > { %v2435_v31 = vpop.f32.mrb[16].mxu1 }
 0x4f1   : > { %v1161_v60 = vpop.f32.mrb[17].mxu1 }
 0x4f4   : > { %v3413_v25 = vpop.f32.mrb[18].mxu1 }
 0x4f5   : > { %v3415_v63 = vpop.f32.mrb[19].mxu1 }
 0x4f8   : > { %v3417_v49 = vpop.f32.mrb[20].mxu1 }
 0x4f9   : > { %v3419_v45 = vpop.f32.mrb[21].mxu1 }
 0x4fc   : > { %v3421_v61 = vpop.f32.mrb[22].mxu1 }
 0x4fd   : > { %v3423_v40 = vpop.f32.mrb[23].mxu1 }
 0x530   : > { %v2467_v4 = vpop.f32.mrb[24].mxu1 }
 0x531   : > { %v1562_v62 = vpop.f32.mrb[25].mxu1 }
 0x532   : > { %1649 = vrot.lane.b32.xlu0 %v1562_v62, %s2765_s23 }
 0x534   : > { %v2470_v36 = vpop.f32.mrb[26].mxu1 }
 0x535   : > { %v1572_v38 = vpop.f32.mrb[27].mxu1 }
 0x536   : > { %1651 = vrot.lane.b32.xlu0 %v2467_v4, %s2765_s23 }
 0x538   : > { %v2473_v42 = vpop.f32.mrb[28].mxu1 }
 0x539   : > { %v1582_v44 = vpop.f32.mrb[29].mxu1 }
 0x53a   : > { %1653 = vrot.lane.b32.xlu0 %v1572_v38, %s2765_s23  ;;  %1657 = vrot.lane.b32.xlu1 %v1582_v44, %s2765_s23  ;;  %v2022_v38 = vld [vmem:[%s3808_s4 + $0x58] sm:$0xff] }
 0x53c   : > { %v2476_v6 = vpop.f32.mrb[30].mxu1 }
 0x53d   : > { %v1592_v9 = vpop.f32.mrb[31].mxu1 }
 0x53e   : > { %1655 = vrot.lane.b32.xlu0 %v2470_v36, %s2765_s23  ;;  %1661 = vrot.lane.b32.xlu1 %v1592_v9, %s2765_s23  ;;  %v2021_v36 = vld [vmem:[%s3808_s4 + $0x50] sm:$0xff] }
 0x53f   : > { %v2521_v18 = vpack.c.bf16 %v2022_v38, %v2021_v36 }
 0x541   : > { %2522 = vmatpush1.bf16.msra.mxu0 %v2521_v18 }
 0x542   : > { %1659 = vrot.lane.b32.xlu0 %v2473_v42, %s2765_s23  ;;  %2523 = vmatprep.subr.bf16.mxu0 %v2776_v47 }
 0x546   : > { %1663 = vrot.lane.b32.xlu0 %v2476_v6, %s2765_s23  ;;  %s2780_s23 = smov 96  }
 0x5a4   : > { %v1650_v59 = vpop.permute.xlu0 %1649 }
 0x5a5   : > { %v1673_v27 = vsel %vm606_vm4, %v1161_v60, %v1650_v59 }
 0x5a6   : > { %v1689_v8 = vrot.slane %v1673_v27, 7 }
 0x5a8   : > { %v3470_v5 = vsel %vm317_vm0, 0.0, %v1689_v8  ;;  %v1713_v33 = vsel %vm317_vm0, %v1689_v8, 0.0  ;;  %v1652_v39 = vpop.permute.xlu0 %1651 }
 0x5a9   : > { %v1735_v32 = vrot.slane %v3470_v5, 1  ;;  %v1736_v13 = vrot.slane %v1713_v33, 1  ;;  %v1674_v11 = vsel %vm606_vm4, %v2435_v31, %v1652_v39  ;;  %v1780_v56 = vrot.slane %v3470_v5, 2 }
 0x5aa   : > { %v1690_v53 = vrot.slane %v1674_v11, 7  ;;  %v1781_v42 = vrot.slane %v1713_v33, 2 }
 0x5ab   : > { %v1737_v29 = vsel %vm349_vm2, %v1735_v32, %v1736_v13 }
 0x5ac   : > { %v1654_v60 = vpop.permute.xlu0 %1653  ;;  %v1658_v4 = vpop.permute.xlu1 %1657  ;;  %v2577_v62 = vpack.i.bf16 %v1737_v29, %v2828_v2  ;;  %v3486_v31 = vsel %vm317_vm0, 0.0, %v1690_v53  ;;  %v1714_v44 = vsel %vm317_vm0, %v1690_v53, 0.0  ;;  %v1782_v27 = vsel %vm397_vm1, %v1780_v56, %v1781_v42 }
 0x5ad   : > { %v1675_v6 = vsel %vm606_vm4, %v3415_v63, %v1654_v60  ;;  %v1738_v9 = vrot.slane %v3486_v31, 1  ;;  %v1739_v43 = vrot.slane %v1714_v44, 1  ;;  %v1784_v10 = vrot.slane %v1714_v44, 2 }
 0x5ae   : > { %v1691_v14 = vrot.slane %v1675_v6, 7  ;;  %2578 = vrot.lane.b32.xlu1 %v2577_v62, %s2768_s30  ;;  %v1677_v15 = vsel %vm606_vm4, %v3419_v45, %v1658_v4  ;;  %v2572_v50 = vpack.i.bf16 %v3486_v31, %v3470_v5  ;;  %v1783_v17 = vrot.slane %v3486_v31, 2 }
 0x5af   : > { %v1740_v45 = vsel %vm349_vm2, %v1738_v9, %v1739_v43  ;;  %v1693_v16 = vrot.slane %v1677_v15, 7 }
 0x5b0   : > { %v3499_v19 = vsel %vm317_vm0, 0.0, %v1691_v14  ;;  %v3502_v63 = vsel %vm317_vm0, %v1691_v14, 0.0  ;;  %v1656_v22 = vpop.permute.xlu0 %1655  ;;  %2573 = vrot.lane.b32.xlu0 %v2572_v50, %s2777_s7  ;;  %v1785_v59 = vsel %vm397_vm1, %v1783_v17, %v1784_v10  ;;  %v1662_v23 = vpop.permute.xlu1 %1661  ;;  %v2582_v13 = vpack.i.bf16 %v1740_v45, %v1737_v29 }
 0x5b1   : > { %v1741_v24 = vrot.slane %v3499_v19, 1  ;;  %v1742_v57 = vrot.slane %v3502_v63, 1  ;;  %v1676_v52 = vsel %vm606_vm4, %v3413_v25, %v1656_v22  ;;  %2324 = vmatprep.mubr.msk.f32.mxu0 %vm624_vm8, %v1785_v59  ;;  %v2592_v8 = vpack.i.bf16 %v1785_v59, %v1782_v27 }
 0x5b2   : > { %v1692_v39 = vrot.slane %v1676_v52, 7  ;;  %v1679_v32 = vsel %vm606_vm4, %v3423_v40, %v1662_v23  ;;  %v3518_v11 = vsel %vm317_vm0, 0.0, %v1693_v16  ;;  %v3521_v25 = vsel %vm317_vm0, %v1693_v16, 0.0  ;;  %2583 = vrot.lane.b32.xlu1 %v2582_v13, %s2779_s9 }
 0x5b3   : > { %v1743_v12 = vsel %vm349_vm2, %v1741_v24, %v1742_v57  ;;  %v1695_v53 = vrot.slane %v1679_v32, 7  ;;  %v2597_v38 = vpack.i.bf16 %v3499_v19, %v3486_v31  ;;  %v1747_v43 = vrot.slane %v3518_v11, 1 }
 0x5b4   : > { %v1660_v33 = vpop.permute.xlu0 %1659  ;;  %2588 = vrot.lane.b32.xlu0 %v2592_v8, %s2778_s8  ;;  %v3527_v60 = vsel %vm317_vm0, 0.0, %v1692_v39  ;;  %v1716_v4 = vsel %vm317_vm0, %v1692_v39, 0.0  ;;  %v2612_v29 = vpack.i.bf16 %v1743_v12, %v1740_v45  ;;  %v1748_v10 = vrot.slane %v3521_v25, 1 }
 0x5b5   : > { %v1678_v56 = vsel %vm606_vm4, %v3417_v49, %v1660_v33  ;;  %v1744_v62 = vrot.slane %v3527_v60, 1  ;;  %v1745_v36 = vrot.slane %v1716_v4, 1  ;;  %v3535_v42 = vsel %vm317_vm0, 0.0, %v1695_v53 }
 0x5b6   : > { %v1694_v40 = vrot.slane %v1678_v56, 7  ;;  %v3538_v49 = vsel %vm317_vm0, %v1695_v53, 0.0  ;;  %v1789_v15 = vrot.slane %v3527_v60, 2  ;;  %v1790_v50 = vrot.slane %v1716_v4, 2  ;;  %2593 = vrot.lane.b32.xlu1 %v2592_v8, %s2772_s20 }
 0x5b7   : > { %v1746_v14 = vsel %vm349_vm2, %v1744_v62, %v1745_v36  ;;  %v1753_v22 = vrot.slane %v3535_v42, 1  ;;  %v1754_v24 = vrot.slane %v3538_v49, 1  ;;  %v2602_v59 = vpack.i.bf16 %v3527_v60, %v3499_v19  ;;  %v2025_v62 = vld [vmem:[%s3808_s4 + $0x70] sm:$0xff]  ;;  %v2026_v36 = vld [vmem:[%s3808_s4 + $0x78] sm:$0xff] }
 0x5b8   : > { %v3541_v44 = vsel %vm317_vm0, 0.0, %v1694_v40  ;;  %v3544_v6 = vsel %vm317_vm0, %v1694_v40, 0.0  ;;  %v1664_v9 = vpop.permute.xlu0 %1663  ;;  %2598 = vrot.lane.b32.xlu0 %v2597_v38, %s2780_s23  ;;  %v2617_v52 = vpack.i.bf16 %v1746_v14, %v1743_v12  ;;  %v1786_v23 = vrot.slane %v3499_v19, 2  ;;  %v2023_v12 = vld [vmem:[%s3808_s4 + $0x60] sm:$0xff] }
 0x5b9   : > { %v1750_v17 = vrot.slane %v3541_v44, 1  ;;  %v1751_v18 = vrot.slane %v3544_v6, 1  ;;  %v1680_v57 = vsel %vm606_vm4, %v3421_v61, %v1664_v9  ;;  %v1787_v27 = vrot.slane %v3502_v63, 2  ;;  %v2024_v63 = vld [vmem:[%s3808_s4 + $0x68] sm:$0xff] }
 0x5ba   : > { %v1696_v16 = vrot.slane %v1680_v57, 7  ;;  %v1749_v8 = vsel %vm349_vm2, %v1747_v43, %v1748_v10  ;;  %2603 = vrot.lane.b32.xlu1 %v2602_v59, %s2777_s7  ;;  %v3577_v13 = vsel %vm397_vm1, %v1789_v15, %v1790_v50  ;;  %v1755_v56 = vsel %vm349_vm2, %v1753_v22, %v1754_v24  ;;  %v2027_v50 = vld [vmem:[%s3808_s4 + $0x80] sm:$0xff] }
 0x5bb   : > { %v1752_v45 = vsel %vm349_vm2, %v1750_v17, %v1751_v18  ;;  %v2647_v61 = vpack.i.bf16 %v1749_v8, %v1746_v14  ;;  %v3589_v38 = vsel %vm397_vm1, %v1786_v23, %v1787_v27  ;;  %v2524_v9 = vpack.c.bf16 %v2024_v63, %v2023_v12 }
 0x5bc   : > { %2613 = vrot.lane.b32.xlu0 %v2612_v29, %s2768_s30  ;;  %v3566_v33 = vsel %vm317_vm0, %v1696_v16, 0.0  ;;  %v2652_v39 = vpack.i.bf16 %v1752_v45, %v1749_v8  ;;  %v1712_v53 = vsel %vm317_vm0, 0.0, %v1696_v16  ;;  %v2682_v40 = vpack.i.bf16 %v1755_v56, %v1752_v45 }
 0x5bd   : > { %v1849_v32 = vrot.slane %v3566_v33, 1  ;;  %v1848_v4 = vrot.slane %v1712_v53, 1  ;;  %v2627_v43 = vpack.i.bf16 %v3577_v13, %v3589_v38  ;;  %2525 = vmatpush1.bf16.msra.mxu0 %v2524_v9  ;;  %v2527_v15 = vpack.c.bf16 %v2026_v36, %v2025_v62 }
 0x5be   : > { %2608 = vrot.lane.b32.xlu1 %v2612_v29, %s2774_s19  ;;  %2526 = vmatprep.subr.bf16.mxu0 %v2776_v47  ;;  %v2028_v29 = vld [vmem:[%s3808_s4 + $0x88] sm:$0xff]  ;;  %v2637_v17 = vpack.i.bf16 %v3541_v44, %v3518_v11  ;;  %v1795_v18 = vrot.slane %v3541_v44, 2  ;;  %v1796_v22 = vrot.slane %v3544_v6, 2  ;;  %v2632_v24 = vpack.i.bf16 %v3518_v11, %v3527_v60 }
 0x5bf   : > { %v1850_v10 = vsel %vm349_vm2, %v1848_v4, %v1849_v32  ;;  %v2530_v57 = vpack.c.bf16 %v2028_v29, %v2027_v50  ;;  %v1792_v45 = vrot.slane %v3518_v11, 2  ;;  %v1793_v16 = vrot.slane %v3521_v25, 2 }
 0x5c0   : > { %2618 = vrot.lane.b32.xlu0 %v2617_v52, %s2779_s9  ;;  %v2687_v14 = vpack.i.bf16 %v1850_v10, %v1755_v56  ;;  %v3616_v59 = vsel %vm397_vm1, %v1795_v18, %v1796_v22  ;;  %v2667_v25 = vpack.i.bf16 %v3535_v42, %v3541_v44  ;;  %v2672_v52 = vpack.i.bf16 %v1712_v53, %v3535_v42 }
 0x5c1   : > { %2528 = vmatpush1.bf16.msra.mxu0 %v2527_v15  ;;  %v3620_v6 = vsel %vm397_vm1, %v1792_v45, %v1793_v16  ;;  %v1799_v23 = vrot.slane %v3538_v49, 2  ;;  %v1798_v27 = vrot.slane %v3535_v42, 2  ;;  %vm1984_vm0 = vcmask 654336  }
 0x5c2   : > { %2623 = vrot.lane.b32.xlu1 %v2627_v43, %s2778_s8  ;;  %2529 = vmatprep.subr.bf16.mxu0 %v2776_v47  ;;  %v2657_v47 = vpack.i.bf16 %v3616_v59, %v3620_v6  ;;  %vm2002_vm2 = vcmask 916480  }
 0x5c3   : > { %v3641_v8 = vsel %vm397_vm1, %v1798_v27, %v1799_v23 }
 0x5c4   : > { %2628 = vrot.lane.b32.xlu0 %v2627_v43, %s2772_s20 }
 0x5c5   : > { %2531 = vmatpush1.bf16.msra.mxu0 %v2530_v57 }
 0x5c6   : > { %2633 = vrot.lane.b32.xlu1 %v2632_v24, %s2780_s23 }
 0x5c8   : > { %2638 = vrot.lane.b32.xlu0 %v2637_v17, %s2777_s7 }
 0x5ca   : > { %2648 = vrot.lane.b32.xlu1 %v2647_v61, %s2768_s30 }
 0x5cc   : > { %2643 = vrot.lane.b32.xlu0 %v2647_v61, %s2774_s19  ;;  %v1876_v61 = vrot.slane %v3566_v33, 2 }
 0x5ce   : > { %2653 = vrot.lane.b32.xlu1 %v2652_v39, %s2779_s9  ;;  %v1875_v39 = vrot.slane %v1712_v53, 2 }
 0x5d0   : > { %2658 = vrot.lane.b32.xlu0 %v2657_v47, %s2778_s8  ;;  %v3649_v49 = vsel %vm397_vm1, %v1875_v39, %v1876_v61  ;;  %vm1993_vm1 = vcmask 785408  }
 0x5d2   : > { %2663 = vrot.lane.b32.xlu1 %v2657_v47, %s2772_s20 }
 0x5d4   : > { %2668 = vrot.lane.b32.xlu0 %v2667_v25, %s2780_s23 }
 0x5d6   : > { %1914 = vrot.lane.b32.xlu1 %v1712_v53, %s2780_s23 }
 0x5d8   : > { %1938 = vrot.lane.b32.xlu0 %v1850_v10, %s2774_s19 }
 0x5da   : > { %2673 = vrot.lane.b32.xlu1 %v2672_v52, %s2777_s7 }
 0x5dc   : > { %2683 = vrot.lane.b32.xlu0 %v2682_v40, %s2768_s30 }
 0x5de   : > { %2678 = vrot.lane.b32.xlu1 %v2682_v40, %s2774_s19 }
 0x5e0   : > { %2688 = vrot.lane.b32.xlu0 %v2687_v14, %s2779_s9 }
 0x5e2   : > { %1890 = vrot.lane.b32.xlu1 %v3641_v8, %s2778_s8 }
 0x5e4   : > { %1813 = vrot.lane.b32.xlu0 %v3641_v8, %s2772_s20 }
 0x5e6   : > { %1892 = vrot.lane.b32.xlu1 %v3649_v49, %s2778_s8 }
 0x5e8   : > { %1916 = vrot.lane.b32.xlu0 %v2764_v0, %s2780_s23 }
 0x5ea   : > { %1940 = vrot.lane.b32.xlu1 %v2828_v2, %s2774_s19  ;;  %s3749_s19 = scalar_lea.vmem %s3810_s6, %s2837_s25 }
 0x5ec   : > { %1601 = vrot.lane.b32.xlu0 %v3370_v3, %s2768_s30 }
 0x5ee   : > { %1603 = vrot.lane.b32.xlu1 %v3379_v30, %s2768_s30 }
 0x5f0   : > { %1605 = vrot.lane.b32.xlu0 %v3382_v7, %s2768_s30 }
 0x5f2   : > { %1607 = vrot.lane.b32.xlu1 %v3389_v51, %s2768_s30 }
 0x5f4   : > { %1609 = vrot.lane.b32.xlu0 %v3392_v35, %s2768_s30 }
 0x5f6   : > { %1611 = vrot.lane.b32.xlu1 %v3399_v21, %s2768_s30 }
 0x5f8   : > { %1613 = vrot.lane.b32.xlu0 %v3402_v28, %s2768_s30 }
 0x5fa   : > { %1615 = vrot.lane.b32.xlu1 %v3409_v20, %s2768_s30 }
 0x620   : > { %v2579_v0 = vpop.permute.xlu1 %2578 }
 0x621   : > { %v2580_v3 = vunpack.i.l.bf16 %v2579_v0  ;;  %v2581_v35 = vunpack.i.h.bf16 %v2579_v0 }
 0x622   : > { %v2574_v2 = vpop.permute.xlu0 %2573 }
 0x623   : > { %v1950_v33 = vsel %vm624_vm8, 0.0, %v2580_v3  ;;  %v2575_v32 = vunpack.i.l.bf16 %v2574_v2  ;;  %v1951_v21 = vsel %vm624_vm8, %v3470_v5, %v2581_v35  ;;  %v2576_v53 = vunpack.i.h.bf16 %v2574_v2 }
 0x624   : > { %v2584_v30 = vpop.permute.xlu1 %2583  ;;  %v1958_v51 = vsel %vm660_vm12, %v1950_v33, %v3099_v48 }
 0x625   : > { %v2585_v20 = vunpack.i.l.bf16 %v2584_v30  ;;  %v1967_v56 = vsel %vm1966_vm14, %v1958_v51, %v2575_v32  ;;  %v2586_v48 = vunpack.i.h.bf16 %v2584_v30 }
 0x626   : > { %v2589_v7 = vpop.permute.xlu0 %2588 }
 0x627   : > { %v2590_v36 = vunpack.i.l.bf16 %v2589_v7  ;;  %v1976_v43 = vsel %vm1975_vm15, %v1967_v56, %v2585_v20  ;;  %v2591_v29 = vunpack.i.h.bf16 %v2589_v7 }
 0x628   : > { %v2594_v28 = vpop.permute.xlu1 %2593 }
 0x629   : > { %v2595_v63 = vunpack.i.l.bf16 %v2594_v28  ;;  %v1985_v17 = vsel %vm1984_vm0, %v1976_v43, %v2590_v36  ;;  %v2596_v45 = vunpack.i.h.bf16 %v2594_v28 }
 0x62a   : > { %v2599_v12 = vpop.permute.xlu0 %2598 }
 0x62b   : > { %v1959_v4 = vsel %vm660_vm12, %v1951_v21, %v2595_v63  ;;  %v2600_v10 = vunpack.i.l.bf16 %v2599_v12  ;;  %v2601_v23 = vunpack.i.h.bf16 %v2599_v12 }
 0x62c   : > { %v2604_v62 = vpop.permute.xlu1 %2603  ;;  %v1968_v9 = vsel %vm1966_vm14, %v1959_v4, %v2576_v53 }
 0x62d   : > { %v1977_v50 = vsel %vm1975_vm15, %v1968_v9, %v2586_v48  ;;  %v1994_v24 = vsel %vm1993_vm1, %v1985_v17, %v2600_v10  ;;  %v2605_v2 = vunpack.i.l.bf16 %v2604_v62 }
 0x62e   : > { %v2614_v40 = vpop.permute.xlu0 %2613  ;;  %v1986_v52 = vsel %vm1984_vm0, %v1977_v50, %v2591_v29 }
 0x62f   : > { %v2615_v14 = vunpack.i.l.bf16 %v2614_v40  ;;  %v2616_v18 = vunpack.i.h.bf16 %v2614_v40  ;;  %v1995_v7 = vsel %vm1993_vm1, %v1986_v52, %v2601_v23 }
 0x630   : > { %v2609_v15 = vpop.permute.xlu1 %2608 }
 0x631   : > { %v2610_v22 = vunpack.i.l.bf16 %v2609_v15  ;;  %v1952_v57 = vsel %vm624_vm8, %v3486_v31, %v2615_v14  ;;  %v2611_v16 = vunpack.i.h.bf16 %v2609_v15  ;;  %v1953_v39 = vsel %vm624_vm8, %v3499_v19, %v2616_v18 }
 0x632   : > { %v2619_v5 = vpop.permute.xlu0 %2618  ;;  %v1960_v0 = vsel %vm660_vm12, %v1952_v57, %v2596_v45  ;;  %v2606_v31 = vunpack.i.h.bf16 %v2604_v62 }
 0x633   : > { %v2003_v47 = vsel %vm2002_vm2, %v1994_v24, %v2610_v22  ;;  %v2620_v30 = vunpack.i.l.bf16 %v2619_v5  ;;  %v2004_v33 = vsel %vm2002_vm2, %v1995_v7, %v2611_v16  ;;  %v1969_v32 = vsel %vm1966_vm14, %v1960_v0, %v2605_v2 }
 0x634   : > { %v2624_v27 = vpop.permute.xlu1 %2623  ;;  %2110 = vmatmul.mubr.f32.vlgmr.msra.gmra.mrb[8].mxu0 %v2003_v47  ;;  %v2621_v28 = vunpack.i.h.bf16 %v2619_v5 }
 0x635   : > { %2325 = vmatprep.mubr.msk.f32.mxu0 %vm624_vm8, %v3589_v38  ;;  %v2625_v12 = vunpack.i.l.bf16 %v2624_v27  ;;  %v1978_v38 = vsel %vm1975_vm15, %v1969_v32, %v2620_v30  ;;  %v2626_v53 = vunpack.i.h.bf16 %v2624_v27 }
 0x636   : > { %v2629_v25 = vpop.permute.xlu0 %2628 }
 0x637   : > { %v2630_v61 = vunpack.i.l.bf16 %v2629_v25  ;;  %v1987_v40 = vsel %vm1984_vm0, %v1978_v38, %v2625_v12  ;;  %v2631_v24 = vunpack.i.h.bf16 %v2629_v25 }
 0x638   : > { %v2634_v51 = vpop.permute.xlu1 %2633  ;;  %2115 = vmatmul.mubr.f32.gmra.mrb[10].mxu0 %v2004_v33 }
 0x639   : > { %v1961_v3 = vsel %vm660_vm12, %v1953_v39, %v2630_v61  ;;  %v2635_v63 = vunpack.i.l.bf16 %v2634_v51  ;;  %2326 = vmatprep.mubr.msk.f32.mxu0 %vm624_vm8, %v3577_v13  ;;  %v2636_v62 = vunpack.i.h.bf16 %v2634_v51 }
 0x63a   : > { %v2639_v35 = vpop.permute.xlu0 %2638  ;;  %v1970_v19 = vsel %vm1966_vm14, %v1961_v3, %v2606_v31 }
 0x63b   : > { %v1979_v20 = vsel %vm1975_vm15, %v1970_v19, %v2621_v28  ;;  %v1996_v36 = vsel %vm1993_vm1, %v1987_v40, %v2635_v63  ;;  %v2640_v47 = vunpack.i.l.bf16 %v2639_v35  ;;  %v2641_v23 = vunpack.i.h.bf16 %v2639_v35 }
 0x63c   : > { %v2649_v56 = vpop.permute.xlu1 %2648  ;;  %v1988_v43 = vsel %vm1984_vm0, %v1979_v20, %v2626_v53 }
 0x63d   : > { %v2650_v14 = vunpack.i.l.bf16 %v2649_v56  ;;  %v1997_v5 = vsel %vm1993_vm1, %v1988_v43, %v2636_v62  ;;  %v2651_v29 = vunpack.i.h.bf16 %v2649_v56 }
 0x63e   : > { %v2644_v21 = vpop.permute.xlu0 %2643 }
 0x63f   : > { %v2645_v4 = vunpack.i.l.bf16 %v2644_v21  ;;  %v2646_v9 = vunpack.i.h.bf16 %v2644_v21  ;;  %v1954_v18 = vsel %vm624_vm8, %v3527_v60, %v2650_v14 }
 0x640   : > { %v2654_v13 = vpop.permute.xlu1 %2653  ;;  %v1962_v45 = vsel %vm660_vm12, %v1954_v18, %v2631_v24 }
 0x641   : > { %v2005_v48 = vsel %vm2002_vm2, %v1996_v36, %v2645_v4  ;;  %v2006_v15 = vsel %vm2002_vm2, %v1997_v5, %v2646_v9  ;;  %v2655_v27 = vunpack.i.l.bf16 %v2654_v13  ;;  %v1971_v61 = vsel %vm1966_vm14, %v1962_v45, %v2640_v47 }
 0x642   : > { %v2659_v10 = vpop.permute.xlu0 %2658  ;;  %2120 = vmatmul.mubr.f32.gmra.mrb[12].mxu0 %v2005_v48  ;;  %v2656_v25 = vunpack.i.h.bf16 %v2654_v13 }
 0x643   : > { %2327 = vmatprep.mubr.msk.f32.mxu0 %vm624_vm8, %v3620_v6  ;;  %v1955_v6 = vsel %vm624_vm8, %v3518_v11, %v2651_v29  ;;  %v2660_v31 = vunpack.i.l.bf16 %v2659_v10  ;;  %v1980_v11 = vsel %vm1975_vm15, %v1971_v61, %v2655_v27  ;;  %v2661_v19 = vunpack.i.h.bf16 %v2659_v10 }
 0x644   : > { %v2664_v17 = vpop.permute.xlu1 %2663 }
 0x645   : > { %v2665_v22 = vunpack.i.l.bf16 %v2664_v17  ;;  %v2666_v2 = vunpack.i.h.bf16 %v2664_v17  ;;  %v1989_v21 = vsel %vm1984_vm0, %v1980_v11, %v2660_v31 }
 0x646   : > { %v2669_v50 = vpop.permute.xlu0 %2668  ;;  %2125 = vmatmul.mubr.f32.gmra.mrb[14].mxu0 %v2006_v15 }
 0x647   : > { %2328 = vmatprep.mubr.msk.f32.mxu0 %vm624_vm8, %v3616_v59  ;;  %v1963_v52 = vsel %vm660_vm12, %v1955_v6, %v2665_v22  ;;  %v2670_v3 = vunpack.i.l.bf16 %v2669_v50  ;;  %v2671_v9 = vunpack.i.h.bf16 %v2669_v50 }
 0x648   : > { %v1915_v16 = vpop.permute.xlu1 %1914  ;;  %v1972_v39 = vsel %vm1966_vm14, %v1963_v52, %v2641_v23 }
 0x649   : > { %v1981_v12 = vsel %vm1975_vm15, %v1972_v39, %v2656_v25  ;;  %v1998_v53 = vsel %vm1993_vm1, %v1989_v21, %v2670_v3 }
 0x64a   : > { %v1939_v57 = vpop.permute.xlu0 %1938 }
 0x64c   : > { %v2674_v60 = vpop.permute.xlu1 %2673 }
 0x64d   : > { %v2675_v7 = vunpack.i.l.bf16 %v2674_v60  ;;  %v2676_v56 = vunpack.i.h.bf16 %v2674_v60 }
 0x64e   : > { %v2684_v59 = vpop.permute.xlu0 %2683 }
 0x64f   : > { %v2685_v0 = vunpack.i.l.bf16 %v2684_v59  ;;  %v2686_v33 = vunpack.i.h.bf16 %v2684_v59 }
 0x650   : > { %v2679_v51 = vpop.permute.xlu1 %2678 }
 0x651   : > { %v1956_v30 = vsel %vm624_vm8, %v3541_v44, %v2685_v0  ;;  %v2680_v38 = vunpack.i.l.bf16 %v2679_v51  ;;  %v1990_v44 = vsel %vm1984_vm0, %v1981_v12, %v2661_v19  ;;  %v2681_v4 = vunpack.i.h.bf16 %v2679_v51 }
 0x652   : > { %v2689_v35 = vpop.permute.xlu0 %2688  ;;  %v1964_v32 = vsel %vm660_vm12, %v1956_v30, %v2666_v2  ;;  %v1957_v36 = vsel %vm624_vm8, %v3535_v42, %v2686_v33  ;;  %v1999_v5 = vsel %vm1993_vm1, %v1990_v44, %v2671_v9 }
 0x653   : > { %v2690_v28 = vunpack.i.l.bf16 %v2689_v35  ;;  %v1973_v63 = vsel %vm1966_vm14, %v1964_v32, %v2675_v7  ;;  %v2007_v40 = vsel %vm2002_vm2, %v1998_v53, %v2680_v38  ;;  %v2691_v14 = vunpack.i.h.bf16 %v2689_v35 }
 0x654   : > { %v1891_v48 = vpop.permute.xlu1 %1890  ;;  %2130 = vmatmul.mubr.f32.gmra.mrb[16].mxu0 %v2007_v40  ;;  %v2008_v15 = vsel %vm2002_vm2, %v1999_v5, %v2681_v4 }
 0x655   : > { %v1982_v20 = vsel %vm1975_vm15, %v1973_v63, %v2690_v28  ;;  %2329 = vmatprep.mubr.msk.f32.mxu0 %vm624_vm8, %v3641_v8 }
 0x656   : > { %v1814_v62 = vpop.permute.xlu0 %1813  ;;  %v1991_v10 = vsel %vm1984_vm0, %v1982_v20, %v1891_v48 }
 0x657   : > { %v1965_v43 = vsel %vm660_vm12, %v1957_v36, %v1814_v62  ;;  %v2000_v17 = vsel %vm1993_vm1, %v1991_v10, %v1915_v16 }
 0x658   : > { %v1974_v13 = vsel %vm1966_vm14, %v1965_v43, %v2676_v56  ;;  %v1893_v42 = vpop.permute.xlu1 %1892  ;;  %2135 = vmatmul.mubr.f32.gmra.mrb[18].mxu0 %v2008_v15  ;;  %v2009_v18 = vsel %vm2002_vm2, %v2000_v17, %v1939_v57 }
 0x659   : > { %v1983_v50 = vsel %vm1975_vm15, %v1974_v13, %v2691_v14  ;;  %2330 = vmatprep.mubr.msk.f32.mxu0 %vm624_vm8, %v3649_v49 }
 0x65a   : > { %v1917_v29 = vpop.permute.xlu0 %1916  ;;  %v1992_v8 = vsel %vm1984_vm0, %v1983_v50, %v1893_v42 }
 0x65b   : > { %v2001_v49 = vsel %vm1993_vm1, %v1992_v8, %v1917_v29 }
 0x65c   : > { %v1941_v24 = vpop.permute.xlu1 %1940  ;;  %2140 = vmatmul.mubr.f32.gmra.mrb[20].mxu0 %v2009_v18 }
 0x65d   : > { %2331 = vmatprep.mubr.msk.f32.mxu0 %vm624_vm8, %v2825_v1  ;;  %v2010_v45 = vsel %vm2002_vm2, %v2001_v49, %v1941_v24 }
 0x65e   : > { %v1602_v22 = vpop.permute.xlu0 %1601 }
 0x65f   : > { %v1625_v6 = vsel %vm624_vm8, %v3329_v55, %v1602_v22 }
 0x660   : > { %1633 = vst.msk [vmem:[%s3749_s19] sm:$0xff] %vm660_vm12, %v1625_v6  ;;  %v1604_v47 = vpop.permute.xlu1 %1603  ;;  %2145 = vmatmul.mubr.f32.gmra.mrb[22].mxu0 %v2010_v45 }
 0x661   : > { %v1626_v55 = vsel %vm624_vm8, %v3337_v37, %v1604_v47 }
 0x662   : > { %v1606_v16 = vpop.permute.xlu0 %1605  ;;  %1634 = vst.msk [vmem:[%s3749_s19 + $0x8] sm:$0xff] %vm660_vm12, %v1626_v55 }
 0x663   : > { %v1627_v57 = vsel %vm624_vm8, %v3340_v41, %v1606_v16 }
 0x664   : > { %1635 = vst.msk [vmem:[%s3749_s19 + $0x10] sm:$0xff] %vm660_vm12, %v1627_v57  ;;  %v1608_v52 = vpop.permute.xlu1 %1607 }
 0x665   : > { %v1628_v27 = vsel %vm624_vm8, %v3347_v26, %v1608_v52 }
 0x666   : > { %v1610_v1 = vpop.permute.xlu0 %1609  ;;  %1636 = vst.msk [vmem:[%s3749_s19 + $0x18] sm:$0xff] %vm660_vm12, %v1628_v27 }
 0x667   : > { %v1629_v23 = vsel %vm624_vm8, %v3350_v54, %v1610_v1 }
 0x668   : > { %1637 = vst.msk [vmem:[%s3749_s19 + $0x20] sm:$0xff] %vm660_vm12, %v1629_v23  ;;  %v1612_v37 = vpop.permute.xlu1 %1611 }
 0x669   : > { %v1630_v59 = vsel %vm624_vm8, %v3357_v58, %v1612_v37 }
 0x66a   : > { %v1614_v41 = vpop.permute.xlu0 %1613  ;;  %1638 = vst.msk [vmem:[%s3749_s19 + $0x28] sm:$0xff] %vm660_vm12, %v1630_v59 }
 0x66b   : > { %v1631_v61 = vsel %vm624_vm8, %v3360_v34, %v1614_v41 }
 0x66c   : > { %1639 = vst.msk [vmem:[%s3749_s19 + $0x30] sm:$0xff] %vm660_vm12, %v1631_v61  ;;  %v1616_v54 = vpop.permute.xlu1 %1615 }
 0x66d   : > { %v1632_v26 = vsel %vm624_vm8, %v3367_v46, %v1616_v54 }
 0x66e   : > { %1640 = vst.msk [vmem:[%s3749_s19 + $0x38] sm:$0xff] %vm660_vm12, %v1632_v26 }
 0x707   : > { %v2111_v39 = vpop.f32.mrb[8].mxu0 }
 0x708   : > { %2150 = vst.msk [vmem:[%s279_s29] sm:$0xff] %vm597_vm6, %v2111_v39  ;;  %v2113_v34 = vpop.f32.mrb[9].mxu0 }
 0x70b   : > { %v2116_v60 = vpop.f32.mrb[10].mxu0 }
 0x70c   : > { %2151 = vst.msk [vmem:[%s279_s29 + $0x8] sm:$0xff] %vm597_vm6, %v2116_v60  ;;  %v2118_v58 = vpop.f32.mrb[11].mxu0 }
 0x715   : > { %v2121_v0 = vpop.f32.mrb[12].mxu0 }
 0x716   : > { %2152 = vst.msk [vmem:[%s279_s29 + $0x10] sm:$0xff] %vm597_vm6, %v2121_v0  ;;  %v2123_v25 = vpop.f32.mrb[13].mxu0 }
 0x719   : > { %v2126_v31 = vpop.f32.mrb[14].mxu0 }
 0x71a   : > { %2153 = vst.msk [vmem:[%s279_s29 + $0x18] sm:$0xff] %vm597_vm6, %v2126_v31  ;;  %v2128_v46 = vpop.f32.mrb[15].mxu0 }
 0x727   : > { %v2131_v2 = vpop.f32.mrb[16].mxu0 }
 0x728   : > { %2154 = vst.msk [vmem:[%s279_s29 + $0x20] sm:$0xff] %vm597_vm6, %v2131_v2  ;;  %v2133_v11 = vpop.f32.mrb[17].mxu0 }
 0x72b   : > { %v2136_v3 = vpop.f32.mrb[18].mxu0 }
 0x72c   : > { %2155 = vst.msk [vmem:[%s279_s29 + $0x28] sm:$0xff] %vm597_vm6, %v2136_v3  ;;  %v2138_v7 = vpop.f32.mrb[19].mxu0 }
 0x72f   : > { %v2141_v30 = vpop.f32.mrb[20].mxu0 }
 0x730   : > { %2156 = vst.msk [vmem:[%s279_s29 + $0x30] sm:$0xff] %vm597_vm6, %v2141_v30  ;;  %v2143_v33 = vpop.f32.mrb[21].mxu0 }
 0x733   : > { %v2146_v35 = vpop.f32.mrb[22].mxu0 }
 0x734   : > { %2157 = vst.msk [vmem:[%s279_s29 + $0x38] sm:$0xff] %vm597_vm6, %v2146_v35  ;;  %v2148_v32 = vpop.f32.mrb[23].mxu0 }
 0x735 PF: > { %s17_s21 = sadd.s32 1, %s2762_s21  }
 0x736   : > { %p14_p4 = scmp.ge.s32.totalorder %s17_s21, 4  }
 0x738   :  { %16 = sbr.rel (!%p14_p4) target bundleno = 1 (0x1), region = 86 }

</bundles_post_ra>
